<compile_context>
chip_gen: v7x
topology: tpu7x:2x2x1
jax: 0.10.0
libtpu: 0.0.40
codegen_flags: <defaults>
</compile_context>

<pallas_src>
import functools

import jax
import jax.numpy as jnp
from jax import lax
from jax.experimental import pallas as pl
from jax.experimental.pallas import tpu as pltpu


def _round_up(x, m):
    return (x + m - 1) // m * m


def _pick_block_h(h, wp8, cout_t, acc_budget=128 * 1024, cap=8):
    # Largest divisor of H (<= cap) whose f32 accumulator fits the vreg budget.
    bh = max(1, min(cap, h, acc_budget // (wp8 * cout_t * 4) or 1))
    while h % bh:
        bh -= 1
    return bh


def _spec(block_shape, index_map, single_buffer=False):
    if single_buffer:
        try:
            # Invariant operand: double-buffering it only wastes VMEM (worst on v7x).
            return pl.BlockSpec(block_shape, index_map, pipeline_mode=pl.Buffered(1))
        except Exception:  # pragma: no cover - older Pallas without pipeline_mode
            pass
    return pl.BlockSpec(block_shape, index_map)


def _baseconv_kernel(x_ref, w_ref, b_ref, o_ref, *, ksize, wp8, pack_taps, act):
    # x_ref: (1, 1, tile_rows, Cin)           bf16 halo'd row tile (padded rows flat)
    # w_ref: (K*K*Cin, Ct) or (K*K, Cin, Ct)  bf16, BN scale folded in
    # b_ref: (1, Ct)                          f32 folded BN bias
    # o_ref: (1, block_h, Wp, Ct)             bf16 W-padded output row tile
    block_h = o_ref.shape[1]
    cout_t = o_ref.shape[3]
    rows = block_h * wp8  # static, multiple of 8

    if pack_taps:
        # im2col along K: lane-concat the 9 tap windows -> one MXU matmul (K = 9*Cin).
        parts = [x_ref[0, 0, pl.ds(kh * wp8 + kw, rows), :]
                 for kh in range(ksize) for kw in range(ksize)]
        lhs = jnp.concatenate(parts, axis=-1)                  # (rows, K*K*Cin)
        acc = jnp.dot(lhs, w_ref[...], preferred_element_type=jnp.float32)
    else:
        # One matmul per tap (used when Cin already fills the MXU K dimension).
        acc = jnp.zeros((rows, cout_t), jnp.float32)
        for kh in range(ksize):
            for kw in range(ksize):
                win = x_ref[0, 0, pl.ds(kh * wp8 + kw, rows), :]
                acc = acc + jnp.dot(win, w_ref[kh * ksize + kw],
                                    preferred_element_type=jnp.float32)

    y = acc + b_ref[...]                                       # folded BN bias
    if act == "silu":
        y = y * jax.nn.sigmoid(y)
    elif act == "relu":
        y = jnp.maximum(y, 0.0)
    elif act == "lrelu":
        y = jnp.where(y >= 0, y, 0.1 * y)
    else:
        raise ValueError(f"Unsupported act type: {act}")

    # Columns j >= W of each padded row hold wrapped (finite) values; they are stored
    # as-is (no in-register W crop / masked-store games) and cropped in the wrapper.
    o_ref[0] = y.reshape(block_h, wp8, cout_t).astype(o_ref.dtype)


def base_conv(x_nhwc, w_hwio, gamma, beta, running_mean, running_var, *,
              ksize, stride=1, groups=1, eps=1e-5, act="silu"):
    if stride != 1 or groups != 1:
        # TODO(synk): strided / grouped conv path not implemented.
        raise NotImplementedError("only stride=1, groups=1 is implemented")

    n, h, w, cin = x_nhwc.shape
    kh_, kw_, wcin, cout = w_hwio.shape
    assert kh_ == ksize and kw_ == ksize and wcin == cin
    pad = (ksize - 1) // 2

    wp8 = _round_up(w + 2 * pad, 8)          # padded row length (sublane granule)

    # ---- Cout tiling: match the MXU N granule; don't pad tiny Cout to 128 ----
    if cout >= 128:
        cout_p = _round_up(cout, 128)
        cout_t = 256 if cout_p % 256 == 0 else 128
    else:
        cout_p = cout_t = cout               # small Cout: store exact lanes
    n_co = cout_p // cout_t

    # ---- H tiling: halo'd row windows with a bounded accumulator ----
    block_h = _pick_block_h(h, wp8, cout_t)
    n_ht = h // block_h
    th = block_h + 2 * pad + 1               # +1 row keeps every tap window in-bounds
    tile_rows = th * wp8

    # Zero-pad (SAME) and gather the overlapping row tiles.  XLA fuses the
    # pad + gather + bf16 cast into a single producer of x_tiles.
    x_pad = jnp.pad(x_nhwc.astype(jnp.bfloat16),
                    ((0, 0), (pad, pad + 1), (pad, wp8 - w - pad), (0, 0)))
    row_idx = jnp.arange(n_ht)[:, None] * block_h + jnp.arange(th)[None, :]
    x_tiles = x_pad[:, row_idx].reshape(n, n_ht, tile_rows, cin)

    # ---- fold BatchNorm (inference running stats) into the conv weights ----
    inv_std = lax.rsqrt(running_var.astype(jnp.float32) + eps)
    scale = gamma.astype(jnp.float32) * inv_std
    bias = beta.astype(jnp.float32) - running_mean.astype(jnp.float32) * scale
    w_fold = w_hwio.astype(jnp.float32) * scale[None, None, None, :]  # (K,K,Ci,Co)
    bias_p = jnp.zeros((1, cout_p), jnp.float32).at[0, :cout].set(bias)

    single_buf = n_co == 1                   # weights/bias invariant over the grid

    def _call(pack_taps, single_buffer):
        if pack_taps:
            wk = w_fold.reshape(ksize * ksize * cin, cout)
            w_op = (jnp.zeros((ksize * ksize * cin, cout_p), jnp.float32)
                    .at[:, :cout].set(wk).astype(jnp.bfloat16))
            w_spec = _spec((ksize * ksize * cin, cout_t),
                           lambda i, t, co: (0, co), single_buffer)
        else:
            wk = w_fold.reshape(ksize * ksize, cin, cout)
            w_op = (jnp.zeros((ksize * ksize, cin, cout_p), jnp.float32)
                    .at[:, :, :cout].set(wk).astype(jnp.bfloat16))
            w_spec = _spec((ksize * ksize, cin, cout_t),
                           lambda i, t, co: (0, 0, co), single_buffer)
        kernel = functools.partial(_baseconv_kernel, ksize=ksize, wp8=wp8,
                                   pack_taps=pack_taps, act=act)
        return pl.pallas_call(
            kernel,
            out_shape=jax.ShapeDtypeStruct((n, h, wp8, cout_p), jnp.bfloat16),
            grid_spec=pltpu.PrefetchScalarGridSpec(
                num_scalar_prefetch=0,
                grid=(n, n_ht, n_co),        # co innermost -> input row tile reused
                in_specs=[
                    pl.BlockSpec((1, 1, tile_rows, cin),
                                 lambda i, t, co: (i, t, 0, 0)),
                    w_spec,
                    _spec((1, cout_t), lambda i, t, co: (0, co), single_buffer),
                ],
                out_specs=pl.BlockSpec((1, block_h, wp8, cout_t),
                                       lambda i, t, co: (i, t, 0, co)),
            ),
            compiler_params=pltpu.CompilerParams(
                dimension_semantics=("parallel", "parallel", "parallel"),
                vmem_limit_bytes=32 * 1024 * 1024),
        )(x_tiles, w_op, bias_p)

    # Pack the 9 taps into K when Cin is small (MXU K utilization).  The fallback
    # ladder only trades performance for portability across jax/libtpu versions.
    pack_taps = ksize * ksize * cin <= 256
    configs = [(pack_taps, single_buf), (pack_taps, False), (False, False)]
    out, last_err = None, None
    for cfg in configs:
        try:
            out = _call(*cfg)
            break
        except Exception as e:               # pragma: no cover - portability fallback
            last_err = e
    if out is None:
        raise last_err

    # Crop the W halo and (if any) the Cout padding once, outside the kernel.
    return out[:, :, :w, :cout]


if __name__ == "__main__":
    key = jax.random.PRNGKey(0)
    k1, k2, k3, k4, k5, k6 = jax.random.split(key, 6)

    N, Cin, H, W = 2, 4, 16, 16
    Cout, ksize, stride = 8, 3, 1
    eps = 1e-5

    # Deterministic parameters (shapes match nn.Conv2d / nn.BatchNorm2d).
    x_nchw = jax.random.normal(k1, (N, Cin, H, W), jnp.float32)
    w_oihw = jax.random.normal(k2, (Cout, Cin, ksize, ksize), jnp.float32) * 0.1
    gamma = 1.0 + 0.1 * jax.random.normal(k3, (Cout,), jnp.float32)
    beta = 0.1 * jax.random.normal(k4, (Cout,), jnp.float32)
    running_mean = 0.1 * jax.random.normal(k5, (Cout,), jnp.float32)
    running_var = jax.nn.softplus(jax.random.normal(k6, (Cout,), jnp.float32)) + 0.5

    # NCHW -> NHWC, OIHW -> HWIO for the kernel.
    x_nhwc = jnp.transpose(x_nchw, (0, 2, 3, 1))
    w_hwio = jnp.transpose(w_oihw, (2, 3, 1, 0))

    out_nhwc = base_conv(x_nhwc, w_hwio, gamma, beta, running_mean, running_var,
                         ksize=ksize, stride=stride, eps=eps)
    out_nchw = jnp.transpose(out_nhwc.astype(jnp.float32), (0, 3, 1, 2))
    jax.block_until_ready(out_nchw)

    # Pure-JAX reference on the same bf16-quantized operands the kernel uses
    # (BN scale folded into weights, bf16 inputs, f32 accumulate, SiLU epilogue).
    scale = gamma / jnp.sqrt(running_var + eps)
    bias = beta - running_mean * scale
    x_q = x_nchw.astype(jnp.bfloat16).astype(jnp.float32)
    w_q = (w_oihw * scale[:, None, None, None]).astype(jnp.bfloat16).astype(jnp.float32)
    y = lax.conv_general_dilated(
        x_q, w_q, window_strides=(stride, stride), padding="SAME",
        dimension_numbers=("NCHW", "OIHW", "NCHW"),
        precision=lax.Precision.HIGHEST)
    y = y + bias[None, :, None, None]
    ref = y * jax.nn.sigmoid(y)

    # Kernel output is bf16 -> allow bf16-rounding-level tolerance.
    err = float(jnp.max(jnp.abs(out_nchw - ref)))
    assert jnp.allclose(out_nchw, ref, atol=2e-2, rtol=2e-2), err
    print("KERNEL_OK")
</pallas_src>

<mosaic_0001>
module attributes {stable_mosaic.version = 11 : i64} {
  func.func @_baseconv_kernel(%arg0: i32, %arg1: i32, %arg2: i32, %arg3: memref<1x1x264x4xbf16, #tpu.memory_space<vmem>>, %arg4: memref<36x8xbf16, #tpu.memory_space<vmem>>, %arg5: memref<1x8xf32, #tpu.memory_space<vmem>>, %arg6: memref<1x8x24x8xbf16, #tpu.memory_space<vmem>>) attributes {dimension_semantics = [#tpu.dimension_semantics<parallel>, #tpu.dimension_semantics<parallel>, #tpu.dimension_semantics<parallel>], iteration_bounds = array<i64: 2, 2, 1>, scalar_prefetch = 0 : i64, scratch_operands = 0 : i64, tpu.core_type = #tpu.core_type<tc>, window_params = [{transform_indices = @transform_0, window_bounds = array<i64: 1, 1, 264, 4>}, {pipeline_mode = #tpu.pipeline_mode<synchronous>, transform_indices = @transform_1, window_bounds = array<i64: 36, 8>}, {pipeline_mode = #tpu.pipeline_mode<synchronous>, transform_indices = @transform_2, window_bounds = array<i64: 1, 8>}, {transform_indices = @transform_3, window_bounds = array<i64: 1, 8, 24, 8>}]} {
    %c0 = arith.constant 0 : index
    %c0_0 = arith.constant 0 : index
    %c0_1 = arith.constant 0 : index
    %c0_2 = arith.constant 0 : index
    %0 = vector.load %arg3[%c0, %c0_0, %c0_1, %c0_2] : memref<1x1x264x4xbf16, #tpu.memory_space<vmem>>, vector<1x1x192x4xbf16>
    %1 = vector.shape_cast %0 : vector<1x1x192x4xbf16> to vector<192x4xbf16>
    %c0_3 = arith.constant 0 : index
    %c0_4 = arith.constant 0 : index
    %c1 = arith.constant 1 : index
    %c0_5 = arith.constant 0 : index
    %2 = vector.load %arg3[%c0_3, %c0_4, %c1, %c0_5] : memref<1x1x264x4xbf16, #tpu.memory_space<vmem>>, vector<1x1x192x4xbf16>
    %3 = vector.shape_cast %2 : vector<1x1x192x4xbf16> to vector<192x4xbf16>
    %c0_6 = arith.constant 0 : index
    %c0_7 = arith.constant 0 : index
    %c2 = arith.constant 2 : index
    %c0_8 = arith.constant 0 : index
    %4 = vector.load %arg3[%c0_6, %c0_7, %c2, %c0_8] : memref<1x1x264x4xbf16, #tpu.memory_space<vmem>>, vector<1x1x192x4xbf16>
    %5 = vector.shape_cast %4 : vector<1x1x192x4xbf16> to vector<192x4xbf16>
    %c0_9 = arith.constant 0 : index
    %c0_10 = arith.constant 0 : index
    %c24 = arith.constant 24 : index
    %c0_11 = arith.constant 0 : index
    %6 = vector.load %arg3[%c0_9, %c0_10, %c24, %c0_11] : memref<1x1x264x4xbf16, #tpu.memory_space<vmem>>, vector<1x1x192x4xbf16>
    %7 = vector.shape_cast %6 : vector<1x1x192x4xbf16> to vector<192x4xbf16>
    %c0_12 = arith.constant 0 : index
    %c0_13 = arith.constant 0 : index
    %c25 = arith.constant 25 : index
    %c0_14 = arith.constant 0 : index
    %8 = vector.load %arg3[%c0_12, %c0_13, %c25, %c0_14] : memref<1x1x264x4xbf16, #tpu.memory_space<vmem>>, vector<1x1x192x4xbf16>
    %9 = vector.shape_cast %8 : vector<1x1x192x4xbf16> to vector<192x4xbf16>
    %c0_15 = arith.constant 0 : index
    %c0_16 = arith.constant 0 : index
    %c26 = arith.constant 26 : index
    %c0_17 = arith.constant 0 : index
    %10 = vector.load %arg3[%c0_15, %c0_16, %c26, %c0_17] : memref<1x1x264x4xbf16, #tpu.memory_space<vmem>>, vector<1x1x192x4xbf16>
    %11 = vector.shape_cast %10 : vector<1x1x192x4xbf16> to vector<192x4xbf16>
    %c0_18 = arith.constant 0 : index
    %c0_19 = arith.constant 0 : index
    %c48 = arith.constant 48 : index
    %c0_20 = arith.constant 0 : index
    %12 = vector.load %arg3[%c0_18, %c0_19, %c48, %c0_20] : memref<1x1x264x4xbf16, #tpu.memory_space<vmem>>, vector<1x1x192x4xbf16>
    %13 = vector.shape_cast %12 : vector<1x1x192x4xbf16> to vector<192x4xbf16>
    %c0_21 = arith.constant 0 : index
    %c0_22 = arith.constant 0 : index
    %c49 = arith.constant 49 : index
    %c0_23 = arith.constant 0 : index
    %14 = vector.load %arg3[%c0_21, %c0_22, %c49, %c0_23] : memref<1x1x264x4xbf16, #tpu.memory_space<vmem>>, vector<1x1x192x4xbf16>
    %15 = vector.shape_cast %14 : vector<1x1x192x4xbf16> to vector<192x4xbf16>
    %c0_24 = arith.constant 0 : index
    %c0_25 = arith.constant 0 : index
    %c50 = arith.constant 50 : index
    %c0_26 = arith.constant 0 : index
    %16 = vector.load %arg3[%c0_24, %c0_25, %c50, %c0_26] : memref<1x1x264x4xbf16, #tpu.memory_space<vmem>>, vector<1x1x192x4xbf16>
    %17 = vector.shape_cast %16 : vector<1x1x192x4xbf16> to vector<192x4xbf16>
    %18 = tpu.concatenate %1, %3, %5, %7, %9, %11, %13, %15, %17 in 1 : vector<192x4xbf16>, vector<192x4xbf16>, vector<192x4xbf16>, vector<192x4xbf16>, vector<192x4xbf16>, vector<192x4xbf16>, vector<192x4xbf16>, vector<192x4xbf16>, vector<192x4xbf16> -> vector<192x36xbf16>
    %c0_27 = arith.constant 0 : index
    %c0_28 = arith.constant 0 : index
    %19 = vector.load %arg4[%c0_27, %c0_28] : memref<36x8xbf16, #tpu.memory_space<vmem>>, vector<36x8xbf16>
    %cst = arith.constant dense<0.000000e+00> : vector<192x8xf32>
    %20 = tpu.matmul %18, %19, %cst {dimension_numbers = #tpu.dot_dimension_numbers<[1], [0], [0], [1], [0, 0, 1, 1], [], []>} : vector<192x36xbf16>, vector<36x8xbf16>, vector<192x8xf32> -> vector<192x8xf32>
    %c0_29 = arith.constant 0 : index
    %c0_30 = arith.constant 0 : index
    %21 = vector.load %arg5[%c0_29, %c0_30] : memref<1x8xf32, #tpu.memory_space<vmem>>, vector<1x8xf32>
    %22 = vector.broadcast %21 : vector<1x8xf32> to vector<192x8xf32>
    %23 = arith.addf %20, %22 : vector<192x8xf32>
    %24 = arith.negf %23 : vector<192x8xf32>
    %25 = math.exp %24 : vector<192x8xf32>
    %cst_31 = arith.constant 1.000000e+00 : f32
    %26 = vector.broadcast %cst_31 : f32 to vector<192x8xf32>
    %27 = arith.addf %26, %25 : vector<192x8xf32>
    %28 = arith.divf %26, %27 : vector<192x8xf32>
    %29 = arith.mulf %23, %28 : vector<192x8xf32>
    %30 = vector.shape_cast %29 : vector<192x8xf32> to vector<8x24x8xf32>
    %31 = arith.truncf %30 : vector<8x24x8xf32> to vector<8x24x8xbf16>
    %c0_32 = arith.constant 0 : index
    %c0_33 = arith.constant 0 : index
    %c0_34 = arith.constant 0 : index
    %c0_35 = arith.constant 0 : index
    %32 = vector.load %arg6[%c0_32, %c0_33, %c0_34, %c0_35] : memref<1x8x24x8xbf16, #tpu.memory_space<vmem>>, vector<1x8x24x8xbf16>
    %33 = vector.shape_cast %32 : vector<1x8x24x8xbf16> to vector<8x24x8xbf16>
    %34 = vector.shape_cast %31 : vector<8x24x8xbf16> to vector<1x8x24x8xbf16>
    tpu.vector_store %arg6[%c0_32, %c0_33, %c0_34, %c0_35], %34 {strides = array<i32>} : memref<1x8x24x8xbf16, #tpu.memory_space<vmem>>, vector<1x8x24x8xbf16>,
    return
  }
  func.func @transform_0(%arg0: i32, %arg1: i32, %arg2: i32) -> (i32, i32, i32, i32) {
    %c0_i32 = arith.constant 0 : i32
    %c0_i32_0 = arith.constant 0 : i32
    %c0_i32_1 = arith.constant 0 : i32
    return %arg0, %arg1, %c0_i32, %c0_i32_0 : i32, i32, i32, i32
  }
  func.func @transform_1(%arg0: i32, %arg1: i32, %arg2: i32) -> (i32, i32) {
    %c0_i32 = arith.constant 0 : i32
    %c0_i32_0 = arith.constant 0 : i32
    return %c0_i32, %arg2 : i32, i32
  }
  func.func @transform_2(%arg0: i32, %arg1: i32, %arg2: i32) -> (i32, i32) {
    %c0_i32 = arith.constant 0 : i32
    %c0_i32_0 = arith.constant 0 : i32
    return %c0_i32, %arg2 : i32, i32
  }
  func.func @transform_3(%arg0: i32, %arg1: i32, %arg2: i32) -> (i32, i32, i32, i32) {
    %c0_i32 = arith.constant 0 : i32
    %c0_i32_0 = arith.constant 0 : i32
    return %arg0, %arg1, %c0_i32, %arg2 : i32, i32, i32, i32
  }
}

module attributes {stable_mosaic.version = 11 : i64} {
  func.func @_baseconv_kernel(%arg0: i32, %arg1: i32, %arg2: i32, %arg3: memref<1x1x264x4xbf16, #tpu.memory_space<vmem>>, %arg4: memref<36x8xbf16, #tpu.memory_space<vmem>>, %arg5: memref<1x8xf32, #tpu.memory_space<vmem>>, %arg6: memref<1x8x24x8xbf16, #tpu.memory_space<vmem>>) attributes {dimension_semantics = [#tpu.dimension_semantics<parallel>, #tpu.dimension_semantics<parallel>, #tpu.dimension_semantics<parallel>], iteration_bounds = array<i64: 2, 2, 1>, scalar_prefetch = 0 : i64, scratch_operands = 0 : i64, tpu.core_type = #tpu.core_type<tc>, window_params = [{transform_indices = @transform_0, window_bounds = array<i64: 1, 1, 264, 4>}, {transform_indices = @transform_1, window_bounds = array<i64: 36, 8>}, {transform_indices = @transform_2, window_bounds = array<i64: 1, 8>}, {transform_indices = @transform_3, window_bounds = array<i64: 1, 8, 24, 8>}]} {
    %c0 = arith.constant 0 : index
    %c0_0 = arith.constant 0 : index
    %c0_1 = arith.constant 0 : index
    %c0_2 = arith.constant 0 : index
    %0 = vector.load %arg3[%c0, %c0_0, %c0_1, %c0_2] : memref<1x1x264x4xbf16, #tpu.memory_space<vmem>>, vector<1x1x192x4xbf16>
    %1 = vector.shape_cast %0 : vector<1x1x192x4xbf16> to vector<192x4xbf16>
    %c0_3 = arith.constant 0 : index
    %c0_4 = arith.constant 0 : index
    %c1 = arith.constant 1 : index
    %c0_5 = arith.constant 0 : index
    %2 = vector.load %arg3[%c0_3, %c0_4, %c1, %c0_5] : memref<1x1x264x4xbf16, #tpu.memory_space<vmem>>, vector<1x1x192x4xbf16>
    %3 = vector.shape_cast %2 : vector<1x1x192x4xbf16> to vector<192x4xbf16>
    %c0_6 = arith.constant 0 : index
    %c0_7 = arith.constant 0 : index
    %c2 = arith.constant 2 : index
    %c0_8 = arith.constant 0 : index
    %4 = vector.load %arg3[%c0_6, %c0_7, %c2, %c0_8] : memref<1x1x264x4xbf16, #tpu.memory_space<vmem>>, vector<1x1x192x4xbf16>
    %5 = vector.shape_cast %4 : vector<1x1x192x4xbf16> to vector<192x4xbf16>
    %c0_9 = arith.constant 0 : index
    %c0_10 = arith.constant 0 : index
    %c24 = arith.constant 24 : index
    %c0_11 = arith.constant 0 : index
    %6 = vector.load %arg3[%c0_9, %c0_10, %c24, %c0_11] : memref<1x1x264x4xbf16, #tpu.memory_space<vmem>>, vector<1x1x192x4xbf16>
    %7 = vector.shape_cast %6 : vector<1x1x192x4xbf16> to vector<192x4xbf16>
    %c0_12 = arith.constant 0 : index
    %c0_13 = arith.constant 0 : index
    %c25 = arith.constant 25 : index
    %c0_14 = arith.constant 0 : index
    %8 = vector.load %arg3[%c0_12, %c0_13, %c25, %c0_14] : memref<1x1x264x4xbf16, #tpu.memory_space<vmem>>, vector<1x1x192x4xbf16>
    %9 = vector.shape_cast %8 : vector<1x1x192x4xbf16> to vector<192x4xbf16>
    %c0_15 = arith.constant 0 : index
    %c0_16 = arith.constant 0 : index
    %c26 = arith.constant 26 : index
    %c0_17 = arith.constant 0 : index
    %10 = vector.load %arg3[%c0_15, %c0_16, %c26, %c0_17] : memref<1x1x264x4xbf16, #tpu.memory_space<vmem>>, vector<1x1x192x4xbf16>
    %11 = vector.shape_cast %10 : vector<1x1x192x4xbf16> to vector<192x4xbf16>
    %c0_18 = arith.constant 0 : index
    %c0_19 = arith.constant 0 : index
    %c48 = arith.constant 48 : index
    %c0_20 = arith.constant 0 : index
    %12 = vector.load %arg3[%c0_18, %c0_19, %c48, %c0_20] : memref<1x1x264x4xbf16, #tpu.memory_space<vmem>>, vector<1x1x192x4xbf16>
    %13 = vector.shape_cast %12 : vector<1x1x192x4xbf16> to vector<192x4xbf16>
    %c0_21 = arith.constant 0 : index
    %c0_22 = arith.constant 0 : index
    %c49 = arith.constant 49 : index
    %c0_23 = arith.constant 0 : index
    %14 = vector.load %arg3[%c0_21, %c0_22, %c49, %c0_23] : memref<1x1x264x4xbf16, #tpu.memory_space<vmem>>, vector<1x1x192x4xbf16>
    %15 = vector.shape_cast %14 : vector<1x1x192x4xbf16> to vector<192x4xbf16>
    %c0_24 = arith.constant 0 : index
    %c0_25 = arith.constant 0 : index
    %c50 = arith.constant 50 : index
    %c0_26 = arith.constant 0 : index
    %16 = vector.load %arg3[%c0_24, %c0_25, %c50, %c0_26] : memref<1x1x264x4xbf16, #tpu.memory_space<vmem>>, vector<1x1x192x4xbf16>
    %17 = vector.shape_cast %16 : vector<1x1x192x4xbf16> to vector<192x4xbf16>
    %18 = tpu.concatenate %1, %3, %5, %7, %9, %11, %13, %15, %17 in 1 : vector<192x4xbf16>, vector<192x4xbf16>, vector<192x4xbf16>, vector<192x4xbf16>, vector<192x4xbf16>, vector<192x4xbf16>, vector<192x4xbf16>, vector<192x4xbf16>, vector<192x4xbf16> -> vector<192x36xbf16>
    %c0_27 = arith.constant 0 : index
    %c0_28 = arith.constant 0 : index
    %19 = vector.load %arg4[%c0_27, %c0_28] : memref<36x8xbf16, #tpu.memory_space<vmem>>, vector<36x8xbf16>
    %cst = arith.constant dense<0.000000e+00> : vector<192x8xf32>
    %20 = tpu.matmul %18, %19, %cst {dimension_numbers = #tpu.dot_dimension_numbers<[1], [0], [0], [1], [0, 0, 1, 1], [], []>} : vector<192x36xbf16>, vector<36x8xbf16>, vector<192x8xf32> -> vector<192x8xf32>
    %c0_29 = arith.constant 0 : index
    %c0_30 = arith.constant 0 : index
    %21 = vector.load %arg5[%c0_29, %c0_30] : memref<1x8xf32, #tpu.memory_space<vmem>>, vector<1x8xf32>
    %22 = vector.broadcast %21 : vector<1x8xf32> to vector<192x8xf32>
    %23 = arith.addf %20, %22 : vector<192x8xf32>
    %24 = arith.negf %23 : vector<192x8xf32>
    %25 = math.exp %24 : vector<192x8xf32>
    %cst_31 = arith.constant 1.000000e+00 : f32
    %26 = vector.broadcast %cst_31 : f32 to vector<192x8xf32>
    %27 = arith.addf %26, %25 : vector<192x8xf32>
    %28 = arith.divf %26, %27 : vector<192x8xf32>
    %29 = arith.mulf %23, %28 : vector<192x8xf32>
    %30 = vector.shape_cast %29 : vector<192x8xf32> to vector<8x24x8xf32>
    %31 = arith.truncf %30 : vector<8x24x8xf32> to vector<8x24x8xbf16>
    %c0_32 = arith.constant 0 : index
    %c0_33 = arith.constant 0 : index
    %c0_34 = arith.constant 0 : index
    %c0_35 = arith.constant 0 : index
    %32 = vector.load %arg6[%c0_32, %c0_33, %c0_34, %c0_35] : memref<1x8x24x8xbf16, #tpu.memory_space<vmem>>, vector<1x8x24x8xbf16>
    %33 = vector.shape_cast %32 : vector<1x8x24x8xbf16> to vector<8x24x8xbf16>
    %34 = vector.shape_cast %31 : vector<8x24x8xbf16> to vector<1x8x24x8xbf16>
    tpu.vector_store %arg6[%c0_32, %c0_33, %c0_34, %c0_35], %34 {strides = array<i32>} : memref<1x8x24x8xbf16, #tpu.memory_space<vmem>>, vector<1x8x24x8xbf16>,
    return
  }
  func.func @transform_0(%arg0: i32, %arg1: i32, %arg2: i32) -> (i32, i32, i32, i32) {
    %c0_i32 = arith.constant 0 : i32
    %c0_i32_0 = arith.constant 0 : i32
    %c0_i32_1 = arith.constant 0 : i32
    return %arg0, %arg1, %c0_i32, %c0_i32_0 : i32, i32, i32, i32
  }
  func.func @transform_1(%arg0: i32, %arg1: i32, %arg2: i32) -> (i32, i32) {
    %c0_i32 = arith.constant 0 : i32
    %c0_i32_0 = arith.constant 0 : i32
    return %c0_i32, %arg2 : i32, i32
  }
  func.func @transform_2(%arg0: i32, %arg1: i32, %arg2: i32) -> (i32, i32) {
    %c0_i32 = arith.constant 0 : i32
    %c0_i32_0 = arith.constant 0 : i32
    return %c0_i32, %arg2 : i32, i32
  }
  func.func @transform_3(%arg0: i32, %arg1: i32, %arg2: i32) -> (i32, i32, i32, i32) {
    %c0_i32 = arith.constant 0 : i32
    %c0_i32_0 = arith.constant 0 : i32
    return %arg0, %arg1, %c0_i32, %arg2 : i32, i32, i32, i32
  }
}

module attributes {stable_mosaic.version = 11 : i64} {
  func.func @_baseconv_kernel(%arg0: i32, %arg1: i32, %arg2: i32, %arg3: memref<1x1x264x4xbf16, #tpu.memory_space<vmem>>, %arg4: memref<9x4x8xbf16, #tpu.memory_space<vmem>>, %arg5: memref<1x8xf32, #tpu.memory_space<vmem>>, %arg6: memref<1x8x24x8xbf16, #tpu.memory_space<vmem>>) attributes {dimension_semantics = [#tpu.dimension_semantics<parallel>, #tpu.dimension_semantics<parallel>, #tpu.dimension_semantics<parallel>], iteration_bounds = array<i64: 2, 2, 1>, scalar_prefetch = 0 : i64, scratch_operands = 0 : i64, tpu.core_type = #tpu.core_type<tc>, window_params = [{transform_indices = @transform_0, window_bounds = array<i64: 1, 1, 264, 4>}, {transform_indices = @transform_1, window_bounds = array<i64: 9, 4, 8>}, {transform_indices = @transform_2, window_bounds = array<i64: 1, 8>}, {transform_indices = @transform_3, window_bounds = array<i64: 1, 8, 24, 8>}]} {
    %cst = arith.constant 0.000000e+00 : f32
    %0 = vector.broadcast %cst : f32 to vector<192x8xf32>
    %c0 = arith.constant 0 : index
    %c0_0 = arith.constant 0 : index
    %c0_1 = arith.constant 0 : index
    %c0_2 = arith.constant 0 : index
    %1 = vector.load %arg3[%c0, %c0_0, %c0_1, %c0_2] : memref<1x1x264x4xbf16, #tpu.memory_space<vmem>>, vector<1x1x192x4xbf16>
    %2 = vector.shape_cast %1 : vector<1x1x192x4xbf16> to vector<192x4xbf16>
    %c0_3 = arith.constant 0 : index
    %c0_4 = arith.constant 0 : index
    %c0_5 = arith.constant 0 : index
    %3 = vector.load %arg4[%c0_3, %c0_4, %c0_5] : memref<9x4x8xbf16, #tpu.memory_space<vmem>>, vector<1x4x8xbf16>
    %4 = vector.shape_cast %3 : vector<1x4x8xbf16> to vector<4x8xbf16>
    %cst_6 = arith.constant dense<0.000000e+00> : vector<192x8xf32>
    %5 = tpu.matmul %2, %4, %cst_6 {dimension_numbers = #tpu.dot_dimension_numbers<[1], [0], [0], [1], [0, 0, 1, 1], [], []>} : vector<192x4xbf16>, vector<4x8xbf16>, vector<192x8xf32> -> vector<192x8xf32>
    %6 = arith.addf %0, %5 : vector<192x8xf32>
    %c0_7 = arith.constant 0 : index
    %c0_8 = arith.constant 0 : index
    %c1 = arith.constant 1 : index
    %c0_9 = arith.constant 0 : index
    %7 = vector.load %arg3[%c0_7, %c0_8, %c1, %c0_9] : memref<1x1x264x4xbf16, #tpu.memory_space<vmem>>, vector<1x1x192x4xbf16>
    %8 = vector.shape_cast %7 : vector<1x1x192x4xbf16> to vector<192x4xbf16>
    %c1_10 = arith.constant 1 : index
    %c0_11 = arith.constant 0 : index
    %c0_12 = arith.constant 0 : index
    %9 = vector.load %arg4[%c1_10, %c0_11, %c0_12] : memref<9x4x8xbf16, #tpu.memory_space<vmem>>, vector<1x4x8xbf16>
    %10 = vector.shape_cast %9 : vector<1x4x8xbf16> to vector<4x8xbf16>
    %cst_13 = arith.constant dense<0.000000e+00> : vector<192x8xf32>
    %11 = tpu.matmul %8, %10, %cst_13 {dimension_numbers = #tpu.dot_dimension_numbers<[1], [0], [0], [1], [0, 0, 1, 1], [], []>} : vector<192x4xbf16>, vector<4x8xbf16>, vector<192x8xf32> -> vector<192x8xf32>
    %12 = arith.addf %6, %11 : vector<192x8xf32>
    %c0_14 = arith.constant 0 : index
    %c0_15 = arith.constant 0 : index
    %c2 = arith.constant 2 : index
    %c0_16 = arith.constant 0 : index
    %13 = vector.load %arg3[%c0_14, %c0_15, %c2, %c0_16] : memref<1x1x264x4xbf16, #tpu.memory_space<vmem>>, vector<1x1x192x4xbf16>
    %14 = vector.shape_cast %13 : vector<1x1x192x4xbf16> to vector<192x4xbf16>
    %c2_17 = arith.constant 2 : index
    %c0_18 = arith.constant 0 : index
    %c0_19 = arith.constant 0 : index
    %15 = vector.load %arg4[%c2_17, %c0_18, %c0_19] : memref<9x4x8xbf16, #tpu.memory_space<vmem>>, vector<1x4x8xbf16>
    %16 = vector.shape_cast %15 : vector<1x4x8xbf16> to vector<4x8xbf16>
    %cst_20 = arith.constant dense<0.000000e+00> : vector<192x8xf32>
    %17 = tpu.matmul %14, %16, %cst_20 {dimension_numbers = #tpu.dot_dimension_numbers<[1], [0], [0], [1], [0, 0, 1, 1], [], []>} : vector<192x4xbf16>, vector<4x8xbf16>, vector<192x8xf32> -> vector<192x8xf32>
    %18 = arith.addf %12, %17 : vector<192x8xf32>
    %c0_21 = arith.constant 0 : index
    %c0_22 = arith.constant 0 : index
    %c24 = arith.constant 24 : index
    %c0_23 = arith.constant 0 : index
    %19 = vector.load %arg3[%c0_21, %c0_22, %c24, %c0_23] : memref<1x1x264x4xbf16, #tpu.memory_space<vmem>>, vector<1x1x192x4xbf16>
    %20 = vector.shape_cast %19 : vector<1x1x192x4xbf16> to vector<192x4xbf16>
    %c3 = arith.constant 3 : index
    %c0_24 = arith.constant 0 : index
    %c0_25 = arith.constant 0 : index
    %21 = vector.load %arg4[%c3, %c0_24, %c0_25] : memref<9x4x8xbf16, #tpu.memory_space<vmem>>, vector<1x4x8xbf16>
    %22 = vector.shape_cast %21 : vector<1x4x8xbf16> to vector<4x8xbf16>
    %cst_26 = arith.constant dense<0.000000e+00> : vector<192x8xf32>
    %23 = tpu.matmul %20, %22, %cst_26 {dimension_numbers = #tpu.dot_dimension_numbers<[1], [0], [0], [1], [0, 0, 1, 1], [], []>} : vector<192x4xbf16>, vector<4x8xbf16>, vector<192x8xf32> -> vector<192x8xf32>
    %24 = arith.addf %18, %23 : vector<192x8xf32>
    %c0_27 = arith.constant 0 : index
    %c0_28 = arith.constant 0 : index
    %c25 = arith.constant 25 : index
    %c0_29 = arith.constant 0 : index
    %25 = vector.load %arg3[%c0_27, %c0_28, %c25, %c0_29] : memref<1x1x264x4xbf16, #tpu.memory_space<vmem>>, vector<1x1x192x4xbf16>
    %26 = vector.shape_cast %25 : vector<1x1x192x4xbf16> to vector<192x4xbf16>
    %c4 = arith.constant 4 : index
    %c0_30 = arith.constant 0 : index
    %c0_31 = arith.constant 0 : index
    %27 = vector.load %arg4[%c4, %c0_30, %c0_31] : memref<9x4x8xbf16, #tpu.memory_space<vmem>>, vector<1x4x8xbf16>
    %28 = vector.shape_cast %27 : vector<1x4x8xbf16> to vector<4x8xbf16>
    %cst_32 = arith.constant dense<0.000000e+00> : vector<192x8xf32>
    %29 = tpu.matmul %26, %28, %cst_32 {dimension_numbers = #tpu.dot_dimension_numbers<[1], [0], [0], [1], [0, 0, 1, 1], [], []>} : vector<192x4xbf16>, vector<4x8xbf16>, vector<192x8xf32> -> vector<192x8xf32>
    %30 = arith.addf %24, %29 : vector<192x8xf32>
    %c0_33 = arith.constant 0 : index
    %c0_34 = arith.constant 0 : index
    %c26 = arith.constant 26 : index
    %c0_35 = arith.constant 0 : index
    %31 = vector.load %arg3[%c0_33, %c0_34, %c26, %c0_35] : memref<1x1x264x4xbf16, #tpu.memory_space<vmem>>, vector<1x1x192x4xbf16>
    %32 = vector.shape_cast %31 : vector<1x1x192x4xbf16> to vector<192x4xbf16>
    %c5 = arith.constant 5 : index
    %c0_36 = arith.constant 0 : index
    %c0_37 = arith.constant 0 : index
    %33 = vector.load %arg4[%c5, %c0_36, %c0_37] : memref<9x4x8xbf16, #tpu.memory_space<vmem>>, vector<1x4x8xbf16>
    %34 = vector.shape_cast %33 : vector<1x4x8xbf16> to vector<4x8xbf16>
    %cst_38 = arith.constant dense<0.000000e+00> : vector<192x8xf32>
    %35 = tpu.matmul %32, %34, %cst_38 {dimension_numbers = #tpu.dot_dimension_numbers<[1], [0], [0], [1], [0, 0, 1, 1], [], []>} : vector<192x4xbf16>, vector<4x8xbf16>, vector<192x8xf32> -> vector<192x8xf32>
    %36 = arith.addf %30, %35 : vector<192x8xf32>
    %c0_39 = arith.constant 0 : index
    %c0_40 = arith.constant 0 : index
    %c48 = arith.constant 48 : index
    %c0_41 = arith.constant 0 : index
    %37 = vector.load %arg3[%c0_39, %c0_40, %c48, %c0_41] : memref<1x1x264x4xbf16, #tpu.memory_space<vmem>>, vector<1x1x192x4xbf16>
    %38 = vector.shape_cast %37 : vector<1x1x192x4xbf16> to vector<192x4xbf16>
    %c6 = arith.constant 6 : index
    %c0_42 = arith.constant 0 : index
    %c0_43 = arith.constant 0 : index
    %39 = vector.load %arg4[%c6, %c0_42, %c0_43] : memref<9x4x8xbf16, #tpu.memory_space<vmem>>, vector<1x4x8xbf16>
    %40 = vector.shape_cast %39 : vector<1x4x8xbf16> to vector<4x8xbf16>
    %cst_44 = arith.constant dense<0.000000e+00> : vector<192x8xf32>
    %41 = tpu.matmul %38, %40, %cst_44 {dimension_numbers = #tpu.dot_dimension_numbers<[1], [0], [0], [1], [0, 0, 1, 1], [], []>} : vector<192x4xbf16>, vector<4x8xbf16>, vector<192x8xf32> -> vector<192x8xf32>
    %42 = arith.addf %36, %41 : vector<192x8xf32>
    %c0_45 = arith.constant 0 : index
    %c0_46 = arith.constant 0 : index
    %c49 = arith.constant 49 : index
    %c0_47 = arith.constant 0 : index
    %43 = vector.load %arg3[%c0_45, %c0_46, %c49, %c0_47] : memref<1x1x264x4xbf16, #tpu.memory_space<vmem>>, vector<1x1x192x4xbf16>
    %44 = vector.shape_cast %43 : vector<1x1x192x4xbf16> to vector<192x4xbf16>
    %c7 = arith.constant 7 : index
    %c0_48 = arith.constant 0 : index
    %c0_49 = arith.constant 0 : index
    %45 = vector.load %arg4[%c7, %c0_48, %c0_49] : memref<9x4x8xbf16, #tpu.memory_space<vmem>>, vector<1x4x8xbf16>
    %46 = vector.shape_cast %45 : vector<1x4x8xbf16> to vector<4x8xbf16>
    %cst_50 = arith.constant dense<0.000000e+00> : vector<192x8xf32>
    %47 = tpu.matmul %44, %46, %cst_50 {dimension_numbers = #tpu.dot_dimension_numbers<[1], [0], [0], [1], [0, 0, 1, 1], [], []>} : vector<192x4xbf16>, vector<4x8xbf16>, vector<192x8xf32> -> vector<192x8xf32>
    %48 = arith.addf %42, %47 : vector<192x8xf32>
    %c0_51 = arith.constant 0 : index
    %c0_52 = arith.constant 0 : index
    %c50 = arith.constant 50 : index
    %c0_53 = arith.constant 0 : index
    %49 = vector.load %arg3[%c0_51, %c0_52, %c50, %c0_53] : memref<1x1x264x4xbf16, #tpu.memory_space<vmem>>, vector<1x1x192x4xbf16>
    %50 = vector.shape_cast %49 : vector<1x1x192x4xbf16> to vector<192x4xbf16>
    %c8 = arith.constant 8 : index
    %c0_54 = arith.constant 0 : index
    %c0_55 = arith.constant 0 : index
    %51 = vector.load %arg4[%c8, %c0_54, %c0_55] : memref<9x4x8xbf16, #tpu.memory_space<vmem>>, vector<1x4x8xbf16>
    %52 = vector.shape_cast %51 : vector<1x4x8xbf16> to vector<4x8xbf16>
    %cst_56 = arith.constant dense<0.000000e+00> : vector<192x8xf32>
    %53 = tpu.matmul %50, %52, %cst_56 {dimension_numbers = #tpu.dot_dimension_numbers<[1], [0], [0], [1], [0, 0, 1, 1], [], []>} : vector<192x4xbf16>, vector<4x8xbf16>, vector<192x8xf32> -> vector<192x8xf32>
    %54 = arith.addf %48, %53 : vector<192x8xf32>
    %c0_57 = arith.constant 0 : index
    %c0_58 = arith.constant 0 : index
    %55 = vector.load %arg5[%c0_57, %c0_58] : memref<1x8xf32, #tpu.memory_space<vmem>>, vector<1x8xf32>
    %56 = vector.broadcast %55 : vector<1x8xf32> to vector<192x8xf32>
    %57 = arith.addf %54, %56 : vector<192x8xf32>
    %58 = arith.negf %57 : vector<192x8xf32>
    %59 = math.exp %58 : vector<192x8xf32>
    %cst_59 = arith.constant 1.000000e+00 : f32
    %60 = vector.broadcast %cst_59 : f32 to vector<192x8xf32>
    %61 = arith.addf %60, %59 : vector<192x8xf32>
    %62 = arith.divf %60, %61 : vector<192x8xf32>
    %63 = arith.mulf %57, %62 : vector<192x8xf32>
    %64 = vector.shape_cast %63 : vector<192x8xf32> to vector<8x24x8xf32>
    %65 = arith.truncf %64 : vector<8x24x8xf32> to vector<8x24x8xbf16>
    %c0_60 = arith.constant 0 : index
    %c0_61 = arith.constant 0 : index
    %c0_62 = arith.constant 0 : index
    %c0_63 = arith.constant 0 : index
    %66 = vector.load %arg6[%c0_60, %c0_61, %c0_62, %c0_63] : memref<1x8x24x8xbf16, #tpu.memory_space<vmem>>, vector<1x8x24x8xbf16>
    %67 = vector.shape_cast %66 : vector<1x8x24x8xbf16> to vector<8x24x8xbf16>
    %68 = vector.shape_cast %65 : vector<8x24x8xbf16> to vector<1x8x24x8xbf16>
    tpu.vector_store %arg6[%c0_60, %c0_61, %c0_62, %c0_63], %68 {strides = array<i32>} : memref<1x8x24x8xbf16, #tpu.memory_space<vmem>>, vector<1x8x24x8xbf16>,
    return
  }
  func.func @transform_0(%arg0: i32, %arg1: i32, %arg2: i32) -> (i32, i32, i32, i32) {
    %c0_i32 = arith.constant 0 : i32
    %c0_i32_0 = arith.constant 0 : i32
    %c0_i32_1 = arith.constant 0 : i32
    return %arg0, %arg1, %c0_i32, %c0_i32_0 : i32, i32, i32, i32
  }
  func.func @transform_1(%arg0: i32, %arg1: i32, %arg2: i32) -> (i32, i32, i32) {
    %c0_i32 = arith.constant 0 : i32
    %c0_i32_0 = arith.constant 0 : i32
    %c0_i32_1 = arith.constant 0 : i32
    return %c0_i32, %c0_i32_0, %arg2 : i32, i32, i32
  }
  func.func @transform_2(%arg0: i32, %arg1: i32, %arg2: i32) -> (i32, i32) {
    %c0_i32 = arith.constant 0 : i32
    %c0_i32_0 = arith.constant 0 : i32
    return %c0_i32, %arg2 : i32, i32
  }
  func.func @transform_3(%arg0: i32, %arg1: i32, %arg2: i32) -> (i32, i32, i32, i32) {
    %c0_i32 = arith.constant 0 : i32
    %c0_i32_0 = arith.constant 0 : i32
    return %arg0, %arg1, %c0_i32, %arg2 : i32, i32, i32, i32
  }
}

</mosaic_0001>

<bundles_post_ra>
// kernel: tpu_custom_call.1
= control target key start
LH: loop header
LB: loop body
LE: loop exit
PB: predicated region body
PF: predicated region fallthrough
CT: control target
= control target key end

     0   :  { %s2140_s12 = smov 0   ;;  %s2142_s13 = smov 0   ;;  %s3105_s0 = inlined_call_operand.vmem [shape: bf16[2,2,264,4], index: 0, kind: input, shape index: {}]   ;;  %s3106_s1 = inlined_call_operand.vmem [shape: bf16[36,8], index: 1, kind: input, shape index: {}]   ;;  %s3107_s2 = inlined_call_operand.vmem [shape: f32[1,8], index: 2, kind: input, shape index: {}]   ;;  %s3108_s3 = inlined_call_operand.vmem [shape: bf16[2,16,24,8], index: 3, kind: output, shape index: {}]  }
   0x1   :  { %s2144_s14 = smov 0   ;;  %s2146_s15 = smov 0  }
   0x2   :  { %s2148_s16 = smov 0  }
   0x3 LB: > { %s28_s17 = sadd.s32 1, %s2102_s14  ;;  %s32_s18 = sadd.s32 1, %s2106_s15  ;;  %s2110_s16 = sphi %s2148_s16, %s13_s16   ;;  %s2106_s15 = sphi %s2146_s15, %s3193_s15   ;;  %s2102_s14 = sphi %s2144_s14, %s3192_s14   ;;  %s2098_s13 = sphi %s2142_s13, %s3191_s13   ;;  %s2094_s12 = sphi %s2140_s12, %s3190_s12  }
   0x4   : > { %p30_p0 = scmp.ge.s32.totalorder %s28_s17, 2  ;;  %p1708_p1 = scmp.ge.s32.totalorder %s2110_s16, 1 }
   0x5   : > { %p183_p2 = scmp.lt.s32.totalorder %s2110_s16, 5 }
   0x6   : > { %s3195_s17 = smov (%p30_p0, %s28_s17), 0  ;;  %s3197_s18 = smov (!%p30_p0, %s32_s18), %s2106_s15 }
   0x7   : > { %p184_p3 = pnand %p1708_p1, %p183_p2  ;;  %p34_p4 = scmp.ge.s32.totalorder %s3197_s18, 2 }
   0x9   : > { %s3199_s18 = smov (%p34_p4, %s3197_s18), 0  ;;  %187 = sbr.rel (%p184_p3) target bundleno = 588 (0x24c), region = 32 }
  0x10   : > { %p226_p5 = scmp.lt.s32.totalorder %s2098_s13, 1  ;;  %p228_p6 = scmp.lt.s32.totalorder %s2094_s12, 1  ;;  %vm484_vm0 = vcmask 1046528   ;;  %vm356_vm1 = vsmask.f32 7424  ;;  %vm1133_vm2 = vcmask 1041408  }
  0x11   : > { %s2112_s27 = smov 12   ;;  %s2113_s28 = smov 8   ;;  %vm881_vm3 = vcmask 31744   ;;  %vm906_vm4 = vcmask 64512   ;;  %vm931_vm5 = vcmask 97280   ;;  %vm956_vm6 = vcmask 130048  }
  0x12   : > { %s3201_s13 = smov (!%p226_p5, %s2098_s13), 1  ;;  %s2114_s29 = smov 4   ;;  %vm981_vm7 = vcmask 162816   ;;  %vm1006_vm8 = vcmask 195584   ;;  %vm1031_vm9 = vcmask 228352   ;;  %vm1056_vm10 = vcmask 261120  }
  0x13   : > { %s229_s19 = scalar_select %p228_p6, %s2094_s12, 1  ;;  %vm1108_vm11 = vcmask 293888   ;;  %vm1538_vm12 = vcmask 60416  }
  0x14   : > { %s1889_s20 = smul.u32 66, %s3201_s13  ;;  %s2115_s30 = smov 16  }
  0x15   : > { %s1888_s21 = smul.u32 33, %s229_s19  ;;  %s2116_s4 = smov 20  }
  0x16   : > { %s2117_s7 = smov 24   ;;  %s2118_s10 = smov 28  }
  0x17   : > { %s232_s22 = sadd.s32 %s1889_s20, %s1888_s21  ;;  %s2119_s20 = smov 32  }
  0x18   : > { %s1709_s23 = sshll.u32 %s232_s22, 2  ;;  %s1891_s24 = smul.u32 48, %s3201_s13 }
  0x19   : > { %s2180_s26 = scalar_lea.vmem %s3105_s0, %s1709_s23  ;;  %s1710_s23 = sshll.u32 %s2094_s12, 3 }
  0x1a   : > { %v272_v0 = vld [vmem:[%s2180_s26 + $0x3c] sm:$0xf]  ;;  %v273_v1 = vld [vmem:[%s2180_s26 + $0x40] sm:$0xf]  ;;  %v2185_v2 = vld [vmem:[%s2180_s26 + $0x44] sm:$0xf] }
  0x1b   : > { %v2188_v3 = vcombine.low %v273_v1, %v2185_v2  ;;  %v2190_v4 = vcombine.low %v272_v0, %v273_v1  ;;  %v2193_v5 = vld [vmem:[%s2180_s26 + $0x38] sm:$0xf]  ;;  %v260_v6 = vld [vmem:[%s2180_s26 + $0xc] sm:$0xf]  ;;  %v2197_v7 = vld [vmem:[%s2180_s26 + $0x10] sm:$0xf] }
  0x1c   : > { %v2200_v8 = vcombine.low %v2193_v5, %v272_v0  ;;  %v2203_v9 = vld [vmem:[%s2180_s26 + $0x14] sm:$0xf]  ;;  %v2206_v10 = vcombine.low %v260_v6, %v2197_v7  ;;  %v259_v11 = vld [vmem:[%s2180_s26 + $0x8] sm:$0xf]  ;;  %v2210_v12 = vld [vmem:[%s2180_s26 + $0x30] sm:$0xf] }
  0x1d   : > { %3137 = vst [vmem:[#allocation2_spill] sm:$0xff] %v2188_v3  ;;  %564 = vrot.lane.b32.xlu1 %v2190_v4, %s2112_s27  ;;  %v2216_v13 = vcombine.low %v2197_v7, %v2203_v9  ;;  %v2218_v14 = vcombine.low %v259_v11, %v260_v6  ;;  %v2221_v15 = vld [vmem:[%s2180_s26 + $0x34] sm:$0xf]  ;;  %v258_v16 = vld [vmem:[%s2180_s26 + $0x4] sm:$0xf]  ;;  %v500_v24 = vrot.slane %v2188_v3, 1 }
  0x1e   : > { %3138 = vst [vmem:[#allocation3_spill] sm:$0xff] %v2200_v8  ;;  %v282_v17 = vld [vmem:[%s2180_s26] sm:$0xe]  ;;  %552 = vrot.lane.b32.xlu0 %v2206_v10, %s2112_s27  ;;  %v2229_v18 = vcombine.low %v2210_v12, %v2221_v15  ;;  %v498_v19 = vrot.slane %v2200_v8, 1  ;;  %v413_v39 = vshll.u32 %v2200_v8, 16  ;;  %v417_v40 = vshrl.u32 %v2200_v8, 16 }
  0x1f   : > { %3139 = vst [vmem:[#allocation4_spill] sm:$0xff] %v2216_v13  ;;  %3140 = vst [vmem:[#allocation5_spill] sm:$0xff] %v2218_v14  ;;  %v1725_v20 = vcombine.low %v282_v17, %v258_v16  ;;  %v257_v21 = vld [vmem:[%s2180_s26] sm:$0xf]  ;;  %v486_v22 = vrot.slane %v2218_v14, 1  ;;  %v488_v25 = vrot.slane %v2216_v13, 1 }
  0x20   : > { %3141 = vst [vmem:[#allocation6_spill] sm:$0xff] %v2229_v18  ;;  %v2234_v23 = vcombine.low %v257_v21, %v258_v16  ;;  %v3114_v26 = vrot.slane %v2229_v18, 1  ;;  %v365_v28 = vshll.u32 %v2218_v14, 16  ;;  %v369_v29 = vshrl.u32 %v2218_v14, 16  ;;  %v275_v46 = vld [vmem:[%s2180_s26 + $0x48] sm:$0xf] }
  0x21   : > { %v485_v27 = vrot.slane %v1725_v20, 1  ;;  %v2244_v30 = vsel %vm484_vm0, %v498_v19, %v500_v24  ;;  %v489_v31 = vsel %vm484_vm0, %v486_v22, %v488_v25  ;;  %v373_v32 = vshll.u32 %v2216_v13, 16  ;;  %v263_v48 = vld [vmem:[%s2180_s26 + $0x18] sm:$0xf]  ;;  %v276_v52 = vld [vmem:[%s2180_s26 + $0x4c] sm:$0xf] }
  0x22   : > { %3142 = vst [vmem:[#allocation7_spill] sm:$0xff] %v2234_v23  ;;  %3143 = vst [vmem:[#allocation8_spill] sm:$0xff] %v2244_v30  ;;  %v358_v33 = vshrl.u32 %v2234_v23, 16  ;;  %v2254_v34 = vsel %vm484_vm0, %v3114_v26, %v498_v19  ;;  %v367_v36 = vrot.slane %v365_v28, 1  ;;  %v360_v37 = vshll.u32 %v2234_v23, 16  ;;  %p245_p7 = scmp.lt.s32.totalorder %s1710_s23, 15 }
  0x23   : > { %3144 = vst [vmem:[#allocation9_spill] sm:$0xff] %v2254_v34  ;;  %v487_v35 = vsel %vm484_vm0, %v485_v27, %v486_v22  ;;  %522 = vrot.lane.b32.xlu1 %v2254_v34, %s2113_s28  ;;  %v2261_v38 = vrot.slane %v373_v32, 1  ;;  %v421_v41 = vshll.u32 %v2188_v3, 16  ;;  %v405_v44 = vshll.u32 %v2229_v18, 16  ;;  %v277_v53 = vld [vmem:[%s2180_s26 + $0x50] sm:$0xf] }
  0x24   : > { %510 = vrot.lane.b32.xlu0 %v487_v35, %s2113_s28  ;;  %v371_v42 = vor.u32 %v369_v29, %v367_v36  ;;  %v362_v43 = vrot.slane %v360_v37, 1  ;;  %v409_v45 = vshrl.u32 %v2229_v18, 16  ;;  %v415_v47 = vrot.slane %v413_v39, 1  ;;  %v2284_v57 = vld [vmem:[%s2180_s26 + $0x1c] sm:$0xf]  ;;  %s3203_s23 = smov (!%p245_p7, %s1710_s23), 15 }
  0x25   : > { %v582_v49 = vshll.u32 %v2206_v10, 16  ;;  %v2271_v51 = vrot.slane %v405_v44, 1  ;;  %v2278_v55 = vrot.slane %v421_v41, 1  ;;  %v2281_v56 = vcombine.low %v2185_v2, %v275_v46  ;;  %v265_v58 = vld [vmem:[%s2180_s26 + $0x20] sm:$0xf]  ;;  %s1890_s12 = smul.u32 3, %s3203_s23 }
  0x26   : > { %v363_v50 = vor.u32 %v362_v43, %v358_v33  ;;  %v419_v54 = vor.u32 %v417_v40, %v415_v47  ;;  %v627_v59 = vshll.u32 %v2190_v4, 16  ;;  %v376_v60 = vsel %vm356_vm1, %v371_v42, %v2261_v38  ;;  %v2318_v22 = vld [vmem:[%s2180_s26 + $0x54] sm:$0xf]  ;;  %v2333_v33 = vld [vmem:[%s2180_s26 + $0x24] sm:$0xf] }
  0x27   : > { %524 = vrot.lane.b32.xlu1 %v2244_v30, %s2113_s28  ;;  %v411_v62 = vor.u32 %v409_v45, %v2271_v51  ;;  %v2293_v63 = vcombine.low %v2203_v9, %v263_v48  ;;  %v2295_v0 = vcombine.low %v276_v52, %v277_v53  ;;  %v2298_v1 = vcombine.low %v2284_v57, %v265_v58  ;;  %v287_v40 = vld [vmem:[%s2180_s26 + $0xc] sm:$0xe]  ;;  %s252_s25 = sadd.s32 %s1891_s24, %s1890_s12 }
  0x28   : > { %512 = vrot.lane.b32.xlu0 %v489_v31, %s2113_s28  ;;  %v368_v61 = vsel %vm356_vm1, %v363_v50, %v367_v36  ;;  %v2304_v2 = vsel %vm356_vm1, %v419_v54, %v2278_v55  ;;  %v2306_v6 = vrot.slane %v627_v59, 1  ;;  %v631_v11 = vshrl.u32 %v2190_v4, 16  ;;  %v267_v59 = vld [vmem:[%s2180_s26 + $0x28] sm:$0xf] }
  0x29   : > { %3145 = vst [vmem:[#allocation10_spill] sm:$0xff] %v2304_v2  ;;  %v635_v9 = vshll.u32 %v2281_v56, 16  ;;  %v2311_v16 = vsel %vm356_vm1, %v411_v62, %v415_v47  ;;  %v580_v17 = vshrl.u32 %v2206_v10, 16  ;;  %v584_v19 = vrot.slane %v582_v49, 1  ;;  %v280_v47 = vld [vmem:[%s2180_s26 + $0x5c] sm:$0xf] }
  0x2a   : > { %3146 = vst [vmem:[#allocation11_spill] sm:$0xff] %v2311_v16  ;;  %v587_v20 = vshll.u32 %v2293_v63, 16  ;;  %v2315_v21 = vcombine.low %v275_v46, %v276_v52  ;;  %v2321_v27 = vcombine.low %v263_v48, %v2284_v57  ;;  %v639_v28 = vshrl.u32 %v2281_v56, 16  ;;  %v279_v46 = vld [vmem:[%s2180_s26 + $0x58] sm:$0xf] }
  0x2b   : > { %459 = vrot.lane.b32.xlu1 %v376_v60, %s2114_s29  ;;  %v643_v29 = vshll.u32 %v2295_v0, 16  ;;  %v633_v10 = vor.u32 %v631_v11, %v2306_v6  ;;  %v591_v31 = vshrl.u32 %v2293_v63, 16  ;;  %v595_v32 = vshll.u32 %v2298_v1, 16  ;;  %v268_v60 = vld [vmem:[%s2180_s26 + $0x2c] sm:$0xf] }
  0x2c   : > { %457 = vrot.lane.b32.xlu0 %v368_v61, %s2114_s29  ;;  %3147 = vst [vmem:[#allocation12_spill] sm:$0xff] %v2315_v21  ;;  %v637_v35 = vrot.slane %v635_v9, 1  ;;  %v585_v36 = vor.u32 %v584_v19, %v580_v17  ;;  %v589_v37 = vrot.slane %v587_v20, 1  ;;  %v2336_v39 = vcombine.low %v277_v53, %v2318_v22 }
  0x2d   : > { %v429_v41 = vshll.u32 %v2315_v21, 16  ;;  %v2340_v43 = vrot.slane %v643_v29, 1  ;;  %v2343_v44 = vcombine.low %v265_v58, %v2333_v33  ;;  %v381_v45 = vshll.u32 %v2321_v27, 16 }
  0x2e   : > { %v641_v42 = vor.u32 %v639_v28, %v637_v35  ;;  %v593_v48 = vor.u32 %v591_v31, %v589_v37  ;;  %v2352_v49 = vrot.slane %v595_v32, 1  ;;  %v3110_v50 = vrot.slane %v2190_v4, 1 }
  0x2f   : > { %471 = vrot.lane.b32.xlu1 %v2304_v2, %s2114_s29  ;;  %3148 = vst [vmem:[#allocation13_spill] sm:$0xff] %v2343_v44  ;;  %v638_v52 = vsel %vm356_vm1, %v633_v10, %v637_v35  ;;  %v590_v53 = vsel %vm356_vm1, %v585_v36, %v589_v37  ;;  %v1739_v54 = vcombine.low %v287_v40, %v2197_v7  ;;  %v437_v58 = vshll.u32 %v2336_v39, 16 }
  0x30   : > { %469 = vrot.lane.b32.xlu0 %v2311_v16, %s2114_s29  ;;  %v719_v61 = vrot.slane %v2281_v56, 1  ;;  %v2362_v62 = vrot.slane %v429_v41, 1  ;;  %v433_v11 = vshrl.u32 %v2315_v21, 16  ;;  %v2365_v9 = vcombine.low %v279_v46, %v280_v47 }
  0x31   : > { %v646_v17 = vsel %vm356_vm1, %v641_v42, %v2340_v43  ;;  %v2369_v19 = vrot.slane %v381_v45, 1  ;;  %v385_v20 = vshrl.u32 %v2321_v27, 16  ;;  %v389_v7 = vshll.u32 %v2343_v44, 16 }
  0x32   : > { %3149 = vst [vmem:[#allocation14_spill] sm:$0xff] %v2365_v9  ;;  %v707_v28 = vrot.slane %v2293_v63, 1  ;;  %v3109_v29 = vrot.slane %v2295_v0, 1  ;;  %v2379_v10 = vcombine.low %v267_v59, %v268_v60  ;;  %v706_v31 = vrot.slane %v1739_v54, 1 }
  0x33   : > { %566 = vrot.lane.b32.xlu1 %v2281_v56, %s2112_s27  ;;  %v598_v56 = vsel %vm356_vm1, %v593_v48, %v2352_v49  ;;  %v3111_v32 = vrot.slane %v2298_v1, 1  ;;  %v439_v35 = vrot.slane %v437_v58, 1  ;;  %v441_v36 = vshrl.u32 %v2336_v39, 16 }
  0x34   : > { %554 = vrot.lane.b32.xlu0 %v2293_v63, %s2112_s27  ;;  %v435_v37 = vor.u32 %v433_v11, %v2362_v62  ;;  %v445_v40 = vshll.u32 %v2365_v9, 16  ;;  %v393_v41 = vshrl.u32 %v2343_v44, 16  ;;  %v3113_v42 = vrot.slane %v2315_v21, 1 }
  0x35   : > { %v720_v63 = vsel %vm484_vm0, %v3110_v50, %v719_v61  ;;  %v387_v45 = vor.u32 %v385_v20, %v2369_v19  ;;  %v391_v48 = vrot.slane %v389_v7, 1  ;;  %v3112_v58 = vrot.slane %v2321_v27, 1  ;;  %v283_v7 = vld [vmem:[%s2180_s26 + $0x60] sm:$0xf] }
  0x36   : > { %v2402_v54 = vsel %vm484_vm0, %v500_v24, %v3113_v42  ;;  %v708_v11 = vsel %vm484_vm0, %v706_v31, %v707_v28  ;;  %v443_v20 = vor.u32 %v441_v36, %v439_v35  ;;  %v2419_v24 = vld [vmem:[%s2180_s26 + $0x18] sm:$0xe]  ;;  %v3153_v8 = vrot.slane %v2379_v10, 1 }
  0x37   : > { %691 = vrot.lane.b32.xlu1 %v638_v52, %s2115_s30  ;;  %v722_v52 = vsel %vm484_vm0, %v719_v61, %v3109_v29  ;;  %v2410_v61 = vcombine.low %v2318_v22, %v279_v46  ;;  %v447_v29 = vrot.slane %v445_v40, 1  ;;  %v2416_v50 = vor.u32 %v393_v41, %v391_v48  ;;  %v288_v22 = vld [vmem:[%s2180_s26 + $0x6c] sm:$0xf] }
  0x38   : > { %679 = vrot.lane.b32.xlu0 %v590_v53, %s2115_s30  ;;  %v397_v53 = vshll.u32 %v2379_v10, 16  ;;  %v2426_v31 = vsel %vm484_vm0, %v488_v25, %v3112_v58  ;;  %v2433_v46 = vcombine.low %v2333_v33, %v267_v59  ;;  %v2440_v25 = vcombine.low %v280_v47, %v283_v7  ;;  %v285_v58 = vld [vmem:[%s2180_s26 + $0x68] sm:$0xf] }
  0x39   : > { %v2444_v40 = vcombine.low %v268_v60, %v2210_v12  ;;  %v2447_v33 = vrot.slane %v2343_v44, 1  ;;  %v284_v60 = vld [vmem:[%s2180_s26 + $0x64] sm:$0xf]  ;;  %v2512_v2 = vcombine.low %v285_v58, %v288_v22  ;;  %v3155_v22 = vrot.slane %v2336_v39, 1 }
  0x3a   : > { %v2438_v36 = vrot.slane %v397_v53, 1  ;;  %v659_v47 = vshll.u32 %v2440_v25, 16  ;;  %v3116_v42 = vrot.slane %v2440_v25, 1  ;;  %v3156_v34 = vrot.slane %v2315_v21, 1 }
  0x3b   : > { %693 = vrot.lane.b32.xlu1 %v646_v17, %s2115_s30  ;;  %v710_v17 = vsel %vm484_vm0, %v707_v28, %v3111_v32  ;;  %v2429_v28 = vsel %vm356_vm1, %v387_v45, %v391_v48  ;;  %v2455_v45 = vsel %vm356_vm1, %v443_v20, %v447_v29  ;;  %v607_v48 = vshrl.u32 %v2433_v46, 16 }
  0x3c   : > { %681 = vrot.lane.b32.xlu0 %v598_v56, %s2115_s30  ;;  %v2414_v56 = vsel %vm356_vm1, %v435_v37, %v439_v35  ;;  %v651_v35 = vshll.u32 %v2410_v61, 16  ;;  %v655_v37 = vshrl.u32 %v2410_v61, 16  ;;  %v611_v12 = vshll.u32 %v2444_v40, 16 }
  0x3d   : > { %v2469_v20 = vrot.slane %v659_v47, 1  ;;  %v2532_v16 = vsel %vm484_vm0, %v3156_v34, %v3155_v22  ;;  %v1972_v34 = vld [vmem:[%s3106_s1 + $0x8] sm:$0xff]  }
  0x3e   : > { %v2451_v41 = vrot.slane %v651_v35, 1  ;;  %v2471_v59 = vrot.slane %v611_v12, 1  ;;  %v2481_v35 = vcombine.low %v283_v7, %v284_v60  ;;  %v3151_v12 = vrot.slane %v2433_v46, 1 }
  0x3f   : > { %743 = vrot.lane.b32.xlu1 %v720_v63, %s2116_s4  ;;  %v603_v63 = vshll.u32 %v2433_v46, 16  ;;  %v449_v7 = vshrl.u32 %v2365_v9, 16 }
  0x40   : > { %731 = vrot.lane.b32.xlu0 %v708_v11, %s2116_s4  ;;  %v657_v11 = vor.u32 %v655_v37, %v2451_v41  ;;  %v2477_v37 = vrot.slane %v2365_v9, 1  ;;  %v849_v14 = vrot.slane %v2481_v35, 1 }
  0x41   : > { %v2461_v53 = vrot.slane %v603_v63, 1  ;;  %v3118_v63 = vrot.slane %v2444_v40, 1 }
  0x43   : > { %745 = vrot.lane.b32.xlu1 %v722_v52, %s2116_s4  ;;  %v609_v32 = vor.u32 %v607_v48, %v2461_v53  ;;  %v2485_v52 = vsel %vm356_vm1, %v657_v11, %v2469_v20  ;;  %v2499_v26 = vsel %vm484_vm0, %v3151_v12, %v3118_v63  ;;  %v1967_v48 = vld [vmem:[%s2180_s26 + $0x60] ss:$0 sps:$4 sm:$0x11]   ;;  %v451_v12 = vor.u32 %v449_v7, %v447_v29 }
  0x44   : > { %733 = vrot.lane.b32.xlu0 %v710_v17, %s2116_s4  ;;  %v3150_v17 = vrot.slane %v2410_v61, 1  ;;  %v1971_v11 = vld [vmem:[%s3106_s1] sm:$0xff]   ;;  %v796_v63 = vshrl.u32 %v2481_v35, 16  ;;  %v800_v7 = vshll.u32 %v2512_v2, 16 }
  0x45   : > { %v2508_v30 = vsel %vm356_vm1, %v609_v32, %v2471_v59  ;;  %v3152_v32 = vrot.slane %v2229_v18, 1  ;;  %1850 = vmatprep.subr.bf16.mxu0 %v1971_v11  ;;  %1880 = vmatprep.subr.bf16.mxu1 %v1971_v11  ;;  %v425_v18 = vshrl.u32 %v2188_v3, 16 }
  0x46   : > { %v2492_v47 = vsel %vm484_vm0, %v3150_v17, %v3116_v42  ;;  %v792_v17 = vshll.u32 %v2481_v35, 16  ;;  %v401_v42 = vshrl.u32 %v2379_v10, 16  ;;  %1851 = vmatpush3.bf16.msra.mxu0 %v1971_v11  ;;  %1883 = vmatpush3.bf16.msra.mxu1 %v1971_v11  ;;  %v2552_v3 = vrot.slane %v800_v7, 1 }
  0x47   : > { %776 = vrot.lane.b32.xlu1 %v2315_v21, %s2117_s7  ;;  %v2525_v23 = vsel %vm484_vm0, %v3153_v8, %v3152_v32  ;;  %v2539_v8 = vsel %vm484_vm0, %v2477_v37, %v849_v14  ;;  %v453_v21 = vshll.u32 %v1967_v48, 16  ;;  %v2561_v11 = vsel %vm356_vm1, %v2416_v50, %v2438_v36  ;;  %1852 = vmatprep.subr.bf16.mxu0 %v1972_v34 }
  0x48   : > { %764 = vrot.lane.b32.xlu0 %v2321_v27, %s2117_s7  ;;  %3154 = vst [vmem:[#allocation15_spill] sm:$0xff] %v2525_v23  ;;  %v794_v9 = vrot.slane %v792_v17, 1  ;;  %v403_v29 = vor.u32 %v401_v42, %v2438_v36  ;;  %3157 = vst [vmem:[#allocation16_spill] sm:$0xff] %v2539_v8  ;;  %v377_v32 = vshrl.u32 %v2216_v13, 16  ;;  %v3158_v23 = vrot.slane %v2512_v2, 1  ;;  %1881 = vmatprep.subr.bf16.mxu1 %v1972_v34 }
  0x49   : > { %v508_v8 = vrot.slane %v1967_v48, 1  ;;  %v2577_v50 = vcombine.low %v284_v60, %v285_v58 }
  0x4a   : > { %v2546_v42 = vsel %vm356_vm1, %v451_v12, %v794_v9  ;;  %v2550_v17 = vsel %vm356_vm1, %v403_v29, %v2271_v51  ;;  %v798_v22 = vor.u32 %v796_v63, %v794_v9  ;;  %v2567_v51 = vsel %vm484_vm0, %v849_v14, %v3158_v23  ;;  %v1970_v63 = vld [vmem:[%s2180_s26 + $0x6c] ss:$0 sps:$4 sm:$0x11]   ;;  %1853 = vmatpush3.bf16.msra.mxu0 %v1972_v34 }
  0x4b   : > { %778 = vrot.lane.b32.xlu1 %v2336_v39, %s2117_s7  ;;  %v455_v9 = vrot.slane %v453_v21, 1  ;;  %v3159_v29 = vcombine.low %v2419_v24, %v2284_v57  ;;  %3160 = vst [vmem:[#allocation17_spill] sm:$0xff] %v2577_v50  ;;  %v2584_v14 = vcombine.low %v2221_v15, %v2193_v5  ;;  %v663_v23 = vshrl.u32 %v2440_v25, 16  ;;  %1884 = vmatpush3.bf16.msra.mxu1 %v1972_v34 }
  0x4c   : > { %766 = vrot.lane.b32.xlu0 %v2343_v44, %s2117_s7  ;;  %v2575_v44 = vsel %vm356_vm1, %v798_v22, %v2552_v3  ;;  %v615_v57 = vshrl.u32 %v2444_v40, 16  ;;  %v427_v21 = vor.u32 %v425_v18, %v2278_v55  ;;  %v2591_v58 = vsel %vm484_vm0, %v2477_v37, %v508_v8  ;;  %v2606_v22 = vld [vmem:[%s2180_s26 + $0x70] sm:$0xff]  }
  0x4d   : > { %v847_v7 = vrot.slane %v3159_v29, 1  ;;  %v2580_v36 = vsel %vm356_vm1, %v451_v12, %v455_v9  ;;  %3161 = vst [vmem:[#allocation18_spill] sm:$0xff] %v2584_v14  ;;  %v667_v24 = vshll.u32 %v2577_v50, 16  ;;  %v671_v60 = vshrl.u32 %v2577_v50, 16 }
  0x4e   : > { %v665_v5 = vor.u32 %v663_v23, %v2469_v20  ;;  %v617_v15 = vor.u32 %v615_v57, %v2471_v59  ;;  %v619_v18 = vshll.u32 %v2584_v14, 16  ;;  %v675_v55 = vshll.u32 %v1970_v63, 16  ;;  %v1974_v59 = vld [vmem:[%s3106_s1 + $0x10] ss:$0 sps:$4 sm:$0x33]  }
  0x4f   : > { %832 = vrot.lane.b32.xlu1 %v2414_v56, %s2118_s10  ;;  %v669_v48 = vrot.slane %v667_v24, 1  ;;  %v623_v12 = vshrl.u32 %v2584_v14, 16  ;;  %v727_v8 = vrot.slane %v2577_v50, 1  ;;  %v715_v34 = vrot.slane %v2584_v14, 1  ;;  %1886 = vmatprep.subr.msk.bf16.mxu0 %vm1133_vm2, %v1974_v59 }
  0x50   : > { %820 = vrot.lane.b32.xlu0 %v2429_v28, %s2118_s10  ;;  %v379_v9 = vor.u32 %v377_v32, %v2261_v38  ;;  %v621_v29 = vrot.slane %v619_v18, 1  ;;  %v677_v13 = vrot.slane %v675_v55, 1  ;;  %v729_v20 = vrot.slane %v1970_v63, 1  ;;  %v1975_v32 = vld [vmem:[%s2180_s26 + $0x78] ss:$0 sps:$4 sm:$0x11]   ;;  %1887 = vmatprep.subr.msk.bf16.mxu1 %vm1133_vm2, %v1974_v59 }
  0x51   : > { %v2613_v23 = vsel %vm356_vm1, %v665_v5, %v669_v48  ;;  %v673_v57 = vor.u32 %v671_v60, %v669_v48  ;;  %v3162_v24 = vrot.slane %v2440_v25, 1  ;;  %v3163_v14 = vrot.slane %v2444_v40, 1  ;;  %s1711_s26 = sshll.u32 %s252_s25, 2 }
  0x52   : > { %v2631_v63 = vsel %vm356_vm1, %v617_v15, %v621_v29  ;;  %v625_v60 = vor.u32 %v623_v12, %v621_v29  ;;  %v2634_v5 = vsel %vm484_vm0, %v727_v8, %v729_v20  ;;  %v848_v18 = vsel %vm484_vm0, %v847_v7, %v2447_v33 }
  0x53   : > { %v2618_v50 = vsel %vm484_vm0, %v3162_v24, %v727_v8  ;;  %v2623_v38 = vsel %vm484_vm0, %v3163_v14, %v715_v34  ;;  %834 = vrot.lane.b32.xlu1 %v2455_v45, %s2118_s10  ;;  %v2639_v14 = vsel %vm356_vm1, %v673_v57, %v677_v13  ;;  %v3164_v55 = vrot.slane %v2190_v4, 1 }
  0x54   : > { %822 = vrot.lane.b32.xlu0 %v2561_v11, %s2118_s10  ;;  %v2648_v15 = vsel %vm356_vm1, %v625_v60, %v2306_v6  ;;  %v804_v12 = vshrl.u32 %v2512_v2, 16  ;;  %v808_v8 = vshll.u32 %v2606_v22, 16  ;;  %v1135_v7 = vsel %vm1133_vm2, %v1974_v59, 0 }
  0x55   : > { %v2644_v48 = vsel %vm484_vm0, %v715_v34, %v3164_v55  ;;  %1855 = vmatpush3.bf16.msra.mxu0 %v1135_v7  ;;  %1885 = vmatpush3.bf16.msra.mxu1 %v1135_v7  ;;  %v812_v13 = vshrl.u32 %v2606_v22, 16  ;;  %v816_v4 = vshll.u32 %v1975_v32, 16  ;;  %v853_v34 = vrot.slane %v2606_v22, 1 }
  0x56   : > { %v806_v6 = vor.u32 %v804_v12, %v2552_v3  ;;  %v810_v29 = vrot.slane %v808_v8, 1  ;;  %v2660_v20 = vsel %vm356_vm1, %v427_v21, %v2362_v62  ;;  %v384_v59 = vsel %vm356_vm1, %v379_v9, %v2369_v19 }
  0x57   : > { %869 = vrot.lane.b32.xlu1 %v2532_v16, %s2119_s20  ;;  %v818_v57 = vrot.slane %v816_v4, 1  ;;  %v3165_v24 = vrot.slane %v2512_v2, 1  ;;  %v855_v7 = vrot.slane %v1975_v32, 1  ;;  %v3166_v19 = vrot.slane %v2336_v39, 1 }
  0x58   : > { %857 = vrot.lane.b32.xlu0 %v848_v18, %s2119_s20  ;;  %v2670_v55 = vsel %vm356_vm1, %v806_v6, %v810_v29  ;;  %v814_v18 = vor.u32 %v812_v13, %v810_v29  ;;  %v3167_v9 = vrot.slane %v2379_v10, 1  ;;  %v3178_v29 = vld [vmem:[#allocation9_spill] sm:$0xff] }
  0x59   : > { %v2667_v60 = vsel %vm484_vm0, %v3165_v24, %v853_v34  ;;  %v2679_v62 = vsel %vm484_vm0, %v853_v34, %v855_v7  ;;  %v507_v21 = vsel %vm484_vm0, %v3166_v19, %v2477_v37  ;;  %v3168_v37 = vrot.slane %v2321_v27, 1  ;;  %v3179_v19 = vld [vmem:[#allocation17_spill] sm:$0xff] }
  0x5a   : > { %v2676_v3 = vsel %vm356_vm1, %v814_v18, %v818_v57  ;;  %v495_v32 = vsel %vm484_vm0, %v2447_v33, %v3167_v9 }
  0x5b   : > { %473 = vrot.lane.b32.xlu1 %v2660_v20, %s2114_s29  ;;  %v493_v12 = vsel %vm484_vm0, %v3168_v37, %v2447_v33 }
  0x5c   : > { %461 = vrot.lane.b32.xlu0 %v384_v59, %s2114_s29 }
  0x5f   : > { %871 = vrot.lane.b32.xlu1 %v507_v21, %s2119_s20 }
  0x60   : > { %859 = vrot.lane.b32.xlu0 %v495_v32, %s2119_s20 }
  0x63   : > { %475 = vrot.lane.b32.xlu1 %v2414_v56, %s2114_s29  ;;  %v647_v56 = vshrl.u32 %v2295_v0, 16 }
  0x64   : > { %463 = vrot.lane.b32.xlu0 %v2429_v28, %s2114_s29  ;;  %v599_v28 = vshrl.u32 %v2298_v1, 16 }
  0x66   : > { %v601_v8 = vor.u32 %v599_v28, %v2352_v49  ;;  %v3170_v49 = vrot.slane %v2295_v0, 1 }
  0x67   : > { %526 = vrot.lane.b32.xlu1 %v2402_v54, %s2113_s28 }
  0x68   : > { %514 = vrot.lane.b32.xlu0 %v2426_v31, %s2113_s28  ;;  %v649_v31 = vor.u32 %v647_v56, %v2340_v43  ;;  %v606_v33 = vsel %vm356_vm1, %v601_v8, %v2461_v53  ;;  %v3169_v43 = vrot.slane %v2410_v61, 1  ;;  %v3172_v53 = vrot.slane %v2298_v1, 1 }
  0x6a   : > { %v724_v13 = vsel %vm484_vm0, %v3170_v49, %v3169_v43 }
  0x6b   : > { %528 = vrot.lane.b32.xlu1 %v2532_v16, %s2113_s28  ;;  %v654_v16 = vsel %vm356_vm1, %v649_v31, %v2451_v41  ;;  %v3171_v41 = vrot.slane %v2433_v46, 1 }
  0x6c   : > { %516 = vrot.lane.b32.xlu0 %v493_v12, %s2113_s28  ;;  %v3181_v12 = vld [vmem:[#allocation7_spill] sm:$0xff] }
  0x6d   : > { %v712_v4 = vsel %vm484_vm0, %v3172_v53, %v3171_v41  ;;  %v3183_v41 = vld [vmem:[#allocation5_spill] sm:$0xff] }
  0x6f   : > { %568 = vrot.lane.b32.xlu1 %v2295_v0, %s2112_s27  ;;  %v3174_v0 = vld [vmem:[#allocation6_spill] sm:$0xff] }
  0x70   : > { %556 = vrot.lane.b32.xlu0 %v2298_v1, %s2112_s27 }
  0x73   : > { %570 = vrot.lane.b32.xlu1 %v2410_v61, %s2112_s27  ;;  %v3175_v61 = vld [vmem:[#allocation11_spill] sm:$0xff] }
  0x74   : > { %558 = vrot.lane.b32.xlu0 %v2433_v46, %s2112_s27 }
  0x77   : > { %695 = vrot.lane.b32.xlu1 %v654_v16, %s2115_s30 }
  0x78   : > { %683 = vrot.lane.b32.xlu0 %v606_v33, %s2115_s30 }
  0x7b   : > { %697 = vrot.lane.b32.xlu1 %v2485_v52, %s2115_s30 }
  0x7c   : > { %685 = vrot.lane.b32.xlu0 %v2508_v30, %s2115_s30  ;;  %v3173_v30 = vld [vmem:[#allocation14_spill] sm:$0xff] }
  0x7f   : > { %747 = vrot.lane.b32.xlu1 %v724_v13, %s2116_s4 }
  0x80   : > { %735 = vrot.lane.b32.xlu0 %v712_v4, %s2116_s4 }
  0x83   : > { %749 = vrot.lane.b32.xlu1 %v2492_v47, %s2116_s4  ;;  %v3177_v47 = vld [vmem:[#allocation15_spill] sm:$0xff] }
  0x84   : > { %737 = vrot.lane.b32.xlu0 %v2499_v26, %s2116_s4 }
  0x87   : > { %780 = vrot.lane.b32.xlu1 %v3173_v30, %s2117_s7 }
  0x88   : > { %768 = vrot.lane.b32.xlu0 %v2379_v10, %s2117_s7 }
  0x8b   : > { %782 = vrot.lane.b32.xlu1 %v2481_v35, %s2117_s7  ;;  %v3176_v35 = vld [vmem:[#allocation16_spill] sm:$0xff] }
  0x8c   : > { %770 = vrot.lane.b32.xlu0 %v3174_v0, %s2117_s7 }
  0x8f   : > { %836 = vrot.lane.b32.xlu1 %v2546_v42, %s2118_s10  ;;  %v565_v1 = vpop.permute.xlu1 %564 }
  0x90   : > { %824 = vrot.lane.b32.xlu0 %v2550_v17, %s2118_s10  ;;  %v553_v26 = vpop.permute.xlu0 %552 }
  0x93   : > { %838 = vrot.lane.b32.xlu1 %v2575_v44, %s2118_s10 }
  0x94   : > { %826 = vrot.lane.b32.xlu0 %v3175_v61, %s2118_s10 }
  0x95   : > { %v523_v46 = vpop.permute.xlu1 %522 }
  0x96   : > { %v511_v52 = vpop.permute.xlu0 %510 }
  0x97   : > { %873 = vrot.lane.b32.xlu1 %v3176_v35, %s2119_s20 }
  0x98   : > { %861 = vrot.lane.b32.xlu0 %v3177_v47, %s2119_s20 }
  0x99   : > { %v2764_v42 = vpop.permute.xlu1 %524 }
  0x9a   : > { %v2766_v34 = vpop.permute.xlu0 %512 }
  0x9b   : > { %477 = vrot.lane.b32.xlu1 %v2455_v45, %s2114_s29 }
  0x9c   : > { %465 = vrot.lane.b32.xlu0 %v2561_v11, %s2114_s29 }
  0x9d   : > { %v2772_v44 = vpop.permute.xlu1 %459 }
  0x9e   : > { %v458_v6 = vpop.permute.xlu0 %457  ;;  %v885_v53 = vsel %vm881_vm3, %v3183_v41, %v2772_v44 }
  0x9f   : > { %875 = vrot.lane.b32.xlu1 %v2567_v51, %s2119_s20  ;;  %v883_v56 = vsel %vm881_vm3, %v3181_v12, %v458_v6 }
  0xa0   : > { %863 = vrot.lane.b32.xlu0 %v3178_v29, %s2119_s20 }
  0xa1   : > { %v2778_v59 = vpop.permute.xlu1 %471 }
  0xa2   : > { %v470_v57 = vpop.permute.xlu0 %469 }
  0xa3   : > { %479 = vrot.lane.b32.xlu1 %v2580_v36, %s2114_s29 }
  0xa4   : > { %467 = vrot.lane.b32.xlu0 %v2550_v17, %s2114_s29 }
  0xa5   : > { %v2784_v45 = vpop.permute.xlu1 %566 }
  0xa6   : > { %v2786_v11 = vpop.permute.xlu0 %554 }
  0xa7   : > { %530 = vrot.lane.b32.xlu1 %v507_v21, %s2113_s28 }
  0xa8   : > { %518 = vrot.lane.b32.xlu0 %v495_v32, %s2113_s28 }
  0xa9   : > { %v692_v51 = vpop.permute.xlu1 %691 }
  0xaa   : > { %v680_v24 = vpop.permute.xlu0 %679 }
  0xab   : > { %532 = vrot.lane.b32.xlu1 %v2591_v58, %s2113_s28  ;;  %v3180_v58 = vld [vmem:[#allocation18_spill] sm:$0xff] }
  0xac   : > { %520 = vrot.lane.b32.xlu0 %v3177_v47, %s2113_s28  ;;  %v910_v47 = vsel %vm906_vm4, %v885_v53, %v2766_v34  ;;  %s3017_s28 = scalar_lea.vmem %s3108_s3, %s1711_s26 }
  0xad   : > { %v2794_v36 = vpop.permute.xlu1 %693  ;;  %v935_v6 = vsel %vm931_vm5, %v910_v47, %v2786_v11 }
  0xae   : > { %v2796_v18 = vpop.permute.xlu0 %681 }
  0xaf   : > { %572 = vrot.lane.b32.xlu1 %v2440_v25, %s2112_s27 }
  0xb0   : > { %560 = vrot.lane.b32.xlu0 %v2444_v40, %s2112_s27 }
  0xb1   : > { %v744_v17 = vpop.permute.xlu1 %743 }
  0xb2   : > { %v732_v7 = vpop.permute.xlu0 %731 }
  0xb3   : > { %574 = vrot.lane.b32.xlu1 %v3179_v19, %s2112_s27 }
  0xb4   : > { %562 = vrot.lane.b32.xlu0 %v3180_v58, %s2112_s27 }
  0xb5   : > { %v746_v21 = vpop.permute.xlu1 %745 }
  0xb6   : > { %v734_v9 = vpop.permute.xlu0 %733 }
  0xb7   : > { %699 = vrot.lane.b32.xlu1 %v2613_v23, %s2115_s30  ;;  %v895_v23 = vsel %vm881_vm3, %v3174_v0, %v470_v57 }
  0xb8   : > { %687 = vrot.lane.b32.xlu0 %v2631_v63, %s2115_s30  ;;  %v920_v28 = vsel %vm906_vm4, %v895_v23, %v523_v46 }
  0xb9   : > { %v777_v25 = vpop.permute.xlu1 %776 }
  0xba   : > { %v765_v32 = vpop.permute.xlu0 %764 }
  0xbb   : > { %701 = vrot.lane.b32.xlu1 %v2639_v14, %s2115_s30 }
  0xbc   : > { %689 = vrot.lane.b32.xlu0 %v2648_v15, %s2115_s30  ;;  %v908_v15 = vsel %vm906_vm4, %v883_v56, %v511_v52  ;;  %v3184_v52 = vld [vmem:[#allocation2_spill] sm:$0xff] }
  0xbd   : > { %v779_v40 = vpop.permute.xlu1 %778  ;;  %v933_v31 = vsel %vm931_vm5, %v908_v15, %v553_v26 }
  0xbe   : > { %v767_v37 = vpop.permute.xlu0 %766  ;;  %v958_v33 = vsel %vm956_vm6, %v933_v31, %v680_v24 }
  0xbf   : > { %751 = vrot.lane.b32.xlu1 %v2618_v50, %s2116_s4  ;;  %v945_v50 = vsel %vm931_vm5, %v920_v28, %v565_v1 }
  0xc0   : > { %739 = vrot.lane.b32.xlu0 %v2623_v38, %s2116_s4  ;;  %v970_v16 = vsel %vm956_vm6, %v945_v50, %v692_v51 }
  0xc1   : > { %v833_v63 = vpop.permute.xlu1 %832  ;;  %v995_v43 = vsel %vm981_vm7, %v970_v16, %v744_v17 }
  0xc2   : > { %v821_v14 = vpop.permute.xlu0 %820  ;;  %v1020_v49 = vsel %vm1006_vm8, %v995_v43, %v777_v25  ;;  %v3187_v43 = vld [vmem:[#allocation4_spill] sm:$0xff] }
  0xc3   : > { %753 = vrot.lane.b32.xlu1 %v2634_v5, %s2116_s4  ;;  %v983_v5 = vsel %vm981_vm7, %v958_v33, %v732_v7  ;;  %v1045_v0 = vsel %vm1031_vm9, %v1020_v49, %v833_v63 }
  0xc4   : > { %741 = vrot.lane.b32.xlu0 %v2644_v48, %s2116_s4  ;;  %v3182_v48 = vld [vmem:[#allocation3_spill] sm:$0xff]  ;;  %v1008_v13 = vsel %vm1006_vm8, %v983_v5, %v765_v32 }
  0xc5   : > { %v835_v38 = vpop.permute.xlu1 %834  ;;  %v897_v4 = vsel %vm881_vm3, %v3182_v48, %v2778_v59 }
  0xc6   : > { %v823_v8 = vpop.permute.xlu0 %822  ;;  %v922_v35 = vsel %vm906_vm4, %v897_v4, %v2764_v42  ;;  %v960_v42 = vsel %vm956_vm6, %v935_v6, %v2796_v18 }
  0xc7   : > { %784 = vrot.lane.b32.xlu1 %v2512_v2, %s2117_s7  ;;  %v1033_v2 = vsel %vm1031_vm9, %v1008_v13, %v821_v14  ;;  %v947_v44 = vsel %vm931_vm5, %v922_v35, %v2784_v45  ;;  %v985_v57 = vsel %vm981_vm7, %v960_v42, %v734_v9  ;;  %v3185_v45 = vld [vmem:[#allocation10_spill] sm:$0xff] }
  0xc8   : > { %772 = vrot.lane.b32.xlu0 %v3182_v48, %s2117_s7  ;;  %v972_v59 = vsel %vm956_vm6, %v947_v44, %v2794_v36  ;;  %v1010_v51 = vsel %vm1006_vm8, %v985_v57, %v767_v37 }
  0xc9   : > { %v870_v1 = vpop.permute.xlu1 %869  ;;  %v997_v34 = vsel %vm981_vm7, %v972_v59, %v746_v21  ;;  %v1035_v36 = vsel %vm1031_vm9, %v1010_v51, %v823_v8  ;;  %v3186_v21 = vld [vmem:[#allocation8_spill] sm:$0xff] }
  0xca   : > { %v858_v26 = vpop.permute.xlu0 %857  ;;  %v1070_v46 = vsel %vm1056_vm10, %v1045_v0, %v870_v1  ;;  %v1022_v11 = vsel %vm1006_vm8, %v997_v34, %v779_v40 }
  0xcb   : > { %v1058_v61 = vsel %vm1056_vm10, %v1033_v2, %v858_v26  ;;  %786 = vrot.lane.b32.xlu1 %v2606_v22, %s2117_s7  ;;  %1868 = vmatprep.mubr.msk.bf16.mxu1 %vm1108_vm11, %v1070_v46  ;;  %v1047_v24 = vsel %vm1031_vm9, %v1022_v11, %v835_v38 }
  0xcc   : > { %774 = vrot.lane.b32.xlu0 %v3184_v52, %s2117_s7  ;;  %1856 = vmatprep.mubr.msk.bf16.mxu0 %vm1108_vm11, %v1058_v61 }
  0xcd   : > { %v474_v22 = vpop.permute.xlu1 %473 }
  0xce   : > { %v462_v29 = vpop.permute.xlu0 %461  ;;  %v899_v33 = vsel %vm881_vm3, %v3184_v52, %v474_v22 }
  0xcf   : > { %840 = vrot.lane.b32.xlu1 %v2670_v55, %s2118_s10  ;;  %v887_v5 = vsel %vm881_vm3, %v3187_v43, %v462_v29  ;;  %v3188_v29 = vld [vmem:[#allocation12_spill] sm:$0xff] }
  0xd0   : > { %828 = vrot.lane.b32.xlu0 %v3185_v45, %s2118_s10 }
  0xd1   : > { %v872_v17 = vpop.permute.xlu1 %871 }
  0xd2   : > { %v860_v18 = vpop.permute.xlu0 %859  ;;  %v1072_v7 = vsel %vm1056_vm10, %v1047_v24, %v872_v17 }
  0xd3   : > { %v1060_v19 = vsel %vm1056_vm10, %v1035_v36, %v860_v18  ;;  %842 = vrot.lane.b32.xlu1 %v2676_v3, %s2118_s10  ;;  %1869 = vmatmul.mubr.msk.bf16.vlgmr.msra.gmra.mrb[0].mxu1 %vm1108_vm11, %v1072_v7 }
  0xd4   : > { %830 = vrot.lane.b32.xlu0 %v2660_v20, %s2118_s10  ;;  %1857 = vmatmul.mubr.msk.bf16.vlgmr.msra.gmra.mrb[0].mxu0 %vm1108_vm11, %v1060_v19 }
  0xd5   : > { %v476_v55 = vpop.permute.xlu1 %475 }
  0xd6   : > { %v464_v58 = vpop.permute.xlu0 %463  ;;  %v901_v59 = vsel %vm881_vm3, %v3188_v29, %v476_v55 }
  0xd7   : > { %877 = vrot.lane.b32.xlu1 %v2667_v60, %s2119_s20  ;;  %v889_v42 = vsel %vm881_vm3, %v2321_v27, %v464_v58 }
  0xd8   : > { %865 = vrot.lane.b32.xlu0 %v3186_v21, %s2119_s20 }
  0xd9   : > { %v527_v9 = vpop.permute.xlu1 %526 }
  0xda   : > { %v515_v25 = vpop.permute.xlu0 %514  ;;  %v924_v48 = vsel %vm906_vm4, %v899_v33, %v527_v9 }
  0xdb   : > { %879 = vrot.lane.b32.xlu1 %v2679_v62, %s2119_s20  ;;  %v912_v49 = vsel %vm906_vm4, %v887_v5, %v515_v25 }
  0xdc   : > { %867 = vrot.lane.b32.xlu0 %v2402_v54, %s2119_s20 }
  0xdd   : > { %v529_v20 = vpop.permute.xlu1 %528 }
  0xde   : > { %v517_v3 = vpop.permute.xlu0 %516  ;;  %v926_v34 = vsel %vm906_vm4, %v901_v59, %v529_v20 }
  0xdf   : > { %v914_v57 = vsel %vm906_vm4, %v889_v42, %v517_v3 }
  0xe1   : > { %v569_v32 = vpop.permute.xlu1 %568 }
  0xe2   : > { %v557_v40 = vpop.permute.xlu0 %556  ;;  %v949_v13 = vsel %vm931_vm5, %v924_v48, %v569_v32 }
  0xe3   : > { %v937_v41 = vsel %vm931_vm5, %v912_v49, %v557_v40 }
  0xe5   : > { %v571_v37 = vpop.permute.xlu1 %570 }
  0xe6   : > { %v559_v12 = vpop.permute.xlu0 %558  ;;  %v951_v45 = vsel %vm931_vm5, %v926_v34, %v571_v37 }
  0xe7   : > { %v939_v11 = vsel %vm931_vm5, %v914_v57, %v559_v12 }
  0xe9   : > { %v696_v56 = vpop.permute.xlu1 %695 }
  0xea   : > { %v684_v23 = vpop.permute.xlu0 %683  ;;  %v974_v0 = vsel %vm956_vm6, %v949_v13, %v696_v56 }
  0xeb   : > { %v962_v2 = vsel %vm956_vm6, %v937_v41, %v684_v23  ;;  %v3189_v41 = vld [vmem:[#allocation13_spill] sm:$0xff] }
  0xed   : > { %v698_v60 = vpop.permute.xlu1 %697 }
  0xee   : > { %v686_v63 = vpop.permute.xlu0 %685  ;;  %v976_v36 = vsel %vm956_vm6, %v951_v45, %v698_v60 }
  0xef   : > { %v964_v17 = vsel %vm956_vm6, %v939_v11, %v686_v63 }
  0xf1   : > { %v748_v14 = vpop.permute.xlu1 %747 }
  0xf2   : > { %v736_v15 = vpop.permute.xlu0 %735  ;;  %v999_v1 = vsel %vm981_vm7, %v974_v0, %v748_v14 }
  0xf3   : > { %v987_v26 = vsel %vm981_vm7, %v962_v2, %v736_v15 }
  0xf5   : > { %v750_v28 = vpop.permute.xlu1 %749 }
  0xf6   : > { %v738_v50 = vpop.permute.xlu0 %737  ;;  %v1001_v27 = vsel %vm981_vm7, %v976_v36, %v750_v28 }
  0xf7   : > { %v989_v18 = vsel %vm981_vm7, %v964_v17, %v738_v50 }
  0xf9   : > { %v781_v31 = vpop.permute.xlu1 %780 }
  0xfa   : > { %v769_v38 = vpop.permute.xlu0 %768  ;;  %v1024_v61 = vsel %vm1006_vm8, %v999_v1, %v781_v31 }
  0xfb   : > { %v1012_v46 = vsel %vm1006_vm8, %v987_v26, %v769_v38 }
  0xfd   : > { %v783_v62 = vpop.permute.xlu1 %782 }
  0xfe   : > { %v771_v8 = vpop.permute.xlu0 %770  ;;  %v1026_v7 = vsel %vm1006_vm8, %v1001_v27, %v783_v62 }
  0xff   : > { %v1014_v19 = vsel %vm1006_vm8, %v989_v18, %v771_v8 }
 0x101   : > { %v837_v16 = vpop.permute.xlu1 %836 }
 0x102   : > { %v825_v54 = vpop.permute.xlu0 %824  ;;  %v1049_v52 = vsel %vm1031_vm9, %v1024_v61, %v837_v16 }
 0x103   : > { %v1037_v35 = vsel %vm1031_vm9, %v1012_v46, %v825_v54 }
 0x105   : > { %v839_v53 = vpop.permute.xlu1 %838 }
 0x106   : > { %v827_v4 = vpop.permute.xlu0 %826  ;;  %v1051_v55 = vsel %vm1031_vm9, %v1026_v7, %v839_v53 }
 0x107   : > { %v1039_v58 = vsel %vm1031_vm9, %v1014_v19, %v827_v4 }
 0x109   : > { %v874_v47 = vpop.permute.xlu1 %873 }
 0x10a   : > { %v862_v44 = vpop.permute.xlu0 %861  ;;  %v1074_v6 = vsel %vm1056_vm10, %v1049_v52, %v874_v47 }
 0x10b   : > { %v1062_v22 = vsel %vm1056_vm10, %v1037_v35, %v862_v44  ;;  %1872 = vmatprep.mubr.msk.bf16.mxu1 %vm1108_vm11, %v1074_v6 }
 0x10c   : > { %1860 = vmatprep.mubr.msk.bf16.mxu0 %vm1108_vm11, %v1062_v22 }
 0x10d   : > { %v478_v51 = vpop.permute.xlu1 %477 }
 0x10e   : > { %v466_v24 = vpop.permute.xlu0 %465  ;;  %v903_v13 = vsel %vm881_vm3, %v2336_v39, %v478_v51 }
 0x10f   : > { %v891_v53 = vsel %vm881_vm3, %v3189_v41, %v466_v24 }
 0x111   : > { %v876_v21 = vpop.permute.xlu1 %875 }
 0x112   : > { %v864_v9 = vpop.permute.xlu0 %863  ;;  %v1076_v25 = vsel %vm1056_vm10, %v1051_v55, %v876_v21 }
 0x113   : > { %v1064_v20 = vsel %vm1056_vm10, %v1039_v58, %v864_v9  ;;  %1873 = vmatmul.mubr.msk.bf16.gmra.mrb[4].mxu1 %vm1108_vm11, %v1076_v25 }
 0x114   : > { %1861 = vmatmul.mubr.msk.bf16.gmra.mrb[4].mxu0 %vm1108_vm11, %v1064_v20  ;;  %v2977_v20 = vld [vmem:[%s3107_s2] ss:$0 sm:$0xff] }
 0x115   : > { %v480_v3 = vpop.permute.xlu1 %479 }
 0x116   : > { %v468_v32 = vpop.permute.xlu0 %467  ;;  %v905_v39 = vsel %vm881_vm3, %v3173_v30, %v480_v3 }
 0x117   : > { %v893_v35 = vsel %vm881_vm3, %v2379_v10, %v468_v32 }
 0x119   : > { %v531_v40 = vpop.permute.xlu1 %530 }
 0x11a   : > { %v519_v37 = vpop.permute.xlu0 %518  ;;  %v928_v4 = vsel %vm906_vm4, %v903_v13, %v531_v40 }
 0x11b   : > { %v916_v0 = vsel %vm906_vm4, %v891_v53, %v519_v37 }
 0x11d   : > { %v533_v12 = vpop.permute.xlu1 %532 }
 0x11e   : > { %v521_v56 = vpop.permute.xlu0 %520  ;;  %v930_v6 = vsel %vm906_vm4, %v905_v39, %v533_v12 }
 0x11f   : > { %v918_v22 = vsel %vm906_vm4, %v893_v35, %v521_v56 }
 0x121   : > { %v573_v23 = vpop.permute.xlu1 %572 }
 0x122   : > { %v561_v60 = vpop.permute.xlu0 %560  ;;  %v953_v2 = vsel %vm931_vm5, %v928_v4, %v573_v23 }
 0x123   : > { %v941_v1 = vsel %vm931_vm5, %v916_v0, %v561_v60 }
 0x125   : > { %v575_v63 = vpop.permute.xlu1 %574 }
 0x126   : > { %v563_v14 = vpop.permute.xlu0 %562  ;;  %v955_v42 = vsel %vm931_vm5, %v930_v6, %v575_v63 }
 0x127   : > { %v943_v34 = vsel %vm931_vm5, %v918_v22, %v563_v14 }
 0x129   : > { %v700_v15 = vpop.permute.xlu1 %699 }
 0x12a   : > { %v688_v28 = vpop.permute.xlu0 %687  ;;  %v978_v46 = vsel %vm956_vm6, %v953_v2, %v700_v15 }
 0x12b   : > { %v966_v52 = vsel %vm956_vm6, %v941_v1, %v688_v28 }
 0x12d   : > { %v702_v50 = vpop.permute.xlu1 %701 }
 0x12e   : > { %v690_v31 = vpop.permute.xlu0 %689  ;;  %v980_v11 = vsel %vm956_vm6, %v955_v42, %v702_v50 }
 0x12f   : > { %v968_v51 = vsel %vm956_vm6, %v943_v34, %v690_v31 }
 0x131   : > { %v752_v38 = vpop.permute.xlu1 %751 }
 0x132   : > { %v740_v62 = vpop.permute.xlu0 %739  ;;  %v1003_v47 = vsel %vm981_vm7, %v978_v46, %v752_v38 }
 0x133   : > { %v991_v44 = vsel %vm981_vm7, %v966_v52, %v740_v62 }
 0x135   : > { %v754_v8 = vpop.permute.xlu1 %753 }
 0x136   : > { %v742_v16 = vpop.permute.xlu0 %741  ;;  %v1005_v17 = vsel %vm981_vm7, %v980_v11, %v754_v8 }
 0x137   : > { %v993_v27 = vsel %vm981_vm7, %v968_v51, %v742_v16 }
 0x139   : > { %v785_v54 = vpop.permute.xlu1 %784 }
 0x13a   : > { %v773_v33 = vpop.permute.xlu0 %772  ;;  %v1028_v29 = vsel %vm1006_vm8, %v1003_v47, %v785_v54 }
 0x13b   : > { %v1016_v59 = vsel %vm1006_vm8, %v991_v44, %v773_v33 }
 0x13d   : > { %v787_v43 = vpop.permute.xlu1 %786 }
 0x13e   : > { %v775_v5 = vpop.permute.xlu0 %774  ;;  %v1030_v18 = vsel %vm1006_vm8, %v1005_v17, %v787_v43 }
 0x13f   : > { %v1018_v7 = vsel %vm1006_vm8, %v993_v27, %v775_v5 }
 0x141   : > { %v841_v48 = vpop.permute.xlu1 %840 }
 0x142   : > { %v829_v49 = vpop.permute.xlu0 %828  ;;  %v1053_v30 = vsel %vm1031_vm9, %v1028_v29, %v841_v48 }
 0x143   : > { %v1041_v10 = vsel %vm1031_vm9, %v1016_v59, %v829_v49 }
 0x145   : > { %v843_v26 = vpop.permute.xlu1 %842 }
 0x146   : > { %v831_v61 = vpop.permute.xlu0 %830  ;;  %v1055_v19 = vsel %vm1031_vm9, %v1030_v18, %v843_v26 }
 0x147   : > { %v1043_v55 = vsel %vm1031_vm9, %v1018_v7, %v831_v61 }
 0x149   : > { %v878_v57 = vpop.permute.xlu1 %877 }
 0x14a   : > { %v866_v45 = vpop.permute.xlu0 %865  ;;  %v1078_v24 = vsel %vm1056_vm10, %v1053_v30, %v878_v57 }
 0x14b   : > { %v1066_v36 = vsel %vm1056_vm10, %v1041_v10, %v866_v45  ;;  %1876 = vmatprep.mubr.msk.bf16.mxu1 %vm1108_vm11, %v1078_v24 }
 0x14c   : > { %1864 = vmatprep.mubr.msk.bf16.mxu0 %vm1108_vm11, %v1066_v36 }
 0x14d   : > { %v880_v58 = vpop.permute.xlu1 %879 }
 0x14e   : > { %v868_v21 = vpop.permute.xlu0 %867  ;;  %v1080_v9 = vsel %vm1056_vm10, %v1055_v19, %v880_v58 }
 0x14f   : > { %v1068_v25 = vsel %vm1056_vm10, %v1043_v55, %v868_v21  ;;  %1877 = vmatmul.mubr.msk.bf16.gmra.mrb[8].mxu1 %vm1108_vm11, %v1080_v9 }
 0x150   : > { %1865 = vmatmul.mubr.msk.bf16.gmra.mrb[8].mxu0 %vm1108_vm11, %v1068_v25 }
 0x1a6   : > { %v1870_v32 = vpop.f32.mrb[0].mxu1 }
 0x1a7   : > { %v1858_v3 = vpop.f32.mrb[0].mxu0  ;;  %v2983_v37 = vadd.f32 %v1870_v32, %v2977_v20  ;;  %v1219_v56 = vpop.f32.mrb[1].mxu1 }
 0x1a8   : > { %v2980_v40 = vadd.f32 %v1858_v3, %v2977_v20  ;;  %v1171_v12 = vpop.f32.mrb[1].mxu0  ;;  %v2989_v60 = vadd.f32 %v2977_v20, %v1219_v56  ;;  %v1871_v14 = vpop.f32.mrb[2].mxu1 }
 0x1a9   : > { %v2986_v23 = vadd.f32 %v2977_v20, %v1171_v12  ;;  %v1859_v63 = vpop.f32.mrb[2].mxu0  ;;  %v1775_v28 = vmul.f32 -1.442695, %v2983_v37  ;;  %v2997_v31 = vadd.f32 %v1871_v14, %v2977_v20  ;;  %v1222_v62 = vpop.f32.mrb[3].mxu1 }
 0x1aa   : > { %v1763_v15 = vmul.f32 -1.442695, %v2980_v40  ;;  %v2994_v50 = vadd.f32 %v1859_v63, %v2977_v20  ;;  %v1174_v38 = vpop.f32.mrb[3].mxu0  ;;  %v1773_v16 = vmul.f32 -1.442695, %v2989_v60  ;;  %v3005_v33 = vadd.f32 %v2977_v20, %v1222_v62 }
 0x1ab   : > { %v1761_v8 = vmul.f32 -1.442695, %v2986_v23  ;;  %v3002_v54 = vadd.f32 %v2977_v20, %v1174_v38  ;;  %v1776_v5 = vmul.f32 -1.442695, %v2997_v31 }
 0x1ac   : > { %1976 = vpow2.f32 %v1763_v15  ;;  %v1764_v43 = vmul.f32 -1.442695, %v2994_v50  ;;  %v1774_v49 = vmul.f32 -1.442695, %v3005_v33 }
 0x1ad   : > { %1978 = vpow2.f32 %v1775_v28  ;;  %v1762_v48 = vmul.f32 -1.442695, %v3002_v54 }
 0x1ae   : > { %1980 = vpow2.f32 %v1761_v8 }
 0x1af   : > { %1982 = vpow2.f32 %v1773_v16 }
 0x1b0   : > { %1984 = vpow2.f32 %v1764_v43 }
 0x1b1   : > { %1986 = vpow2.f32 %v1776_v5 }
 0x1b2   : > { %1988 = vpow2.f32 %v1762_v48 }
 0x1b3   : > { %1990 = vpow2.f32 %v1774_v49 }
 0x1b6   : > { %v1977_v13 = vpop.eup %1976 }
 0x1b7   : > { %v1979_v41 = vpop.eup %1978  ;;  %v1340_v53 = vadd.f32 1.0, %v1977_v13 }
 0x1b8   : > { %v1981_v4 = vpop.eup %1980  ;;  %v1352_v0 = vadd.f32 1.0, %v1979_v41 }
 0x1b9   : > { %v1983_v2 = vpop.eup %1982  ;;  %1992 = vrcp.f32 %v1340_v53  ;;  %v1338_v1 = vadd.f32 1.0, %v1981_v4 }
 0x1ba   : > { %v1985_v26 = vpop.eup %1984  ;;  %1994 = vrcp.f32 %v1352_v0  ;;  %v1350_v61 = vadd.f32 1.0, %v1983_v2 }
 0x1bb   : > { %v1987_v46 = vpop.eup %1986  ;;  %1996 = vrcp.f32 %v1338_v1  ;;  %v1341_v52 = vadd.f32 1.0, %v1985_v26 }
 0x1bc   : > { %v1989_v39 = vpop.eup %1988  ;;  %1998 = vrcp.f32 %v1350_v61  ;;  %v1353_v35 = vadd.f32 1.0, %v1987_v46 }
 0x1bd   : > { %v1991_v47 = vpop.eup %1990  ;;  %2000 = vrcp.f32 %v1341_v52  ;;  %v1339_v44 = vadd.f32 1.0, %v1989_v39 }
 0x1be   : > { %2002 = vrcp.f32 %v1353_v35  ;;  %v1351_v6 = vadd.f32 1.0, %v1991_v47 }
 0x1bf   : > { %2004 = vrcp.f32 %v1339_v44 }
 0x1c0   : > { %2006 = vrcp.f32 %v1351_v6 }
 0x1c3   : > { %v1993_v22 = vpop.eup %1992 }
 0x1c4   : > { %v1995_v29 = vpop.eup %1994  ;;  %v1412_v59 = vmul.f32 %v1993_v22, %v2980_v40 }
 0x1c5   : > { %v1997_v42 = vpop.eup %1996  ;;  %v1424_v34 = vmul.f32 %v1995_v29, %v2983_v37 }
 0x1c6   : > { %v1999_v30 = vpop.eup %1998  ;;  %v1813_v10 = vpack.c.bf16 %v1412_v59, %v1412_v59  ;;  %v1410_v57 = vmul.f32 %v1997_v42, %v2986_v23 }
 0x1c7   : > { %v2001_v45 = vpop.eup %2000  ;;  %v1825_v11 = vpack.c.bf16 %v1424_v34, %v1424_v34  ;;  %v1422_v51 = vmul.f32 %v1999_v30, %v2989_v60 }
 0x1c8   : > { %v2003_v24 = vpop.eup %2002  ;;  %1541 = vst.msk [vmem:[%s3017_s28 + $0x8] sm:$0xf] %vm1538_vm12, %v1813_v10  ;;  %v1811_v36 = vpack.c.bf16 %v1410_v57, %v1410_v57  ;;  %v1413_v17 = vmul.f32 %v2001_v45, %v2994_v50 }
 0x1c9   : > { %v2005_v27 = vpop.eup %2004  ;;  %1553 = vst.msk [vmem:[%s3017_s28 + $0x38] sm:$0xf] %vm1538_vm12, %v1825_v11  ;;  %v1823_v18 = vpack.c.bf16 %v1422_v51, %v1422_v51  ;;  %v1425_v7 = vmul.f32 %v2003_v24, %v2997_v31 }
 0x1ca   : > { %v2007_v19 = vpop.eup %2006  ;;  %1539 = vst.msk [vmem:[%s3017_s28] sm:$0xf] %vm1538_vm12, %v1811_v36  ;;  %v1814_v55 = vpack.c.bf16 %v1413_v17, %v1413_v17  ;;  %v1411_v58 = vmul.f32 %v2005_v27, %v3002_v54 }
 0x1cb   : > { %1551 = vst.msk [vmem:[%s3017_s28 + $0x30] sm:$0xf] %vm1538_vm12, %v1823_v18  ;;  %v1826_v21 = vpack.c.bf16 %v1425_v7, %v1425_v7  ;;  %v1423_v9 = vmul.f32 %v2007_v19, %v3005_v33 }
 0x1cc   : > { %1542 = vst.msk [vmem:[%s3017_s28 + $0xc] sm:$0xf] %vm1538_vm12, %v1814_v55  ;;  %v1812_v25 = vpack.c.bf16 %v1411_v58, %v1411_v58 }
 0x1cd   : > { %1554 = vst.msk [vmem:[%s3017_s28 + $0x3c] sm:$0xf] %vm1538_vm12, %v1826_v21  ;;  %v1824_v3 = vpack.c.bf16 %v1423_v9, %v1423_v9 }
 0x1ce   : > { %1540 = vst.msk [vmem:[%s3017_s28 + $0x4] sm:$0xf] %vm1538_vm12, %v1812_v25 }
 0x1cf   : > { %1552 = vst.msk [vmem:[%s3017_s28 + $0x34] sm:$0xf] %vm1538_vm12, %v1824_v3 }
 0x1e6   : > { %v1874_v40 = vpop.f32.mrb[4].mxu1 }
 0x1e7   : > { %v1862_v32 = vpop.f32.mrb[4].mxu0  ;;  %v1244_v12 = vadd.f32 %v1874_v40, %v2977_v20  ;;  %v1235_v23 = vpop.f32.mrb[5].mxu1 }
 0x1e8   : > { %v1196_v37 = vadd.f32 %v1862_v32, %v2977_v20  ;;  %v1187_v56 = vpop.f32.mrb[5].mxu0  ;;  %v1236_v63 = vadd.f32 %v2977_v20, %v1235_v23  ;;  %v1875_v15 = vpop.f32.mrb[6].mxu1 }
 0x1e9   : > { %v1188_v60 = vadd.f32 %v2977_v20, %v1187_v56  ;;  %v1863_v14 = vpop.f32.mrb[6].mxu0  ;;  %v1779_v50 = vmul.f32 -1.442695, %v1244_v12  ;;  %v1247_v38 = vadd.f32 %v1875_v15, %v2977_v20  ;;  %v1238_v8 = vpop.f32.mrb[7].mxu1 }
 0x1ea   : > { %v1767_v28 = vmul.f32 -1.442695, %v1196_v37  ;;  %v1199_v31 = vadd.f32 %v1863_v14, %v2977_v20  ;;  %v1190_v62 = vpop.f32.mrb[7].mxu0  ;;  %v1777_v54 = vmul.f32 -1.442695, %v1236_v63  ;;  %v1239_v43 = vadd.f32 %v2977_v20, %v1238_v8 }
 0x1eb   : > { %v1765_v16 = vmul.f32 -1.442695, %v1188_v60  ;;  %v1191_v33 = vadd.f32 %v2977_v20, %v1190_v62  ;;  %v1780_v48 = vmul.f32 -1.442695, %v1247_v38 }
 0x1ec   : > { %2008 = vpow2.f32 %v1767_v28  ;;  %v1768_v5 = vmul.f32 -1.442695, %v1199_v31  ;;  %v1778_v13 = vmul.f32 -1.442695, %v1239_v43 }
 0x1ed   : > { %2010 = vpow2.f32 %v1779_v50  ;;  %v1766_v49 = vmul.f32 -1.442695, %v1191_v33 }
 0x1ee   : > { %2012 = vpow2.f32 %v1765_v16 }
 0x1ef   : > { %2014 = vpow2.f32 %v1777_v54 }
 0x1f0   : > { %2016 = vpow2.f32 %v1768_v5 }
 0x1f1   : > { %2018 = vpow2.f32 %v1780_v48 }
 0x1f2   : > { %2020 = vpow2.f32 %v1766_v49 }
 0x1f3   : > { %2022 = vpow2.f32 %v1778_v13 }
 0x1f6   : > { %v2009_v41 = vpop.eup %2008 }
 0x1f7   : > { %v2011_v53 = vpop.eup %2010  ;;  %v1344_v4 = vadd.f32 1.0, %v2009_v41 }
 0x1f8   : > { %v2013_v0 = vpop.eup %2012  ;;  %v1356_v2 = vadd.f32 1.0, %v2011_v53 }
 0x1f9   : > { %v2015_v1 = vpop.eup %2014  ;;  %2024 = vrcp.f32 %v1344_v4  ;;  %v1342_v26 = vadd.f32 1.0, %v2013_v0 }
 0x1fa   : > { %v2017_v61 = vpop.eup %2016  ;;  %2026 = vrcp.f32 %v1356_v2  ;;  %v1354_v46 = vadd.f32 1.0, %v2015_v1 }
 0x1fb   : > { %v2019_v52 = vpop.eup %2018  ;;  %2028 = vrcp.f32 %v1342_v26  ;;  %v1345_v39 = vadd.f32 1.0, %v2017_v61 }
 0x1fc   : > { %v2021_v35 = vpop.eup %2020  ;;  %2030 = vrcp.f32 %v1354_v46  ;;  %v1357_v47 = vadd.f32 1.0, %v2019_v52 }
 0x1fd   : > { %v2023_v44 = vpop.eup %2022  ;;  %2032 = vrcp.f32 %v1345_v39  ;;  %v1343_v6 = vadd.f32 1.0, %v2021_v35 }
 0x1fe   : > { %2034 = vrcp.f32 %v1357_v47  ;;  %v1355_v22 = vadd.f32 1.0, %v2023_v44 }
 0x1ff   : > { %2036 = vrcp.f32 %v1343_v6 }
 0x200   : > { %2038 = vrcp.f32 %v1355_v22 }
 0x203   : > { %v2025_v29 = vpop.eup %2024 }
 0x204   : > { %v2027_v59 = vpop.eup %2026  ;;  %v1416_v42 = vmul.f32 %v2025_v29, %v1196_v37 }
 0x205   : > { %v2029_v34 = vpop.eup %2028  ;;  %v1428_v30 = vmul.f32 %v2027_v59, %v1244_v12 }
 0x206   : > { %v2031_v10 = vpop.eup %2030  ;;  %v1817_v57 = vpack.c.bf16 %v1416_v42, %v1416_v42  ;;  %v1414_v45 = vmul.f32 %v2029_v34, %v1188_v60 }
 0x207   : > { %v2033_v11 = vpop.eup %2032  ;;  %v1829_v51 = vpack.c.bf16 %v1428_v30, %v1428_v30  ;;  %v1426_v24 = vmul.f32 %v2031_v10, %v1236_v63 }
 0x208   : > { %v2035_v36 = vpop.eup %2034  ;;  %1545 = vst.msk [vmem:[%s3017_s28 + $0x18] sm:$0xf] %vm1538_vm12, %v1817_v57  ;;  %v1815_v17 = vpack.c.bf16 %v1414_v45, %v1414_v45  ;;  %v1417_v27 = vmul.f32 %v2033_v11, %v1199_v31 }
 0x209   : > { %v2037_v18 = vpop.eup %2036  ;;  %1557 = vst.msk [vmem:[%s3017_s28 + $0x48] sm:$0xf] %vm1538_vm12, %v1829_v51  ;;  %v1827_v7 = vpack.c.bf16 %v1426_v24, %v1426_v24  ;;  %v1429_v19 = vmul.f32 %v2035_v36, %v1247_v38 }
 0x20a   : > { %v2039_v55 = vpop.eup %2038  ;;  %1543 = vst.msk [vmem:[%s3017_s28 + $0x10] sm:$0xf] %vm1538_vm12, %v1815_v17  ;;  %v1818_v58 = vpack.c.bf16 %v1417_v27, %v1417_v27  ;;  %v1415_v21 = vmul.f32 %v2037_v18, %v1191_v33 }
 0x20b   : > { %1555 = vst.msk [vmem:[%s3017_s28 + $0x40] sm:$0xf] %vm1538_vm12, %v1827_v7  ;;  %v1830_v9 = vpack.c.bf16 %v1429_v19, %v1429_v19  ;;  %v1427_v25 = vmul.f32 %v2039_v55, %v1239_v43 }
 0x20c   : > { %1546 = vst.msk [vmem:[%s3017_s28 + $0x1c] sm:$0xf] %vm1538_vm12, %v1818_v58  ;;  %v1816_v3 = vpack.c.bf16 %v1415_v21, %v1415_v21 }
 0x20d   : > { %1558 = vst.msk [vmem:[%s3017_s28 + $0x4c] sm:$0xf] %vm1538_vm12, %v1830_v9  ;;  %v1828_v32 = vpack.c.bf16 %v1427_v25, %v1427_v25 }
 0x20e   : > { %1544 = vst.msk [vmem:[%s3017_s28 + $0x14] sm:$0xf] %vm1538_vm12, %v1816_v3 }
 0x20f   : > { %1556 = vst.msk [vmem:[%s3017_s28 + $0x44] sm:$0xf] %vm1538_vm12, %v1828_v32 }
 0x222   : > { %v1878_v37 = vpop.f32.mrb[8].mxu1 }
 0x223   : > { %v1866_v40 = vpop.f32.mrb[8].mxu0  ;;  %v1260_v56 = vadd.f32 %v1878_v37, %v2977_v20  ;;  %v1251_v60 = vpop.f32.mrb[9].mxu1 }
 0x224   : > { %v1212_v12 = vadd.f32 %v1866_v40, %v2977_v20  ;;  %v1203_v23 = vpop.f32.mrb[9].mxu0  ;;  %v1252_v14 = vadd.f32 %v2977_v20, %v1251_v60  ;;  %v1879_v28 = vpop.f32.mrb[10].mxu1 }
 0x225   : > { %v1204_v63 = vadd.f32 %v2977_v20, %v1203_v23  ;;  %v1867_v15 = vpop.f32.mrb[10].mxu0  ;;  %v1783_v31 = vmul.f32 -1.442695, %v1260_v56  ;;  %v1263_v62 = vadd.f32 %v1879_v28, %v2977_v20  ;;  %v1254_v16 = vpop.f32.mrb[11].mxu1 }
 0x226   : > { %v1771_v50 = vmul.f32 -1.442695, %v1212_v12  ;;  %v1215_v38 = vadd.f32 %v1867_v15, %v2977_v20  ;;  %v1206_v8 = vpop.f32.mrb[11].mxu0  ;;  %v1781_v33 = vmul.f32 -1.442695, %v1252_v14  ;;  %v1255_v5 = vadd.f32 %v2977_v20, %v1254_v16 }
 0x227   : > { %v1769_v54 = vmul.f32 -1.442695, %v1204_v63  ;;  %v1207_v43 = vadd.f32 %v2977_v20, %v1206_v8  ;;  %v1784_v49 = vmul.f32 -1.442695, %v1263_v62 }
 0x228   : > { %2040 = vpow2.f32 %v1771_v50  ;;  %v1772_v48 = vmul.f32 -1.442695, %v1215_v38  ;;  %v1782_v41 = vmul.f32 -1.442695, %v1255_v5 }
 0x229   : > { %2042 = vpow2.f32 %v1783_v31  ;;  %v1770_v13 = vmul.f32 -1.442695, %v1207_v43 }
 0x22a   : > { %2044 = vpow2.f32 %v1769_v54 }
 0x22b   : > { %2046 = vpow2.f32 %v1781_v33 }
 0x22c   : > { %2048 = vpow2.f32 %v1772_v48 }
 0x22d   : > { %2050 = vpow2.f32 %v1784_v49 }
 0x22e   : > { %2052 = vpow2.f32 %v1770_v13 }
 0x22f   : > { %2054 = vpow2.f32 %v1782_v41 }
 0x232   : > { %v2041_v53 = vpop.eup %2040 }
 0x233   : > { %v2043_v4 = vpop.eup %2042  ;;  %v1348_v0 = vadd.f32 1.0, %v2041_v53 }
 0x234   : > { %v2045_v2 = vpop.eup %2044  ;;  %v1360_v1 = vadd.f32 1.0, %v2043_v4 }
 0x235   : > { %v2047_v26 = vpop.eup %2046  ;;  %2056 = vrcp.f32 %v1348_v0  ;;  %v1346_v20 = vadd.f32 1.0, %v2045_v2 }
 0x236   : > { %v2049_v61 = vpop.eup %2048  ;;  %2058 = vrcp.f32 %v1360_v1  ;;  %v1358_v46 = vadd.f32 1.0, %v2047_v26 }
 0x237   : > { %v2051_v52 = vpop.eup %2050  ;;  %2060 = vrcp.f32 %v1346_v20  ;;  %v1349_v39 = vadd.f32 1.0, %v2049_v61 }
 0x238   : > { %v2053_v35 = vpop.eup %2052  ;;  %2062 = vrcp.f32 %v1358_v46  ;;  %v1361_v47 = vadd.f32 1.0, %v2051_v52 }
 0x239   : > { %v2055_v44 = vpop.eup %2054  ;;  %2064 = vrcp.f32 %v1349_v39  ;;  %v1347_v6 = vadd.f32 1.0, %v2053_v35 }
 0x23a   : > { %2066 = vrcp.f32 %v1361_v47  ;;  %v1359_v22 = vadd.f32 1.0, %v2055_v44 }
 0x23b   : > { %2068 = vrcp.f32 %v1347_v6 }
 0x23c   : > { %2070 = vrcp.f32 %v1359_v22 }
 0x23f   : > { %v2057_v29 = vpop.eup %2056 }
 0x240   : > { %v2059_v59 = vpop.eup %2058  ;;  %v1420_v42 = vmul.f32 %v2057_v29, %v1212_v12 }
 0x241   : > { %v2061_v34 = vpop.eup %2060  ;;  %v1432_v30 = vmul.f32 %v2059_v59, %v1260_v56 }
 0x242   : > { %v2063_v10 = vpop.eup %2062  ;;  %v1821_v57 = vpack.c.bf16 %v1420_v42, %v1420_v42  ;;  %v1418_v45 = vmul.f32 %v2061_v34, %v1204_v63 }
 0x243   : > { %v2065_v11 = vpop.eup %2064  ;;  %v1833_v51 = vpack.c.bf16 %v1432_v30, %v1432_v30  ;;  %v1430_v24 = vmul.f32 %v2063_v10, %v1252_v14 }
 0x244   : > { %v2067_v36 = vpop.eup %2066  ;;  %1549 = vst.msk [vmem:[%s3017_s28 + $0x28] sm:$0xf] %vm1538_vm12, %v1821_v57  ;;  %v1819_v17 = vpack.c.bf16 %v1418_v45, %v1418_v45  ;;  %v1421_v27 = vmul.f32 %v2065_v11, %v1215_v38 }
 0x245   : > { %v2069_v18 = vpop.eup %2068  ;;  %1561 = vst.msk [vmem:[%s3017_s28 + $0x58] sm:$0xf] %vm1538_vm12, %v1833_v51  ;;  %v1831_v7 = vpack.c.bf16 %v1430_v24, %v1430_v24  ;;  %v1433_v19 = vmul.f32 %v2067_v36, %v1263_v62 }
 0x246   : > { %v2071_v55 = vpop.eup %2070  ;;  %1547 = vst.msk [vmem:[%s3017_s28 + $0x20] sm:$0xf] %vm1538_vm12, %v1819_v17  ;;  %v1822_v58 = vpack.c.bf16 %v1421_v27, %v1421_v27  ;;  %v1419_v21 = vmul.f32 %v2069_v18, %v1207_v43 }
 0x247   : > { %1559 = vst.msk [vmem:[%s3017_s28 + $0x50] sm:$0xf] %vm1538_vm12, %v1831_v7  ;;  %v1834_v9 = vpack.c.bf16 %v1433_v19, %v1433_v19  ;;  %v1431_v25 = vmul.f32 %v2071_v55, %v1255_v5 }
 0x248   : > { %1550 = vst.msk [vmem:[%s3017_s28 + $0x2c] sm:$0xf] %vm1538_vm12, %v1822_v58  ;;  %v1820_v3 = vpack.c.bf16 %v1419_v21, %v1419_v21 }
 0x249   : > { %1562 = vst.msk [vmem:[%s3017_s28 + $0x5c] sm:$0xf] %vm1538_vm12, %v1834_v9  ;;  %v1832_v32 = vpack.c.bf16 %v1431_v25, %v1431_v25 }
 0x24a   : > { %1548 = vst.msk [vmem:[%s3017_s28 + $0x24] sm:$0xf] %vm1538_vm12, %v1820_v3 }
 0x24b   : > { %1560 = vst.msk [vmem:[%s3017_s28 + $0x54] sm:$0xf] %vm1538_vm12, %v1832_v32 }
 0x24c PF: > { %s13_s16 = sadd.s32 1, %s2110_s16   ;;  %s3190_s12 = smov %s2102_s14 }
 0x24d   : > { %p10_p8 = scmp.ge.s32.totalorder %s13_s16, 6   ;;  %s3191_s13 = smov %s2106_s15 }
 0x24e   : > { %s3192_s14 = smov %s3195_s17  ;;  %s3193_s15 = smov %s3199_s18 }
 0x24f   :  { %12 = sbr.rel (!%p10_p8) target bundleno = 3 (0x3), region = 68 }

// kernel: tpu_custom_call.1
= control target key start
LH: loop header
LB: loop body
LE: loop exit
PB: predicated region body
PF: predicated region fallthrough
CT: control target
= control target key end

     0   :  { %s2140_s12 = smov 0   ;;  %s2142_s13 = smov 0   ;;  %s3105_s0 = inlined_call_operand.vmem [shape: bf16[2,2,264,4], index: 0, kind: input, shape index: {}]   ;;  %s3106_s1 = inlined_call_operand.vmem [shape: bf16[36,8], index: 1, kind: input, shape index: {}]   ;;  %s3107_s2 = inlined_call_operand.vmem [shape: f32[1,8], index: 2, kind: input, shape index: {}]   ;;  %s3108_s3 = inlined_call_operand.vmem [shape: bf16[2,16,24,8], index: 3, kind: output, shape index: {}]  }
   0x1   :  { %s2144_s14 = smov 0   ;;  %s2146_s15 = smov 0  }
   0x2   :  { %s2148_s16 = smov 0  }
   0x3 LB: > { %s28_s17 = sadd.s32 1, %s2102_s14  ;;  %s32_s18 = sadd.s32 1, %s2106_s15  ;;  %s2110_s16 = sphi %s2148_s16, %s13_s16   ;;  %s2106_s15 = sphi %s2146_s15, %s3193_s15   ;;  %s2102_s14 = sphi %s2144_s14, %s3192_s14   ;;  %s2098_s13 = sphi %s2142_s13, %s3191_s13   ;;  %s2094_s12 = sphi %s2140_s12, %s3190_s12  }
   0x4   : > { %p30_p0 = scmp.ge.s32.totalorder %s28_s17, 2  ;;  %p1708_p1 = scmp.ge.s32.totalorder %s2110_s16, 1 }
   0x5   : > { %p183_p2 = scmp.lt.s32.totalorder %s2110_s16, 5 }
   0x6   : > { %s3195_s17 = smov (%p30_p0, %s28_s17), 0  ;;  %s3197_s18 = smov (!%p30_p0, %s32_s18), %s2106_s15 }
   0x7   : > { %p184_p3 = pnand %p1708_p1, %p183_p2  ;;  %p34_p4 = scmp.ge.s32.totalorder %s3197_s18, 2 }
   0x9   : > { %s3199_s18 = smov (%p34_p4, %s3197_s18), 0  ;;  %187 = sbr.rel (%p184_p3) target bundleno = 588 (0x24c), region = 32 }
  0x10   : > { %p226_p5 = scmp.lt.s32.totalorder %s2098_s13, 1  ;;  %p228_p6 = scmp.lt.s32.totalorder %s2094_s12, 1  ;;  %vm484_vm0 = vcmask 1046528   ;;  %vm356_vm1 = vsmask.f32 7424  ;;  %vm1133_vm2 = vcmask 1041408  }
  0x11   : > { %s2112_s27 = smov 12   ;;  %s2113_s28 = smov 8   ;;  %vm881_vm3 = vcmask 31744   ;;  %vm906_vm4 = vcmask 64512   ;;  %vm931_vm5 = vcmask 97280   ;;  %vm956_vm6 = vcmask 130048  }
  0x12   : > { %s3201_s13 = smov (!%p226_p5, %s2098_s13), 1  ;;  %s2114_s29 = smov 4   ;;  %vm981_vm7 = vcmask 162816   ;;  %vm1006_vm8 = vcmask 195584   ;;  %vm1031_vm9 = vcmask 228352   ;;  %vm1056_vm10 = vcmask 261120  }
  0x13   : > { %s229_s19 = scalar_select %p228_p6, %s2094_s12, 1  ;;  %vm1108_vm11 = vcmask 293888   ;;  %vm1538_vm12 = vcmask 60416  }
  0x14   : > { %s1889_s20 = smul.u32 66, %s3201_s13  ;;  %s2115_s30 = smov 16  }
  0x15   : > { %s1888_s21 = smul.u32 33, %s229_s19  ;;  %s2116_s4 = smov 20  }
  0x16   : > { %s2117_s7 = smov 24   ;;  %s2118_s10 = smov 28  }
  0x17   : > { %s232_s22 = sadd.s32 %s1889_s20, %s1888_s21  ;;  %s2119_s20 = smov 32  }
  0x18   : > { %s1709_s23 = sshll.u32 %s232_s22, 2  ;;  %s1891_s24 = smul.u32 48, %s3201_s13 }
  0x19   : > { %s2180_s26 = scalar_lea.vmem %s3105_s0, %s1709_s23  ;;  %s1710_s23 = sshll.u32 %s2094_s12, 3 }
  0x1a   : > { %v272_v0 = vld [vmem:[%s2180_s26 + $0x3c] sm:$0xf]  ;;  %v273_v1 = vld [vmem:[%s2180_s26 + $0x40] sm:$0xf]  ;;  %v2185_v2 = vld [vmem:[%s2180_s26 + $0x44] sm:$0xf] }
  0x1b   : > { %v2188_v3 = vcombine.low %v273_v1, %v2185_v2  ;;  %v2190_v4 = vcombine.low %v272_v0, %v273_v1  ;;  %v2193_v5 = vld [vmem:[%s2180_s26 + $0x38] sm:$0xf]  ;;  %v260_v6 = vld [vmem:[%s2180_s26 + $0xc] sm:$0xf]  ;;  %v2197_v7 = vld [vmem:[%s2180_s26 + $0x10] sm:$0xf] }
  0x1c   : > { %v2200_v8 = vcombine.low %v2193_v5, %v272_v0  ;;  %v2203_v9 = vld [vmem:[%s2180_s26 + $0x14] sm:$0xf]  ;;  %v2206_v10 = vcombine.low %v260_v6, %v2197_v7  ;;  %v259_v11 = vld [vmem:[%s2180_s26 + $0x8] sm:$0xf]  ;;  %v2210_v12 = vld [vmem:[%s2180_s26 + $0x30] sm:$0xf] }
  0x1d   : > { %3137 = vst [vmem:[#allocation2_spill] sm:$0xff] %v2188_v3  ;;  %564 = vrot.lane.b32.xlu1 %v2190_v4, %s2112_s27  ;;  %v2216_v13 = vcombine.low %v2197_v7, %v2203_v9  ;;  %v2218_v14 = vcombine.low %v259_v11, %v260_v6  ;;  %v2221_v15 = vld [vmem:[%s2180_s26 + $0x34] sm:$0xf]  ;;  %v258_v16 = vld [vmem:[%s2180_s26 + $0x4] sm:$0xf]  ;;  %v500_v24 = vrot.slane %v2188_v3, 1 }
  0x1e   : > { %3138 = vst [vmem:[#allocation3_spill] sm:$0xff] %v2200_v8  ;;  %v282_v17 = vld [vmem:[%s2180_s26] sm:$0xe]  ;;  %552 = vrot.lane.b32.xlu0 %v2206_v10, %s2112_s27  ;;  %v2229_v18 = vcombine.low %v2210_v12, %v2221_v15  ;;  %v498_v19 = vrot.slane %v2200_v8, 1  ;;  %v413_v39 = vshll.u32 %v2200_v8, 16  ;;  %v417_v40 = vshrl.u32 %v2200_v8, 16 }
  0x1f   : > { %3139 = vst [vmem:[#allocation4_spill] sm:$0xff] %v2216_v13  ;;  %3140 = vst [vmem:[#allocation5_spill] sm:$0xff] %v2218_v14  ;;  %v1725_v20 = vcombine.low %v282_v17, %v258_v16  ;;  %v257_v21 = vld [vmem:[%s2180_s26] sm:$0xf]  ;;  %v486_v22 = vrot.slane %v2218_v14, 1  ;;  %v488_v25 = vrot.slane %v2216_v13, 1 }
  0x20   : > { %3141 = vst [vmem:[#allocation6_spill] sm:$0xff] %v2229_v18  ;;  %v2234_v23 = vcombine.low %v257_v21, %v258_v16  ;;  %v3114_v26 = vrot.slane %v2229_v18, 1  ;;  %v365_v28 = vshll.u32 %v2218_v14, 16  ;;  %v369_v29 = vshrl.u32 %v2218_v14, 16  ;;  %v275_v46 = vld [vmem:[%s2180_s26 + $0x48] sm:$0xf] }
  0x21   : > { %v485_v27 = vrot.slane %v1725_v20, 1  ;;  %v2244_v30 = vsel %vm484_vm0, %v498_v19, %v500_v24  ;;  %v489_v31 = vsel %vm484_vm0, %v486_v22, %v488_v25  ;;  %v373_v32 = vshll.u32 %v2216_v13, 16  ;;  %v263_v48 = vld [vmem:[%s2180_s26 + $0x18] sm:$0xf]  ;;  %v276_v52 = vld [vmem:[%s2180_s26 + $0x4c] sm:$0xf] }
  0x22   : > { %3142 = vst [vmem:[#allocation7_spill] sm:$0xff] %v2234_v23  ;;  %3143 = vst [vmem:[#allocation8_spill] sm:$0xff] %v2244_v30  ;;  %v358_v33 = vshrl.u32 %v2234_v23, 16  ;;  %v2254_v34 = vsel %vm484_vm0, %v3114_v26, %v498_v19  ;;  %v367_v36 = vrot.slane %v365_v28, 1  ;;  %v360_v37 = vshll.u32 %v2234_v23, 16  ;;  %p245_p7 = scmp.lt.s32.totalorder %s1710_s23, 15 }
  0x23   : > { %3144 = vst [vmem:[#allocation9_spill] sm:$0xff] %v2254_v34  ;;  %v487_v35 = vsel %vm484_vm0, %v485_v27, %v486_v22  ;;  %522 = vrot.lane.b32.xlu1 %v2254_v34, %s2113_s28  ;;  %v2261_v38 = vrot.slane %v373_v32, 1  ;;  %v421_v41 = vshll.u32 %v2188_v3, 16  ;;  %v405_v44 = vshll.u32 %v2229_v18, 16  ;;  %v277_v53 = vld [vmem:[%s2180_s26 + $0x50] sm:$0xf] }
  0x24   : > { %510 = vrot.lane.b32.xlu0 %v487_v35, %s2113_s28  ;;  %v371_v42 = vor.u32 %v369_v29, %v367_v36  ;;  %v362_v43 = vrot.slane %v360_v37, 1  ;;  %v409_v45 = vshrl.u32 %v2229_v18, 16  ;;  %v415_v47 = vrot.slane %v413_v39, 1  ;;  %v2284_v57 = vld [vmem:[%s2180_s26 + $0x1c] sm:$0xf]  ;;  %s3203_s23 = smov (!%p245_p7, %s1710_s23), 15 }
  0x25   : > { %v582_v49 = vshll.u32 %v2206_v10, 16  ;;  %v2271_v51 = vrot.slane %v405_v44, 1  ;;  %v2278_v55 = vrot.slane %v421_v41, 1  ;;  %v2281_v56 = vcombine.low %v2185_v2, %v275_v46  ;;  %v265_v58 = vld [vmem:[%s2180_s26 + $0x20] sm:$0xf]  ;;  %s1890_s12 = smul.u32 3, %s3203_s23 }
  0x26   : > { %v363_v50 = vor.u32 %v362_v43, %v358_v33  ;;  %v419_v54 = vor.u32 %v417_v40, %v415_v47  ;;  %v627_v59 = vshll.u32 %v2190_v4, 16  ;;  %v376_v60 = vsel %vm356_vm1, %v371_v42, %v2261_v38  ;;  %v2318_v22 = vld [vmem:[%s2180_s26 + $0x54] sm:$0xf]  ;;  %v2333_v33 = vld [vmem:[%s2180_s26 + $0x24] sm:$0xf] }
  0x27   : > { %524 = vrot.lane.b32.xlu1 %v2244_v30, %s2113_s28  ;;  %v411_v62 = vor.u32 %v409_v45, %v2271_v51  ;;  %v2293_v63 = vcombine.low %v2203_v9, %v263_v48  ;;  %v2295_v0 = vcombine.low %v276_v52, %v277_v53  ;;  %v2298_v1 = vcombine.low %v2284_v57, %v265_v58  ;;  %v287_v40 = vld [vmem:[%s2180_s26 + $0xc] sm:$0xe]  ;;  %s252_s25 = sadd.s32 %s1891_s24, %s1890_s12 }
  0x28   : > { %512 = vrot.lane.b32.xlu0 %v489_v31, %s2113_s28  ;;  %v368_v61 = vsel %vm356_vm1, %v363_v50, %v367_v36  ;;  %v2304_v2 = vsel %vm356_vm1, %v419_v54, %v2278_v55  ;;  %v2306_v6 = vrot.slane %v627_v59, 1  ;;  %v631_v11 = vshrl.u32 %v2190_v4, 16  ;;  %v267_v59 = vld [vmem:[%s2180_s26 + $0x28] sm:$0xf] }
  0x29   : > { %3145 = vst [vmem:[#allocation10_spill] sm:$0xff] %v2304_v2  ;;  %v635_v9 = vshll.u32 %v2281_v56, 16  ;;  %v2311_v16 = vsel %vm356_vm1, %v411_v62, %v415_v47  ;;  %v580_v17 = vshrl.u32 %v2206_v10, 16  ;;  %v584_v19 = vrot.slane %v582_v49, 1  ;;  %v280_v47 = vld [vmem:[%s2180_s26 + $0x5c] sm:$0xf] }
  0x2a   : > { %3146 = vst [vmem:[#allocation11_spill] sm:$0xff] %v2311_v16  ;;  %v587_v20 = vshll.u32 %v2293_v63, 16  ;;  %v2315_v21 = vcombine.low %v275_v46, %v276_v52  ;;  %v2321_v27 = vcombine.low %v263_v48, %v2284_v57  ;;  %v639_v28 = vshrl.u32 %v2281_v56, 16  ;;  %v279_v46 = vld [vmem:[%s2180_s26 + $0x58] sm:$0xf] }
  0x2b   : > { %459 = vrot.lane.b32.xlu1 %v376_v60, %s2114_s29  ;;  %v643_v29 = vshll.u32 %v2295_v0, 16  ;;  %v633_v10 = vor.u32 %v631_v11, %v2306_v6  ;;  %v591_v31 = vshrl.u32 %v2293_v63, 16  ;;  %v595_v32 = vshll.u32 %v2298_v1, 16  ;;  %v268_v60 = vld [vmem:[%s2180_s26 + $0x2c] sm:$0xf] }
  0x2c   : > { %457 = vrot.lane.b32.xlu0 %v368_v61, %s2114_s29  ;;  %3147 = vst [vmem:[#allocation12_spill] sm:$0xff] %v2315_v21  ;;  %v637_v35 = vrot.slane %v635_v9, 1  ;;  %v585_v36 = vor.u32 %v584_v19, %v580_v17  ;;  %v589_v37 = vrot.slane %v587_v20, 1  ;;  %v2336_v39 = vcombine.low %v277_v53, %v2318_v22 }
  0x2d   : > { %v429_v41 = vshll.u32 %v2315_v21, 16  ;;  %v2340_v43 = vrot.slane %v643_v29, 1  ;;  %v2343_v44 = vcombine.low %v265_v58, %v2333_v33  ;;  %v381_v45 = vshll.u32 %v2321_v27, 16 }
  0x2e   : > { %v641_v42 = vor.u32 %v639_v28, %v637_v35  ;;  %v593_v48 = vor.u32 %v591_v31, %v589_v37  ;;  %v2352_v49 = vrot.slane %v595_v32, 1  ;;  %v3110_v50 = vrot.slane %v2190_v4, 1 }
  0x2f   : > { %471 = vrot.lane.b32.xlu1 %v2304_v2, %s2114_s29  ;;  %3148 = vst [vmem:[#allocation13_spill] sm:$0xff] %v2343_v44  ;;  %v638_v52 = vsel %vm356_vm1, %v633_v10, %v637_v35  ;;  %v590_v53 = vsel %vm356_vm1, %v585_v36, %v589_v37  ;;  %v1739_v54 = vcombine.low %v287_v40, %v2197_v7  ;;  %v437_v58 = vshll.u32 %v2336_v39, 16 }
  0x30   : > { %469 = vrot.lane.b32.xlu0 %v2311_v16, %s2114_s29  ;;  %v719_v61 = vrot.slane %v2281_v56, 1  ;;  %v2362_v62 = vrot.slane %v429_v41, 1  ;;  %v433_v11 = vshrl.u32 %v2315_v21, 16  ;;  %v2365_v9 = vcombine.low %v279_v46, %v280_v47 }
  0x31   : > { %v646_v17 = vsel %vm356_vm1, %v641_v42, %v2340_v43  ;;  %v2369_v19 = vrot.slane %v381_v45, 1  ;;  %v385_v20 = vshrl.u32 %v2321_v27, 16  ;;  %v389_v7 = vshll.u32 %v2343_v44, 16 }
  0x32   : > { %3149 = vst [vmem:[#allocation14_spill] sm:$0xff] %v2365_v9  ;;  %v707_v28 = vrot.slane %v2293_v63, 1  ;;  %v3109_v29 = vrot.slane %v2295_v0, 1  ;;  %v2379_v10 = vcombine.low %v267_v59, %v268_v60  ;;  %v706_v31 = vrot.slane %v1739_v54, 1 }
  0x33   : > { %566 = vrot.lane.b32.xlu1 %v2281_v56, %s2112_s27  ;;  %v598_v56 = vsel %vm356_vm1, %v593_v48, %v2352_v49  ;;  %v3111_v32 = vrot.slane %v2298_v1, 1  ;;  %v439_v35 = vrot.slane %v437_v58, 1  ;;  %v441_v36 = vshrl.u32 %v2336_v39, 16 }
  0x34   : > { %554 = vrot.lane.b32.xlu0 %v2293_v63, %s2112_s27  ;;  %v435_v37 = vor.u32 %v433_v11, %v2362_v62  ;;  %v445_v40 = vshll.u32 %v2365_v9, 16  ;;  %v393_v41 = vshrl.u32 %v2343_v44, 16  ;;  %v3113_v42 = vrot.slane %v2315_v21, 1 }
  0x35   : > { %v720_v63 = vsel %vm484_vm0, %v3110_v50, %v719_v61  ;;  %v387_v45 = vor.u32 %v385_v20, %v2369_v19  ;;  %v391_v48 = vrot.slane %v389_v7, 1  ;;  %v3112_v58 = vrot.slane %v2321_v27, 1  ;;  %v283_v7 = vld [vmem:[%s2180_s26 + $0x60] sm:$0xf] }
  0x36   : > { %v2402_v54 = vsel %vm484_vm0, %v500_v24, %v3113_v42  ;;  %v708_v11 = vsel %vm484_vm0, %v706_v31, %v707_v28  ;;  %v443_v20 = vor.u32 %v441_v36, %v439_v35  ;;  %v2419_v24 = vld [vmem:[%s2180_s26 + $0x18] sm:$0xe]  ;;  %v3153_v8 = vrot.slane %v2379_v10, 1 }
  0x37   : > { %691 = vrot.lane.b32.xlu1 %v638_v52, %s2115_s30  ;;  %v722_v52 = vsel %vm484_vm0, %v719_v61, %v3109_v29  ;;  %v2410_v61 = vcombine.low %v2318_v22, %v279_v46  ;;  %v447_v29 = vrot.slane %v445_v40, 1  ;;  %v2416_v50 = vor.u32 %v393_v41, %v391_v48  ;;  %v288_v22 = vld [vmem:[%s2180_s26 + $0x6c] sm:$0xf] }
  0x38   : > { %679 = vrot.lane.b32.xlu0 %v590_v53, %s2115_s30  ;;  %v397_v53 = vshll.u32 %v2379_v10, 16  ;;  %v2426_v31 = vsel %vm484_vm0, %v488_v25, %v3112_v58  ;;  %v2433_v46 = vcombine.low %v2333_v33, %v267_v59  ;;  %v2440_v25 = vcombine.low %v280_v47, %v283_v7  ;;  %v285_v58 = vld [vmem:[%s2180_s26 + $0x68] sm:$0xf] }
  0x39   : > { %v2444_v40 = vcombine.low %v268_v60, %v2210_v12  ;;  %v2447_v33 = vrot.slane %v2343_v44, 1  ;;  %v284_v60 = vld [vmem:[%s2180_s26 + $0x64] sm:$0xf]  ;;  %v2512_v2 = vcombine.low %v285_v58, %v288_v22  ;;  %v3155_v22 = vrot.slane %v2336_v39, 1 }
  0x3a   : > { %v2438_v36 = vrot.slane %v397_v53, 1  ;;  %v659_v47 = vshll.u32 %v2440_v25, 16  ;;  %v3116_v42 = vrot.slane %v2440_v25, 1  ;;  %v3156_v34 = vrot.slane %v2315_v21, 1 }
  0x3b   : > { %693 = vrot.lane.b32.xlu1 %v646_v17, %s2115_s30  ;;  %v710_v17 = vsel %vm484_vm0, %v707_v28, %v3111_v32  ;;  %v2429_v28 = vsel %vm356_vm1, %v387_v45, %v391_v48  ;;  %v2455_v45 = vsel %vm356_vm1, %v443_v20, %v447_v29  ;;  %v607_v48 = vshrl.u32 %v2433_v46, 16 }
  0x3c   : > { %681 = vrot.lane.b32.xlu0 %v598_v56, %s2115_s30  ;;  %v2414_v56 = vsel %vm356_vm1, %v435_v37, %v439_v35  ;;  %v651_v35 = vshll.u32 %v2410_v61, 16  ;;  %v655_v37 = vshrl.u32 %v2410_v61, 16  ;;  %v611_v12 = vshll.u32 %v2444_v40, 16 }
  0x3d   : > { %v2469_v20 = vrot.slane %v659_v47, 1  ;;  %v2532_v16 = vsel %vm484_vm0, %v3156_v34, %v3155_v22  ;;  %v1972_v34 = vld [vmem:[%s3106_s1 + $0x8] sm:$0xff]  }
  0x3e   : > { %v2451_v41 = vrot.slane %v651_v35, 1  ;;  %v2471_v59 = vrot.slane %v611_v12, 1  ;;  %v2481_v35 = vcombine.low %v283_v7, %v284_v60  ;;  %v3151_v12 = vrot.slane %v2433_v46, 1 }
  0x3f   : > { %743 = vrot.lane.b32.xlu1 %v720_v63, %s2116_s4  ;;  %v603_v63 = vshll.u32 %v2433_v46, 16  ;;  %v449_v7 = vshrl.u32 %v2365_v9, 16 }
  0x40   : > { %731 = vrot.lane.b32.xlu0 %v708_v11, %s2116_s4  ;;  %v657_v11 = vor.u32 %v655_v37, %v2451_v41  ;;  %v2477_v37 = vrot.slane %v2365_v9, 1  ;;  %v849_v14 = vrot.slane %v2481_v35, 1 }
  0x41   : > { %v2461_v53 = vrot.slane %v603_v63, 1  ;;  %v3118_v63 = vrot.slane %v2444_v40, 1 }
  0x43   : > { %745 = vrot.lane.b32.xlu1 %v722_v52, %s2116_s4  ;;  %v609_v32 = vor.u32 %v607_v48, %v2461_v53  ;;  %v2485_v52 = vsel %vm356_vm1, %v657_v11, %v2469_v20  ;;  %v2499_v26 = vsel %vm484_vm0, %v3151_v12, %v3118_v63  ;;  %v1967_v48 = vld [vmem:[%s2180_s26 + $0x60] ss:$0 sps:$4 sm:$0x11]   ;;  %v451_v12 = vor.u32 %v449_v7, %v447_v29 }
  0x44   : > { %733 = vrot.lane.b32.xlu0 %v710_v17, %s2116_s4  ;;  %v3150_v17 = vrot.slane %v2410_v61, 1  ;;  %v1971_v11 = vld [vmem:[%s3106_s1] sm:$0xff]   ;;  %v796_v63 = vshrl.u32 %v2481_v35, 16  ;;  %v800_v7 = vshll.u32 %v2512_v2, 16 }
  0x45   : > { %v2508_v30 = vsel %vm356_vm1, %v609_v32, %v2471_v59  ;;  %v3152_v32 = vrot.slane %v2229_v18, 1  ;;  %1850 = vmatprep.subr.bf16.mxu0 %v1971_v11  ;;  %1880 = vmatprep.subr.bf16.mxu1 %v1971_v11  ;;  %v425_v18 = vshrl.u32 %v2188_v3, 16 }
  0x46   : > { %v2492_v47 = vsel %vm484_vm0, %v3150_v17, %v3116_v42  ;;  %v792_v17 = vshll.u32 %v2481_v35, 16  ;;  %v401_v42 = vshrl.u32 %v2379_v10, 16  ;;  %1851 = vmatpush3.bf16.msra.mxu0 %v1971_v11  ;;  %1883 = vmatpush3.bf16.msra.mxu1 %v1971_v11  ;;  %v2552_v3 = vrot.slane %v800_v7, 1 }
  0x47   : > { %776 = vrot.lane.b32.xlu1 %v2315_v21, %s2117_s7  ;;  %v2525_v23 = vsel %vm484_vm0, %v3153_v8, %v3152_v32  ;;  %v2539_v8 = vsel %vm484_vm0, %v2477_v37, %v849_v14  ;;  %v453_v21 = vshll.u32 %v1967_v48, 16  ;;  %v2561_v11 = vsel %vm356_vm1, %v2416_v50, %v2438_v36  ;;  %1852 = vmatprep.subr.bf16.mxu0 %v1972_v34 }
  0x48   : > { %764 = vrot.lane.b32.xlu0 %v2321_v27, %s2117_s7  ;;  %3154 = vst [vmem:[#allocation15_spill] sm:$0xff] %v2525_v23  ;;  %v794_v9 = vrot.slane %v792_v17, 1  ;;  %v403_v29 = vor.u32 %v401_v42, %v2438_v36  ;;  %3157 = vst [vmem:[#allocation16_spill] sm:$0xff] %v2539_v8  ;;  %v377_v32 = vshrl.u32 %v2216_v13, 16  ;;  %v3158_v23 = vrot.slane %v2512_v2, 1  ;;  %1881 = vmatprep.subr.bf16.mxu1 %v1972_v34 }
  0x49   : > { %v508_v8 = vrot.slane %v1967_v48, 1  ;;  %v2577_v50 = vcombine.low %v284_v60, %v285_v58 }
  0x4a   : > { %v2546_v42 = vsel %vm356_vm1, %v451_v12, %v794_v9  ;;  %v2550_v17 = vsel %vm356_vm1, %v403_v29, %v2271_v51  ;;  %v798_v22 = vor.u32 %v796_v63, %v794_v9  ;;  %v2567_v51 = vsel %vm484_vm0, %v849_v14, %v3158_v23  ;;  %v1970_v63 = vld [vmem:[%s2180_s26 + $0x6c] ss:$0 sps:$4 sm:$0x11]   ;;  %1853 = vmatpush3.bf16.msra.mxu0 %v1972_v34 }
  0x4b   : > { %778 = vrot.lane.b32.xlu1 %v2336_v39, %s2117_s7  ;;  %v455_v9 = vrot.slane %v453_v21, 1  ;;  %v3159_v29 = vcombine.low %v2419_v24, %v2284_v57  ;;  %3160 = vst [vmem:[#allocation17_spill] sm:$0xff] %v2577_v50  ;;  %v2584_v14 = vcombine.low %v2221_v15, %v2193_v5  ;;  %v663_v23 = vshrl.u32 %v2440_v25, 16  ;;  %1884 = vmatpush3.bf16.msra.mxu1 %v1972_v34 }
  0x4c   : > { %766 = vrot.lane.b32.xlu0 %v2343_v44, %s2117_s7  ;;  %v2575_v44 = vsel %vm356_vm1, %v798_v22, %v2552_v3  ;;  %v615_v57 = vshrl.u32 %v2444_v40, 16  ;;  %v427_v21 = vor.u32 %v425_v18, %v2278_v55  ;;  %v2591_v58 = vsel %vm484_vm0, %v2477_v37, %v508_v8  ;;  %v2606_v22 = vld [vmem:[%s2180_s26 + $0x70] sm:$0xff]  }
  0x4d   : > { %v847_v7 = vrot.slane %v3159_v29, 1  ;;  %v2580_v36 = vsel %vm356_vm1, %v451_v12, %v455_v9  ;;  %3161 = vst [vmem:[#allocation18_spill] sm:$0xff] %v2584_v14  ;;  %v667_v24 = vshll.u32 %v2577_v50, 16  ;;  %v671_v60 = vshrl.u32 %v2577_v50, 16 }
  0x4e   : > { %v665_v5 = vor.u32 %v663_v23, %v2469_v20  ;;  %v617_v15 = vor.u32 %v615_v57, %v2471_v59  ;;  %v619_v18 = vshll.u32 %v2584_v14, 16  ;;  %v675_v55 = vshll.u32 %v1970_v63, 16  ;;  %v1974_v59 = vld [vmem:[%s3106_s1 + $0x10] ss:$0 sps:$4 sm:$0x33]  }
  0x4f   : > { %832 = vrot.lane.b32.xlu1 %v2414_v56, %s2118_s10  ;;  %v669_v48 = vrot.slane %v667_v24, 1  ;;  %v623_v12 = vshrl.u32 %v2584_v14, 16  ;;  %v727_v8 = vrot.slane %v2577_v50, 1  ;;  %v715_v34 = vrot.slane %v2584_v14, 1  ;;  %1886 = vmatprep.subr.msk.bf16.mxu0 %vm1133_vm2, %v1974_v59 }
  0x50   : > { %820 = vrot.lane.b32.xlu0 %v2429_v28, %s2118_s10  ;;  %v379_v9 = vor.u32 %v377_v32, %v2261_v38  ;;  %v621_v29 = vrot.slane %v619_v18, 1  ;;  %v677_v13 = vrot.slane %v675_v55, 1  ;;  %v729_v20 = vrot.slane %v1970_v63, 1  ;;  %v1975_v32 = vld [vmem:[%s2180_s26 + $0x78] ss:$0 sps:$4 sm:$0x11]   ;;  %1887 = vmatprep.subr.msk.bf16.mxu1 %vm1133_vm2, %v1974_v59 }
  0x51   : > { %v2613_v23 = vsel %vm356_vm1, %v665_v5, %v669_v48  ;;  %v673_v57 = vor.u32 %v671_v60, %v669_v48  ;;  %v3162_v24 = vrot.slane %v2440_v25, 1  ;;  %v3163_v14 = vrot.slane %v2444_v40, 1  ;;  %s1711_s26 = sshll.u32 %s252_s25, 2 }
  0x52   : > { %v2631_v63 = vsel %vm356_vm1, %v617_v15, %v621_v29  ;;  %v625_v60 = vor.u32 %v623_v12, %v621_v29  ;;  %v2634_v5 = vsel %vm484_vm0, %v727_v8, %v729_v20  ;;  %v848_v18 = vsel %vm484_vm0, %v847_v7, %v2447_v33 }
  0x53   : > { %v2618_v50 = vsel %vm484_vm0, %v3162_v24, %v727_v8  ;;  %v2623_v38 = vsel %vm484_vm0, %v3163_v14, %v715_v34  ;;  %834 = vrot.lane.b32.xlu1 %v2455_v45, %s2118_s10  ;;  %v2639_v14 = vsel %vm356_vm1, %v673_v57, %v677_v13  ;;  %v3164_v55 = vrot.slane %v2190_v4, 1 }
  0x54   : > { %822 = vrot.lane.b32.xlu0 %v2561_v11, %s2118_s10  ;;  %v2648_v15 = vsel %vm356_vm1, %v625_v60, %v2306_v6  ;;  %v804_v12 = vshrl.u32 %v2512_v2, 16  ;;  %v808_v8 = vshll.u32 %v2606_v22, 16  ;;  %v1135_v7 = vsel %vm1133_vm2, %v1974_v59, 0 }
  0x55   : > { %v2644_v48 = vsel %vm484_vm0, %v715_v34, %v3164_v55  ;;  %1855 = vmatpush3.bf16.msra.mxu0 %v1135_v7  ;;  %1885 = vmatpush3.bf16.msra.mxu1 %v1135_v7  ;;  %v812_v13 = vshrl.u32 %v2606_v22, 16  ;;  %v816_v4 = vshll.u32 %v1975_v32, 16  ;;  %v853_v34 = vrot.slane %v2606_v22, 1 }
  0x56   : > { %v806_v6 = vor.u32 %v804_v12, %v2552_v3  ;;  %v810_v29 = vrot.slane %v808_v8, 1  ;;  %v2660_v20 = vsel %vm356_vm1, %v427_v21, %v2362_v62  ;;  %v384_v59 = vsel %vm356_vm1, %v379_v9, %v2369_v19 }
  0x57   : > { %869 = vrot.lane.b32.xlu1 %v2532_v16, %s2119_s20  ;;  %v818_v57 = vrot.slane %v816_v4, 1  ;;  %v3165_v24 = vrot.slane %v2512_v2, 1  ;;  %v855_v7 = vrot.slane %v1975_v32, 1  ;;  %v3166_v19 = vrot.slane %v2336_v39, 1 }
  0x58   : > { %857 = vrot.lane.b32.xlu0 %v848_v18, %s2119_s20  ;;  %v2670_v55 = vsel %vm356_vm1, %v806_v6, %v810_v29  ;;  %v814_v18 = vor.u32 %v812_v13, %v810_v29  ;;  %v3167_v9 = vrot.slane %v2379_v10, 1  ;;  %v3178_v29 = vld [vmem:[#allocation9_spill] sm:$0xff] }
  0x59   : > { %v2667_v60 = vsel %vm484_vm0, %v3165_v24, %v853_v34  ;;  %v2679_v62 = vsel %vm484_vm0, %v853_v34, %v855_v7  ;;  %v507_v21 = vsel %vm484_vm0, %v3166_v19, %v2477_v37  ;;  %v3168_v37 = vrot.slane %v2321_v27, 1  ;;  %v3179_v19 = vld [vmem:[#allocation17_spill] sm:$0xff] }
  0x5a   : > { %v2676_v3 = vsel %vm356_vm1, %v814_v18, %v818_v57  ;;  %v495_v32 = vsel %vm484_vm0, %v2447_v33, %v3167_v9 }
  0x5b   : > { %473 = vrot.lane.b32.xlu1 %v2660_v20, %s2114_s29  ;;  %v493_v12 = vsel %vm484_vm0, %v3168_v37, %v2447_v33 }
  0x5c   : > { %461 = vrot.lane.b32.xlu0 %v384_v59, %s2114_s29 }
  0x5f   : > { %871 = vrot.lane.b32.xlu1 %v507_v21, %s2119_s20 }
  0x60   : > { %859 = vrot.lane.b32.xlu0 %v495_v32, %s2119_s20 }
  0x63   : > { %475 = vrot.lane.b32.xlu1 %v2414_v56, %s2114_s29  ;;  %v647_v56 = vshrl.u32 %v2295_v0, 16 }
  0x64   : > { %463 = vrot.lane.b32.xlu0 %v2429_v28, %s2114_s29  ;;  %v599_v28 = vshrl.u32 %v2298_v1, 16 }
  0x66   : > { %v601_v8 = vor.u32 %v599_v28, %v2352_v49  ;;  %v3170_v49 = vrot.slane %v2295_v0, 1 }
  0x67   : > { %526 = vrot.lane.b32.xlu1 %v2402_v54, %s2113_s28 }
  0x68   : > { %514 = vrot.lane.b32.xlu0 %v2426_v31, %s2113_s28  ;;  %v649_v31 = vor.u32 %v647_v56, %v2340_v43  ;;  %v606_v33 = vsel %vm356_vm1, %v601_v8, %v2461_v53  ;;  %v3169_v43 = vrot.slane %v2410_v61, 1  ;;  %v3172_v53 = vrot.slane %v2298_v1, 1 }
  0x6a   : > { %v724_v13 = vsel %vm484_vm0, %v3170_v49, %v3169_v43 }
  0x6b   : > { %528 = vrot.lane.b32.xlu1 %v2532_v16, %s2113_s28  ;;  %v654_v16 = vsel %vm356_vm1, %v649_v31, %v2451_v41  ;;  %v3171_v41 = vrot.slane %v2433_v46, 1 }
  0x6c   : > { %516 = vrot.lane.b32.xlu0 %v493_v12, %s2113_s28  ;;  %v3181_v12 = vld [vmem:[#allocation7_spill] sm:$0xff] }
  0x6d   : > { %v712_v4 = vsel %vm484_vm0, %v3172_v53, %v3171_v41  ;;  %v3183_v41 = vld [vmem:[#allocation5_spill] sm:$0xff] }
  0x6f   : > { %568 = vrot.lane.b32.xlu1 %v2295_v0, %s2112_s27  ;;  %v3174_v0 = vld [vmem:[#allocation6_spill] sm:$0xff] }
  0x70   : > { %556 = vrot.lane.b32.xlu0 %v2298_v1, %s2112_s27 }
  0x73   : > { %570 = vrot.lane.b32.xlu1 %v2410_v61, %s2112_s27  ;;  %v3175_v61 = vld [vmem:[#allocation11_spill] sm:$0xff] }
  0x74   : > { %558 = vrot.lane.b32.xlu0 %v2433_v46, %s2112_s27 }
  0x77   : > { %695 = vrot.lane.b32.xlu1 %v654_v16, %s2115_s30 }
  0x78   : > { %683 = vrot.lane.b32.xlu0 %v606_v33, %s2115_s30 }
  0x7b   : > { %697 = vrot.lane.b32.xlu1 %v2485_v52, %s2115_s30 }
  0x7c   : > { %685 = vrot.lane.b32.xlu0 %v2508_v30, %s2115_s30  ;;  %v3173_v30 = vld [vmem:[#allocation14_spill] sm:$0xff] }
  0x7f   : > { %747 = vrot.lane.b32.xlu1 %v724_v13, %s2116_s4 }
  0x80   : > { %735 = vrot.lane.b32.xlu0 %v712_v4, %s2116_s4 }
  0x83   : > { %749 = vrot.lane.b32.xlu1 %v2492_v47, %s2116_s4  ;;  %v3177_v47 = vld [vmem:[#allocation15_spill] sm:$0xff] }
  0x84   : > { %737 = vrot.lane.b32.xlu0 %v2499_v26, %s2116_s4 }
  0x87   : > { %780 = vrot.lane.b32.xlu1 %v3173_v30, %s2117_s7 }
  0x88   : > { %768 = vrot.lane.b32.xlu0 %v2379_v10, %s2117_s7 }
  0x8b   : > { %782 = vrot.lane.b32.xlu1 %v2481_v35, %s2117_s7  ;;  %v3176_v35 = vld [vmem:[#allocation16_spill] sm:$0xff] }
  0x8c   : > { %770 = vrot.lane.b32.xlu0 %v3174_v0, %s2117_s7 }
  0x8f   : > { %836 = vrot.lane.b32.xlu1 %v2546_v42, %s2118_s10  ;;  %v565_v1 = vpop.permute.xlu1 %564 }
  0x90   : > { %824 = vrot.lane.b32.xlu0 %v2550_v17, %s2118_s10  ;;  %v553_v26 = vpop.permute.xlu0 %552 }
  0x93   : > { %838 = vrot.lane.b32.xlu1 %v2575_v44, %s2118_s10 }
  0x94   : > { %826 = vrot.lane.b32.xlu0 %v3175_v61, %s2118_s10 }
  0x95   : > { %v523_v46 = vpop.permute.xlu1 %522 }
  0x96   : > { %v511_v52 = vpop.permute.xlu0 %510 }
  0x97   : > { %873 = vrot.lane.b32.xlu1 %v3176_v35, %s2119_s20 }
  0x98   : > { %861 = vrot.lane.b32.xlu0 %v3177_v47, %s2119_s20 }
  0x99   : > { %v2764_v42 = vpop.permute.xlu1 %524 }
  0x9a   : > { %v2766_v34 = vpop.permute.xlu0 %512 }
  0x9b   : > { %477 = vrot.lane.b32.xlu1 %v2455_v45, %s2114_s29 }
  0x9c   : > { %465 = vrot.lane.b32.xlu0 %v2561_v11, %s2114_s29 }
  0x9d   : > { %v2772_v44 = vpop.permute.xlu1 %459 }
  0x9e   : > { %v458_v6 = vpop.permute.xlu0 %457  ;;  %v885_v53 = vsel %vm881_vm3, %v3183_v41, %v2772_v44 }
  0x9f   : > { %875 = vrot.lane.b32.xlu1 %v2567_v51, %s2119_s20  ;;  %v883_v56 = vsel %vm881_vm3, %v3181_v12, %v458_v6 }
  0xa0   : > { %863 = vrot.lane.b32.xlu0 %v3178_v29, %s2119_s20 }
  0xa1   : > { %v2778_v59 = vpop.permute.xlu1 %471 }
  0xa2   : > { %v470_v57 = vpop.permute.xlu0 %469 }
  0xa3   : > { %479 = vrot.lane.b32.xlu1 %v2580_v36, %s2114_s29 }
  0xa4   : > { %467 = vrot.lane.b32.xlu0 %v2550_v17, %s2114_s29 }
  0xa5   : > { %v2784_v45 = vpop.permute.xlu1 %566 }
  0xa6   : > { %v2786_v11 = vpop.permute.xlu0 %554 }
  0xa7   : > { %530 = vrot.lane.b32.xlu1 %v507_v21, %s2113_s28 }
  0xa8   : > { %518 = vrot.lane.b32.xlu0 %v495_v32, %s2113_s28 }
  0xa9   : > { %v692_v51 = vpop.permute.xlu1 %691 }
  0xaa   : > { %v680_v24 = vpop.permute.xlu0 %679 }
  0xab   : > { %532 = vrot.lane.b32.xlu1 %v2591_v58, %s2113_s28  ;;  %v3180_v58 = vld [vmem:[#allocation18_spill] sm:$0xff] }
  0xac   : > { %520 = vrot.lane.b32.xlu0 %v3177_v47, %s2113_s28  ;;  %v910_v47 = vsel %vm906_vm4, %v885_v53, %v2766_v34  ;;  %s3017_s28 = scalar_lea.vmem %s3108_s3, %s1711_s26 }
  0xad   : > { %v2794_v36 = vpop.permute.xlu1 %693  ;;  %v935_v6 = vsel %vm931_vm5, %v910_v47, %v2786_v11 }
  0xae   : > { %v2796_v18 = vpop.permute.xlu0 %681 }
  0xaf   : > { %572 = vrot.lane.b32.xlu1 %v2440_v25, %s2112_s27 }
  0xb0   : > { %560 = vrot.lane.b32.xlu0 %v2444_v40, %s2112_s27 }
  0xb1   : > { %v744_v17 = vpop.permute.xlu1 %743 }
  0xb2   : > { %v732_v7 = vpop.permute.xlu0 %731 }
  0xb3   : > { %574 = vrot.lane.b32.xlu1 %v3179_v19, %s2112_s27 }
  0xb4   : > { %562 = vrot.lane.b32.xlu0 %v3180_v58, %s2112_s27 }
  0xb5   : > { %v746_v21 = vpop.permute.xlu1 %745 }
  0xb6   : > { %v734_v9 = vpop.permute.xlu0 %733 }
  0xb7   : > { %699 = vrot.lane.b32.xlu1 %v2613_v23, %s2115_s30  ;;  %v895_v23 = vsel %vm881_vm3, %v3174_v0, %v470_v57 }
  0xb8   : > { %687 = vrot.lane.b32.xlu0 %v2631_v63, %s2115_s30  ;;  %v920_v28 = vsel %vm906_vm4, %v895_v23, %v523_v46 }
  0xb9   : > { %v777_v25 = vpop.permute.xlu1 %776 }
  0xba   : > { %v765_v32 = vpop.permute.xlu0 %764 }
  0xbb   : > { %701 = vrot.lane.b32.xlu1 %v2639_v14, %s2115_s30 }
  0xbc   : > { %689 = vrot.lane.b32.xlu0 %v2648_v15, %s2115_s30  ;;  %v908_v15 = vsel %vm906_vm4, %v883_v56, %v511_v52  ;;  %v3184_v52 = vld [vmem:[#allocation2_spill] sm:$0xff] }
  0xbd   : > { %v779_v40 = vpop.permute.xlu1 %778  ;;  %v933_v31 = vsel %vm931_vm5, %v908_v15, %v553_v26 }
  0xbe   : > { %v767_v37 = vpop.permute.xlu0 %766  ;;  %v958_v33 = vsel %vm956_vm6, %v933_v31, %v680_v24 }
  0xbf   : > { %751 = vrot.lane.b32.xlu1 %v2618_v50, %s2116_s4  ;;  %v945_v50 = vsel %vm931_vm5, %v920_v28, %v565_v1 }
  0xc0   : > { %739 = vrot.lane.b32.xlu0 %v2623_v38, %s2116_s4  ;;  %v970_v16 = vsel %vm956_vm6, %v945_v50, %v692_v51 }
  0xc1   : > { %v833_v63 = vpop.permute.xlu1 %832  ;;  %v995_v43 = vsel %vm981_vm7, %v970_v16, %v744_v17 }
  0xc2   : > { %v821_v14 = vpop.permute.xlu0 %820  ;;  %v1020_v49 = vsel %vm1006_vm8, %v995_v43, %v777_v25  ;;  %v3187_v43 = vld [vmem:[#allocation4_spill] sm:$0xff] }
  0xc3   : > { %753 = vrot.lane.b32.xlu1 %v2634_v5, %s2116_s4  ;;  %v983_v5 = vsel %vm981_vm7, %v958_v33, %v732_v7  ;;  %v1045_v0 = vsel %vm1031_vm9, %v1020_v49, %v833_v63 }
  0xc4   : > { %741 = vrot.lane.b32.xlu0 %v2644_v48, %s2116_s4  ;;  %v3182_v48 = vld [vmem:[#allocation3_spill] sm:$0xff]  ;;  %v1008_v13 = vsel %vm1006_vm8, %v983_v5, %v765_v32 }
  0xc5   : > { %v835_v38 = vpop.permute.xlu1 %834  ;;  %v897_v4 = vsel %vm881_vm3, %v3182_v48, %v2778_v59 }
  0xc6   : > { %v823_v8 = vpop.permute.xlu0 %822  ;;  %v922_v35 = vsel %vm906_vm4, %v897_v4, %v2764_v42  ;;  %v960_v42 = vsel %vm956_vm6, %v935_v6, %v2796_v18 }
  0xc7   : > { %784 = vrot.lane.b32.xlu1 %v2512_v2, %s2117_s7  ;;  %v1033_v2 = vsel %vm1031_vm9, %v1008_v13, %v821_v14  ;;  %v947_v44 = vsel %vm931_vm5, %v922_v35, %v2784_v45  ;;  %v985_v57 = vsel %vm981_vm7, %v960_v42, %v734_v9  ;;  %v3185_v45 = vld [vmem:[#allocation10_spill] sm:$0xff] }
  0xc8   : > { %772 = vrot.lane.b32.xlu0 %v3182_v48, %s2117_s7  ;;  %v972_v59 = vsel %vm956_vm6, %v947_v44, %v2794_v36  ;;  %v1010_v51 = vsel %vm1006_vm8, %v985_v57, %v767_v37 }
  0xc9   : > { %v870_v1 = vpop.permute.xlu1 %869  ;;  %v997_v34 = vsel %vm981_vm7, %v972_v59, %v746_v21  ;;  %v1035_v36 = vsel %vm1031_vm9, %v1010_v51, %v823_v8  ;;  %v3186_v21 = vld [vmem:[#allocation8_spill] sm:$0xff] }
  0xca   : > { %v858_v26 = vpop.permute.xlu0 %857  ;;  %v1070_v46 = vsel %vm1056_vm10, %v1045_v0, %v870_v1  ;;  %v1022_v11 = vsel %vm1006_vm8, %v997_v34, %v779_v40 }
  0xcb   : > { %v1058_v61 = vsel %vm1056_vm10, %v1033_v2, %v858_v26  ;;  %786 = vrot.lane.b32.xlu1 %v2606_v22, %s2117_s7  ;;  %1868 = vmatprep.mubr.msk.bf16.mxu1 %vm1108_vm11, %v1070_v46  ;;  %v1047_v24 = vsel %vm1031_vm9, %v1022_v11, %v835_v38 }
  0xcc   : > { %774 = vrot.lane.b32.xlu0 %v3184_v52, %s2117_s7  ;;  %1856 = vmatprep.mubr.msk.bf16.mxu0 %vm1108_vm11, %v1058_v61 }
  0xcd   : > { %v474_v22 = vpop.permute.xlu1 %473 }
  0xce   : > { %v462_v29 = vpop.permute.xlu0 %461  ;;  %v899_v33 = vsel %vm881_vm3, %v3184_v52, %v474_v22 }
  0xcf   : > { %840 = vrot.lane.b32.xlu1 %v2670_v55, %s2118_s10  ;;  %v887_v5 = vsel %vm881_vm3, %v3187_v43, %v462_v29  ;;  %v3188_v29 = vld [vmem:[#allocation12_spill] sm:$0xff] }
  0xd0   : > { %828 = vrot.lane.b32.xlu0 %v3185_v45, %s2118_s10 }
  0xd1   : > { %v872_v17 = vpop.permute.xlu1 %871 }
  0xd2   : > { %v860_v18 = vpop.permute.xlu0 %859  ;;  %v1072_v7 = vsel %vm1056_vm10, %v1047_v24, %v872_v17 }
  0xd3   : > { %v1060_v19 = vsel %vm1056_vm10, %v1035_v36, %v860_v18  ;;  %842 = vrot.lane.b32.xlu1 %v2676_v3, %s2118_s10  ;;  %1869 = vmatmul.mubr.msk.bf16.vlgmr.msra.gmra.mrb[0].mxu1 %vm1108_vm11, %v1072_v7 }
  0xd4   : > { %830 = vrot.lane.b32.xlu0 %v2660_v20, %s2118_s10  ;;  %1857 = vmatmul.mubr.msk.bf16.vlgmr.msra.gmra.mrb[0].mxu0 %vm1108_vm11, %v1060_v19 }
  0xd5   : > { %v476_v55 = vpop.permute.xlu1 %475 }
  0xd6   : > { %v464_v58 = vpop.permute.xlu0 %463  ;;  %v901_v59 = vsel %vm881_vm3, %v3188_v29, %v476_v55 }
  0xd7   : > { %877 = vrot.lane.b32.xlu1 %v2667_v60, %s2119_s20  ;;  %v889_v42 = vsel %vm881_vm3, %v2321_v27, %v464_v58 }
  0xd8   : > { %865 = vrot.lane.b32.xlu0 %v3186_v21, %s2119_s20 }
  0xd9   : > { %v527_v9 = vpop.permute.xlu1 %526 }
  0xda   : > { %v515_v25 = vpop.permute.xlu0 %514  ;;  %v924_v48 = vsel %vm906_vm4, %v899_v33, %v527_v9 }
  0xdb   : > { %879 = vrot.lane.b32.xlu1 %v2679_v62, %s2119_s20  ;;  %v912_v49 = vsel %vm906_vm4, %v887_v5, %v515_v25 }
  0xdc   : > { %867 = vrot.lane.b32.xlu0 %v2402_v54, %s2119_s20 }
  0xdd   : > { %v529_v20 = vpop.permute.xlu1 %528 }
  0xde   : > { %v517_v3 = vpop.permute.xlu0 %516  ;;  %v926_v34 = vsel %vm906_vm4, %v901_v59, %v529_v20 }
  0xdf   : > { %v914_v57 = vsel %vm906_vm4, %v889_v42, %v517_v3 }
  0xe1   : > { %v569_v32 = vpop.permute.xlu1 %568 }
  0xe2   : > { %v557_v40 = vpop.permute.xlu0 %556  ;;  %v949_v13 = vsel %vm931_vm5, %v924_v48, %v569_v32 }
  0xe3   : > { %v937_v41 = vsel %vm931_vm5, %v912_v49, %v557_v40 }
  0xe5   : > { %v571_v37 = vpop.permute.xlu1 %570 }
  0xe6   : > { %v559_v12 = vpop.permute.xlu0 %558  ;;  %v951_v45 = vsel %vm931_vm5, %v926_v34, %v571_v37 }
  0xe7   : > { %v939_v11 = vsel %vm931_vm5, %v914_v57, %v559_v12 }
  0xe9   : > { %v696_v56 = vpop.permute.xlu1 %695 }
  0xea   : > { %v684_v23 = vpop.permute.xlu0 %683  ;;  %v974_v0 = vsel %vm956_vm6, %v949_v13, %v696_v56 }
  0xeb   : > { %v962_v2 = vsel %vm956_vm6, %v937_v41, %v684_v23  ;;  %v3189_v41 = vld [vmem:[#allocation13_spill] sm:$0xff] }
  0xed   : > { %v698_v60 = vpop.permute.xlu1 %697 }
  0xee   : > { %v686_v63 = vpop.permute.xlu0 %685  ;;  %v976_v36 = vsel %vm956_vm6, %v951_v45, %v698_v60 }
  0xef   : > { %v964_v17 = vsel %vm956_vm6, %v939_v11, %v686_v63 }
  0xf1   : > { %v748_v14 = vpop.permute.xlu1 %747 }
  0xf2   : > { %v736_v15 = vpop.permute.xlu0 %735  ;;  %v999_v1 = vsel %vm981_vm7, %v974_v0, %v748_v14 }
  0xf3   : > { %v987_v26 = vsel %vm981_vm7, %v962_v2, %v736_v15 }
  0xf5   : > { %v750_v28 = vpop.permute.xlu1 %749 }
  0xf6   : > { %v738_v50 = vpop.permute.xlu0 %737  ;;  %v1001_v27 = vsel %vm981_vm7, %v976_v36, %v750_v28 }
  0xf7   : > { %v989_v18 = vsel %vm981_vm7, %v964_v17, %v738_v50 }
  0xf9   : > { %v781_v31 = vpop.permute.xlu1 %780 }
  0xfa   : > { %v769_v38 = vpop.permute.xlu0 %768  ;;  %v1024_v61 = vsel %vm1006_vm8, %v999_v1, %v781_v31 }
  0xfb   : > { %v1012_v46 = vsel %vm1006_vm8, %v987_v26, %v769_v38 }
  0xfd   : > { %v783_v62 = vpop.permute.xlu1 %782 }
  0xfe   : > { %v771_v8 = vpop.permute.xlu0 %770  ;;  %v1026_v7 = vsel %vm1006_vm8, %v1001_v27, %v783_v62 }
  0xff   : > { %v1014_v19 = vsel %vm1006_vm8, %v989_v18, %v771_v8 }
 0x101   : > { %v837_v16 = vpop.permute.xlu1 %836 }
 0x102   : > { %v825_v54 = vpop.permute.xlu0 %824  ;;  %v1049_v52 = vsel %vm1031_vm9, %v1024_v61, %v837_v16 }
 0x103   : > { %v1037_v35 = vsel %vm1031_vm9, %v1012_v46, %v825_v54 }
 0x105   : > { %v839_v53 = vpop.permute.xlu1 %838 }
 0x106   : > { %v827_v4 = vpop.permute.xlu0 %826  ;;  %v1051_v55 = vsel %vm1031_vm9, %v1026_v7, %v839_v53 }
 0x107   : > { %v1039_v58 = vsel %vm1031_vm9, %v1014_v19, %v827_v4 }
 0x109   : > { %v874_v47 = vpop.permute.xlu1 %873 }
 0x10a   : > { %v862_v44 = vpop.permute.xlu0 %861  ;;  %v1074_v6 = vsel %vm1056_vm10, %v1049_v52, %v874_v47 }
 0x10b   : > { %v1062_v22 = vsel %vm1056_vm10, %v1037_v35, %v862_v44  ;;  %1872 = vmatprep.mubr.msk.bf16.mxu1 %vm1108_vm11, %v1074_v6 }
 0x10c   : > { %1860 = vmatprep.mubr.msk.bf16.mxu0 %vm1108_vm11, %v1062_v22 }
 0x10d   : > { %v478_v51 = vpop.permute.xlu1 %477 }
 0x10e   : > { %v466_v24 = vpop.permute.xlu0 %465  ;;  %v903_v13 = vsel %vm881_vm3, %v2336_v39, %v478_v51 }
 0x10f   : > { %v891_v53 = vsel %vm881_vm3, %v3189_v41, %v466_v24 }
 0x111   : > { %v876_v21 = vpop.permute.xlu1 %875 }
 0x112   : > { %v864_v9 = vpop.permute.xlu0 %863  ;;  %v1076_v25 = vsel %vm1056_vm10, %v1051_v55, %v876_v21 }
 0x113   : > { %v1064_v20 = vsel %vm1056_vm10, %v1039_v58, %v864_v9  ;;  %1873 = vmatmul.mubr.msk.bf16.gmra.mrb[4].mxu1 %vm1108_vm11, %v1076_v25 }
 0x114   : > { %1861 = vmatmul.mubr.msk.bf16.gmra.mrb[4].mxu0 %vm1108_vm11, %v1064_v20  ;;  %v2977_v20 = vld [vmem:[%s3107_s2] ss:$0 sm:$0xff] }
 0x115   : > { %v480_v3 = vpop.permute.xlu1 %479 }
 0x116   : > { %v468_v32 = vpop.permute.xlu0 %467  ;;  %v905_v39 = vsel %vm881_vm3, %v3173_v30, %v480_v3 }
 0x117   : > { %v893_v35 = vsel %vm881_vm3, %v2379_v10, %v468_v32 }
 0x119   : > { %v531_v40 = vpop.permute.xlu1 %530 }
 0x11a   : > { %v519_v37 = vpop.permute.xlu0 %518  ;;  %v928_v4 = vsel %vm906_vm4, %v903_v13, %v531_v40 }
 0x11b   : > { %v916_v0 = vsel %vm906_vm4, %v891_v53, %v519_v37 }
 0x11d   : > { %v533_v12 = vpop.permute.xlu1 %532 }
 0x11e   : > { %v521_v56 = vpop.permute.xlu0 %520  ;;  %v930_v6 = vsel %vm906_vm4, %v905_v39, %v533_v12 }
 0x11f   : > { %v918_v22 = vsel %vm906_vm4, %v893_v35, %v521_v56 }
 0x121   : > { %v573_v23 = vpop.permute.xlu1 %572 }
 0x122   : > { %v561_v60 = vpop.permute.xlu0 %560  ;;  %v953_v2 = vsel %vm931_vm5, %v928_v4, %v573_v23 }
 0x123   : > { %v941_v1 = vsel %vm931_vm5, %v916_v0, %v561_v60 }
 0x125   : > { %v575_v63 = vpop.permute.xlu1 %574 }
 0x126   : > { %v563_v14 = vpop.permute.xlu0 %562  ;;  %v955_v42 = vsel %vm931_vm5, %v930_v6, %v575_v63 }
 0x127   : > { %v943_v34 = vsel %vm931_vm5, %v918_v22, %v563_v14 }
 0x129   : > { %v700_v15 = vpop.permute.xlu1 %699 }
 0x12a   : > { %v688_v28 = vpop.permute.xlu0 %687  ;;  %v978_v46 = vsel %vm956_vm6, %v953_v2, %v700_v15 }
 0x12b   : > { %v966_v52 = vsel %vm956_vm6, %v941_v1, %v688_v28 }
 0x12d   : > { %v702_v50 = vpop.permute.xlu1 %701 }
 0x12e   : > { %v690_v31 = vpop.permute.xlu0 %689  ;;  %v980_v11 = vsel %vm956_vm6, %v955_v42, %v702_v50 }
 0x12f   : > { %v968_v51 = vsel %vm956_vm6, %v943_v34, %v690_v31 }
 0x131   : > { %v752_v38 = vpop.permute.xlu1 %751 }
 0x132   : > { %v740_v62 = vpop.permute.xlu0 %739  ;;  %v1003_v47 = vsel %vm981_vm7, %v978_v46, %v752_v38 }
 0x133   : > { %v991_v44 = vsel %vm981_vm7, %v966_v52, %v740_v62 }
 0x135   : > { %v754_v8 = vpop.permute.xlu1 %753 }
 0x136   : > { %v742_v16 = vpop.permute.xlu0 %741  ;;  %v1005_v17 = vsel %vm981_vm7, %v980_v11, %v754_v8 }
 0x137   : > { %v993_v27 = vsel %vm981_vm7, %v968_v51, %v742_v16 }
 0x139   : > { %v785_v54 = vpop.permute.xlu1 %784 }
 0x13a   : > { %v773_v33 = vpop.permute.xlu0 %772  ;;  %v1028_v29 = vsel %vm1006_vm8, %v1003_v47, %v785_v54 }
 0x13b   : > { %v1016_v59 = vsel %vm1006_vm8, %v991_v44, %v773_v33 }
 0x13d   : > { %v787_v43 = vpop.permute.xlu1 %786 }
 0x13e   : > { %v775_v5 = vpop.permute.xlu0 %774  ;;  %v1030_v18 = vsel %vm1006_vm8, %v1005_v17, %v787_v43 }
 0x13f   : > { %v1018_v7 = vsel %vm1006_vm8, %v993_v27, %v775_v5 }
 0x141   : > { %v841_v48 = vpop.permute.xlu1 %840 }
 0x142   : > { %v829_v49 = vpop.permute.xlu0 %828  ;;  %v1053_v30 = vsel %vm1031_vm9, %v1028_v29, %v841_v48 }
 0x143   : > { %v1041_v10 = vsel %vm1031_vm9, %v1016_v59, %v829_v49 }
 0x145   : > { %v843_v26 = vpop.permute.xlu1 %842 }
 0x146   : > { %v831_v61 = vpop.permute.xlu0 %830  ;;  %v1055_v19 = vsel %vm1031_vm9, %v1030_v18, %v843_v26 }
 0x147   : > { %v1043_v55 = vsel %vm1031_vm9, %v1018_v7, %v831_v61 }
 0x149   : > { %v878_v57 = vpop.permute.xlu1 %877 }
 0x14a   : > { %v866_v45 = vpop.permute.xlu0 %865  ;;  %v1078_v24 = vsel %vm1056_vm10, %v1053_v30, %v878_v57 }
 0x14b   : > { %v1066_v36 = vsel %vm1056_vm10, %v1041_v10, %v866_v45  ;;  %1876 = vmatprep.mubr.msk.bf16.mxu1 %vm1108_vm11, %v1078_v24 }
 0x14c   : > { %1864 = vmatprep.mubr.msk.bf16.mxu0 %vm1108_vm11, %v1066_v36 }
 0x14d   : > { %v880_v58 = vpop.permute.xlu1 %879 }
 0x14e   : > { %v868_v21 = vpop.permute.xlu0 %867  ;;  %v1080_v9 = vsel %vm1056_vm10, %v1055_v19, %v880_v58 }
 0x14f   : > { %v1068_v25 = vsel %vm1056_vm10, %v1043_v55, %v868_v21  ;;  %1877 = vmatmul.mubr.msk.bf16.gmra.mrb[8].mxu1 %vm1108_vm11, %v1080_v9 }
 0x150   : > { %1865 = vmatmul.mubr.msk.bf16.gmra.mrb[8].mxu0 %vm1108_vm11, %v1068_v25 }
 0x1a6   : > { %v1870_v32 = vpop.f32.mrb[0].mxu1 }
 0x1a7   : > { %v1858_v3 = vpop.f32.mrb[0].mxu0  ;;  %v2983_v37 = vadd.f32 %v1870_v32, %v2977_v20  ;;  %v1219_v56 = vpop.f32.mrb[1].mxu1 }
 0x1a8   : > { %v2980_v40 = vadd.f32 %v1858_v3, %v2977_v20  ;;  %v1171_v12 = vpop.f32.mrb[1].mxu0  ;;  %v2989_v60 = vadd.f32 %v2977_v20, %v1219_v56  ;;  %v1871_v14 = vpop.f32.mrb[2].mxu1 }
 0x1a9   : > { %v2986_v23 = vadd.f32 %v2977_v20, %v1171_v12  ;;  %v1859_v63 = vpop.f32.mrb[2].mxu0  ;;  %v1775_v28 = vmul.f32 -1.442695, %v2983_v37  ;;  %v2997_v31 = vadd.f32 %v1871_v14, %v2977_v20  ;;  %v1222_v62 = vpop.f32.mrb[3].mxu1 }
 0x1aa   : > { %v1763_v15 = vmul.f32 -1.442695, %v2980_v40  ;;  %v2994_v50 = vadd.f32 %v1859_v63, %v2977_v20  ;;  %v1174_v38 = vpop.f32.mrb[3].mxu0  ;;  %v1773_v16 = vmul.f32 -1.442695, %v2989_v60  ;;  %v3005_v33 = vadd.f32 %v2977_v20, %v1222_v62 }
 0x1ab   : > { %v1761_v8 = vmul.f32 -1.442695, %v2986_v23  ;;  %v3002_v54 = vadd.f32 %v2977_v20, %v1174_v38  ;;  %v1776_v5 = vmul.f32 -1.442695, %v2997_v31 }
 0x1ac   : > { %1976 = vpow2.f32 %v1763_v15  ;;  %v1764_v43 = vmul.f32 -1.442695, %v2994_v50  ;;  %v1774_v49 = vmul.f32 -1.442695, %v3005_v33 }
 0x1ad   : > { %1978 = vpow2.f32 %v1775_v28  ;;  %v1762_v48 = vmul.f32 -1.442695, %v3002_v54 }
 0x1ae   : > { %1980 = vpow2.f32 %v1761_v8 }
 0x1af   : > { %1982 = vpow2.f32 %v1773_v16 }
 0x1b0   : > { %1984 = vpow2.f32 %v1764_v43 }
 0x1b1   : > { %1986 = vpow2.f32 %v1776_v5 }
 0x1b2   : > { %1988 = vpow2.f32 %v1762_v48 }
 0x1b3   : > { %1990 = vpow2.f32 %v1774_v49 }
 0x1b6   : > { %v1977_v13 = vpop.eup %1976 }
 0x1b7   : > { %v1979_v41 = vpop.eup %1978  ;;  %v1340_v53 = vadd.f32 1.0, %v1977_v13 }
 0x1b8   : > { %v1981_v4 = vpop.eup %1980  ;;  %v1352_v0 = vadd.f32 1.0, %v1979_v41 }
 0x1b9   : > { %v1983_v2 = vpop.eup %1982  ;;  %1992 = vrcp.f32 %v1340_v53  ;;  %v1338_v1 = vadd.f32 1.0, %v1981_v4 }
 0x1ba   : > { %v1985_v26 = vpop.eup %1984  ;;  %1994 = vrcp.f32 %v1352_v0  ;;  %v1350_v61 = vadd.f32 1.0, %v1983_v2 }
 0x1bb   : > { %v1987_v46 = vpop.eup %1986  ;;  %1996 = vrcp.f32 %v1338_v1  ;;  %v1341_v52 = vadd.f32 1.0, %v1985_v26 }
 0x1bc   : > { %v1989_v39 = vpop.eup %1988  ;;  %1998 = vrcp.f32 %v1350_v61  ;;  %v1353_v35 = vadd.f32 1.0, %v1987_v46 }
 0x1bd   : > { %v1991_v47 = vpop.eup %1990  ;;  %2000 = vrcp.f32 %v1341_v52  ;;  %v1339_v44 = vadd.f32 1.0, %v1989_v39 }
 0x1be   : > { %2002 = vrcp.f32 %v1353_v35  ;;  %v1351_v6 = vadd.f32 1.0, %v1991_v47 }
 0x1bf   : > { %2004 = vrcp.f32 %v1339_v44 }
 0x1c0   : > { %2006 = vrcp.f32 %v1351_v6 }
 0x1c3   : > { %v1993_v22 = vpop.eup %1992 }
 0x1c4   : > { %v1995_v29 = vpop.eup %1994  ;;  %v1412_v59 = vmul.f32 %v1993_v22, %v2980_v40 }
 0x1c5   : > { %v1997_v42 = vpop.eup %1996  ;;  %v1424_v34 = vmul.f32 %v1995_v29, %v2983_v37 }
 0x1c6   : > { %v1999_v30 = vpop.eup %1998  ;;  %v1813_v10 = vpack.c.bf16 %v1412_v59, %v1412_v59  ;;  %v1410_v57 = vmul.f32 %v1997_v42, %v2986_v23 }
 0x1c7   : > { %v2001_v45 = vpop.eup %2000  ;;  %v1825_v11 = vpack.c.bf16 %v1424_v34, %v1424_v34  ;;  %v1422_v51 = vmul.f32 %v1999_v30, %v2989_v60 }
 0x1c8   : > { %v2003_v24 = vpop.eup %2002  ;;  %1541 = vst.msk [vmem:[%s3017_s28 + $0x8] sm:$0xf] %vm1538_vm12, %v1813_v10  ;;  %v1811_v36 = vpack.c.bf16 %v1410_v57, %v1410_v57  ;;  %v1413_v17 = vmul.f32 %v2001_v45, %v2994_v50 }
 0x1c9   : > { %v2005_v27 = vpop.eup %2004  ;;  %1553 = vst.msk [vmem:[%s3017_s28 + $0x38] sm:$0xf] %vm1538_vm12, %v1825_v11  ;;  %v1823_v18 = vpack.c.bf16 %v1422_v51, %v1422_v51  ;;  %v1425_v7 = vmul.f32 %v2003_v24, %v2997_v31 }
 0x1ca   : > { %v2007_v19 = vpop.eup %2006  ;;  %1539 = vst.msk [vmem:[%s3017_s28] sm:$0xf] %vm1538_vm12, %v1811_v36  ;;  %v1814_v55 = vpack.c.bf16 %v1413_v17, %v1413_v17  ;;  %v1411_v58 = vmul.f32 %v2005_v27, %v3002_v54 }
 0x1cb   : > { %1551 = vst.msk [vmem:[%s3017_s28 + $0x30] sm:$0xf] %vm1538_vm12, %v1823_v18  ;;  %v1826_v21 = vpack.c.bf16 %v1425_v7, %v1425_v7  ;;  %v1423_v9 = vmul.f32 %v2007_v19, %v3005_v33 }
 0x1cc   : > { %1542 = vst.msk [vmem:[%s3017_s28 + $0xc] sm:$0xf] %vm1538_vm12, %v1814_v55  ;;  %v1812_v25 = vpack.c.bf16 %v1411_v58, %v1411_v58 }
 0x1cd   : > { %1554 = vst.msk [vmem:[%s3017_s28 + $0x3c] sm:$0xf] %vm1538_vm12, %v1826_v21  ;;  %v1824_v3 = vpack.c.bf16 %v1423_v9, %v1423_v9 }
 0x1ce   : > { %1540 = vst.msk [vmem:[%s3017_s28 + $0x4] sm:$0xf] %vm1538_vm12, %v1812_v25 }
 0x1cf   : > { %1552 = vst.msk [vmem:[%s3017_s28 + $0x34] sm:$0xf] %vm1538_vm12, %v1824_v3 }
 0x1e6   : > { %v1874_v40 = vpop.f32.mrb[4].mxu1 }
 0x1e7   : > { %v1862_v32 = vpop.f32.mrb[4].mxu0  ;;  %v1244_v12 = vadd.f32 %v1874_v40, %v2977_v20  ;;  %v1235_v23 = vpop.f32.mrb[5].mxu1 }
 0x1e8   : > { %v1196_v37 = vadd.f32 %v1862_v32, %v2977_v20  ;;  %v1187_v56 = vpop.f32.mrb[5].mxu0  ;;  %v1236_v63 = vadd.f32 %v2977_v20, %v1235_v23  ;;  %v1875_v15 = vpop.f32.mrb[6].mxu1 }
 0x1e9   : > { %v1188_v60 = vadd.f32 %v2977_v20, %v1187_v56  ;;  %v1863_v14 = vpop.f32.mrb[6].mxu0  ;;  %v1779_v50 = vmul.f32 -1.442695, %v1244_v12  ;;  %v1247_v38 = vadd.f32 %v1875_v15, %v2977_v20  ;;  %v1238_v8 = vpop.f32.mrb[7].mxu1 }
 0x1ea   : > { %v1767_v28 = vmul.f32 -1.442695, %v1196_v37  ;;  %v1199_v31 = vadd.f32 %v1863_v14, %v2977_v20  ;;  %v1190_v62 = vpop.f32.mrb[7].mxu0  ;;  %v1777_v54 = vmul.f32 -1.442695, %v1236_v63  ;;  %v1239_v43 = vadd.f32 %v2977_v20, %v1238_v8 }
 0x1eb   : > { %v1765_v16 = vmul.f32 -1.442695, %v1188_v60  ;;  %v1191_v33 = vadd.f32 %v2977_v20, %v1190_v62  ;;  %v1780_v48 = vmul.f32 -1.442695, %v1247_v38 }
 0x1ec   : > { %2008 = vpow2.f32 %v1767_v28  ;;  %v1768_v5 = vmul.f32 -1.442695, %v1199_v31  ;;  %v1778_v13 = vmul.f32 -1.442695, %v1239_v43 }
 0x1ed   : > { %2010 = vpow2.f32 %v1779_v50  ;;  %v1766_v49 = vmul.f32 -1.442695, %v1191_v33 }
 0x1ee   : > { %2012 = vpow2.f32 %v1765_v16 }
 0x1ef   : > { %2014 = vpow2.f32 %v1777_v54 }
 0x1f0   : > { %2016 = vpow2.f32 %v1768_v5 }
 0x1f1   : > { %2018 = vpow2.f32 %v1780_v48 }
 0x1f2   : > { %2020 = vpow2.f32 %v1766_v49 }
 0x1f3   : > { %2022 = vpow2.f32 %v1778_v13 }
 0x1f6   : > { %v2009_v41 = vpop.eup %2008 }
 0x1f7   : > { %v2011_v53 = vpop.eup %2010  ;;  %v1344_v4 = vadd.f32 1.0, %v2009_v41 }
 0x1f8   : > { %v2013_v0 = vpop.eup %2012  ;;  %v1356_v2 = vadd.f32 1.0, %v2011_v53 }
 0x1f9   : > { %v2015_v1 = vpop.eup %2014  ;;  %2024 = vrcp.f32 %v1344_v4  ;;  %v1342_v26 = vadd.f32 1.0, %v2013_v0 }
 0x1fa   : > { %v2017_v61 = vpop.eup %2016  ;;  %2026 = vrcp.f32 %v1356_v2  ;;  %v1354_v46 = vadd.f32 1.0, %v2015_v1 }
 0x1fb   : > { %v2019_v52 = vpop.eup %2018  ;;  %2028 = vrcp.f32 %v1342_v26  ;;  %v1345_v39 = vadd.f32 1.0, %v2017_v61 }
 0x1fc   : > { %v2021_v35 = vpop.eup %2020  ;;  %2030 = vrcp.f32 %v1354_v46  ;;  %v1357_v47 = vadd.f32 1.0, %v2019_v52 }
 0x1fd   : > { %v2023_v44 = vpop.eup %2022  ;;  %2032 = vrcp.f32 %v1345_v39  ;;  %v1343_v6 = vadd.f32 1.0, %v2021_v35 }
 0x1fe   : > { %2034 = vrcp.f32 %v1357_v47  ;;  %v1355_v22 = vadd.f32 1.0, %v2023_v44 }
 0x1ff   : > { %2036 = vrcp.f32 %v1343_v6 }
 0x200   : > { %2038 = vrcp.f32 %v1355_v22 }
 0x203   : > { %v2025_v29 = vpop.eup %2024 }
 0x204   : > { %v2027_v59 = vpop.eup %2026  ;;  %v1416_v42 = vmul.f32 %v2025_v29, %v1196_v37 }
 0x205   : > { %v2029_v34 = vpop.eup %2028  ;;  %v1428_v30 = vmul.f32 %v2027_v59, %v1244_v12 }
 0x206   : > { %v2031_v10 = vpop.eup %2030  ;;  %v1817_v57 = vpack.c.bf16 %v1416_v42, %v1416_v42  ;;  %v1414_v45 = vmul.f32 %v2029_v34, %v1188_v60 }
 0x207   : > { %v2033_v11 = vpop.eup %2032  ;;  %v1829_v51 = vpack.c.bf16 %v1428_v30, %v1428_v30  ;;  %v1426_v24 = vmul.f32 %v2031_v10, %v1236_v63 }
 0x208   : > { %v2035_v36 = vpop.eup %2034  ;;  %1545 = vst.msk [vmem:[%s3017_s28 + $0x18] sm:$0xf] %vm1538_vm12, %v1817_v57  ;;  %v1815_v17 = vpack.c.bf16 %v1414_v45, %v1414_v45  ;;  %v1417_v27 = vmul.f32 %v2033_v11, %v1199_v31 }
 0x209   : > { %v2037_v18 = vpop.eup %2036  ;;  %1557 = vst.msk [vmem:[%s3017_s28 + $0x48] sm:$0xf] %vm1538_vm12, %v1829_v51  ;;  %v1827_v7 = vpack.c.bf16 %v1426_v24, %v1426_v24  ;;  %v1429_v19 = vmul.f32 %v2035_v36, %v1247_v38 }
 0x20a   : > { %v2039_v55 = vpop.eup %2038  ;;  %1543 = vst.msk [vmem:[%s3017_s28 + $0x10] sm:$0xf] %vm1538_vm12, %v1815_v17  ;;  %v1818_v58 = vpack.c.bf16 %v1417_v27, %v1417_v27  ;;  %v1415_v21 = vmul.f32 %v2037_v18, %v1191_v33 }
 0x20b   : > { %1555 = vst.msk [vmem:[%s3017_s28 + $0x40] sm:$0xf] %vm1538_vm12, %v1827_v7  ;;  %v1830_v9 = vpack.c.bf16 %v1429_v19, %v1429_v19  ;;  %v1427_v25 = vmul.f32 %v2039_v55, %v1239_v43 }
 0x20c   : > { %1546 = vst.msk [vmem:[%s3017_s28 + $0x1c] sm:$0xf] %vm1538_vm12, %v1818_v58  ;;  %v1816_v3 = vpack.c.bf16 %v1415_v21, %v1415_v21 }
 0x20d   : > { %1558 = vst.msk [vmem:[%s3017_s28 + $0x4c] sm:$0xf] %vm1538_vm12, %v1830_v9  ;;  %v1828_v32 = vpack.c.bf16 %v1427_v25, %v1427_v25 }
 0x20e   : > { %1544 = vst.msk [vmem:[%s3017_s28 + $0x14] sm:$0xf] %vm1538_vm12, %v1816_v3 }
 0x20f   : > { %1556 = vst.msk [vmem:[%s3017_s28 + $0x44] sm:$0xf] %vm1538_vm12, %v1828_v32 }
 0x222   : > { %v1878_v37 = vpop.f32.mrb[8].mxu1 }
 0x223   : > { %v1866_v40 = vpop.f32.mrb[8].mxu0  ;;  %v1260_v56 = vadd.f32 %v1878_v37, %v2977_v20  ;;  %v1251_v60 = vpop.f32.mrb[9].mxu1 }
 0x224   : > { %v1212_v12 = vadd.f32 %v1866_v40, %v2977_v20  ;;  %v1203_v23 = vpop.f32.mrb[9].mxu0  ;;  %v1252_v14 = vadd.f32 %v2977_v20, %v1251_v60  ;;  %v1879_v28 = vpop.f32.mrb[10].mxu1 }
 0x225   : > { %v1204_v63 = vadd.f32 %v2977_v20, %v1203_v23  ;;  %v1867_v15 = vpop.f32.mrb[10].mxu0  ;;  %v1783_v31 = vmul.f32 -1.442695, %v1260_v56  ;;  %v1263_v62 = vadd.f32 %v1879_v28, %v2977_v20  ;;  %v1254_v16 = vpop.f32.mrb[11].mxu1 }
 0x226   : > { %v1771_v50 = vmul.f32 -1.442695, %v1212_v12  ;;  %v1215_v38 = vadd.f32 %v1867_v15, %v2977_v20  ;;  %v1206_v8 = vpop.f32.mrb[11].mxu0  ;;  %v1781_v33 = vmul.f32 -1.442695, %v1252_v14  ;;  %v1255_v5 = vadd.f32 %v2977_v20, %v1254_v16 }
 0x227   : > { %v1769_v54 = vmul.f32 -1.442695, %v1204_v63  ;;  %v1207_v43 = vadd.f32 %v2977_v20, %v1206_v8  ;;  %v1784_v49 = vmul.f32 -1.442695, %v1263_v62 }
 0x228   : > { %2040 = vpow2.f32 %v1771_v50  ;;  %v1772_v48 = vmul.f32 -1.442695, %v1215_v38  ;;  %v1782_v41 = vmul.f32 -1.442695, %v1255_v5 }
 0x229   : > { %2042 = vpow2.f32 %v1783_v31  ;;  %v1770_v13 = vmul.f32 -1.442695, %v1207_v43 }
 0x22a   : > { %2044 = vpow2.f32 %v1769_v54 }
 0x22b   : > { %2046 = vpow2.f32 %v1781_v33 }
 0x22c   : > { %2048 = vpow2.f32 %v1772_v48 }
 0x22d   : > { %2050 = vpow2.f32 %v1784_v49 }
 0x22e   : > { %2052 = vpow2.f32 %v1770_v13 }
 0x22f   : > { %2054 = vpow2.f32 %v1782_v41 }
 0x232   : > { %v2041_v53 = vpop.eup %2040 }
 0x233   : > { %v2043_v4 = vpop.eup %2042  ;;  %v1348_v0 = vadd.f32 1.0, %v2041_v53 }
 0x234   : > { %v2045_v2 = vpop.eup %2044  ;;  %v1360_v1 = vadd.f32 1.0, %v2043_v4 }
 0x235   : > { %v2047_v26 = vpop.eup %2046  ;;  %2056 = vrcp.f32 %v1348_v0  ;;  %v1346_v20 = vadd.f32 1.0, %v2045_v2 }
 0x236   : > { %v2049_v61 = vpop.eup %2048  ;;  %2058 = vrcp.f32 %v1360_v1  ;;  %v1358_v46 = vadd.f32 1.0, %v2047_v26 }
 0x237   : > { %v2051_v52 = vpop.eup %2050  ;;  %2060 = vrcp.f32 %v1346_v20  ;;  %v1349_v39 = vadd.f32 1.0, %v2049_v61 }
 0x238   : > { %v2053_v35 = vpop.eup %2052  ;;  %2062 = vrcp.f32 %v1358_v46  ;;  %v1361_v47 = vadd.f32 1.0, %v2051_v52 }
 0x239   : > { %v2055_v44 = vpop.eup %2054  ;;  %2064 = vrcp.f32 %v1349_v39  ;;  %v1347_v6 = vadd.f32 1.0, %v2053_v35 }
 0x23a   : > { %2066 = vrcp.f32 %v1361_v47  ;;  %v1359_v22 = vadd.f32 1.0, %v2055_v44 }
 0x23b   : > { %2068 = vrcp.f32 %v1347_v6 }
 0x23c   : > { %2070 = vrcp.f32 %v1359_v22 }
 0x23f   : > { %v2057_v29 = vpop.eup %2056 }
 0x240   : > { %v2059_v59 = vpop.eup %2058  ;;  %v1420_v42 = vmul.f32 %v2057_v29, %v1212_v12 }
 0x241   : > { %v2061_v34 = vpop.eup %2060  ;;  %v1432_v30 = vmul.f32 %v2059_v59, %v1260_v56 }
 0x242   : > { %v2063_v10 = vpop.eup %2062  ;;  %v1821_v57 = vpack.c.bf16 %v1420_v42, %v1420_v42  ;;  %v1418_v45 = vmul.f32 %v2061_v34, %v1204_v63 }
 0x243   : > { %v2065_v11 = vpop.eup %2064  ;;  %v1833_v51 = vpack.c.bf16 %v1432_v30, %v1432_v30  ;;  %v1430_v24 = vmul.f32 %v2063_v10, %v1252_v14 }
 0x244   : > { %v2067_v36 = vpop.eup %2066  ;;  %1549 = vst.msk [vmem:[%s3017_s28 + $0x28] sm:$0xf] %vm1538_vm12, %v1821_v57  ;;  %v1819_v17 = vpack.c.bf16 %v1418_v45, %v1418_v45  ;;  %v1421_v27 = vmul.f32 %v2065_v11, %v1215_v38 }
 0x245   : > { %v2069_v18 = vpop.eup %2068  ;;  %1561 = vst.msk [vmem:[%s3017_s28 + $0x58] sm:$0xf] %vm1538_vm12, %v1833_v51  ;;  %v1831_v7 = vpack.c.bf16 %v1430_v24, %v1430_v24  ;;  %v1433_v19 = vmul.f32 %v2067_v36, %v1263_v62 }
 0x246   : > { %v2071_v55 = vpop.eup %2070  ;;  %1547 = vst.msk [vmem:[%s3017_s28 + $0x20] sm:$0xf] %vm1538_vm12, %v1819_v17  ;;  %v1822_v58 = vpack.c.bf16 %v1421_v27, %v1421_v27  ;;  %v1419_v21 = vmul.f32 %v2069_v18, %v1207_v43 }
 0x247   : > { %1559 = vst.msk [vmem:[%s3017_s28 + $0x50] sm:$0xf] %vm1538_vm12, %v1831_v7  ;;  %v1834_v9 = vpack.c.bf16 %v1433_v19, %v1433_v19  ;;  %v1431_v25 = vmul.f32 %v2071_v55, %v1255_v5 }
 0x248   : > { %1550 = vst.msk [vmem:[%s3017_s28 + $0x2c] sm:$0xf] %vm1538_vm12, %v1822_v58  ;;  %v1820_v3 = vpack.c.bf16 %v1419_v21, %v1419_v21 }
 0x249   : > { %1562 = vst.msk [vmem:[%s3017_s28 + $0x5c] sm:$0xf] %vm1538_vm12, %v1834_v9  ;;  %v1832_v32 = vpack.c.bf16 %v1431_v25, %v1431_v25 }
 0x24a   : > { %1548 = vst.msk [vmem:[%s3017_s28 + $0x24] sm:$0xf] %vm1538_vm12, %v1820_v3 }
 0x24b   : > { %1560 = vst.msk [vmem:[%s3017_s28 + $0x54] sm:$0xf] %vm1538_vm12, %v1832_v32 }
 0x24c PF: > { %s13_s16 = sadd.s32 1, %s2110_s16   ;;  %s3190_s12 = smov %s2102_s14 }
 0x24d   : > { %p10_p8 = scmp.ge.s32.totalorder %s13_s16, 6   ;;  %s3191_s13 = smov %s2106_s15 }
 0x24e   : > { %s3192_s14 = smov %s3195_s17  ;;  %s3193_s15 = smov %s3199_s18 }
 0x24f   :  { %12 = sbr.rel (!%p10_p8) target bundleno = 3 (0x3), region = 68 }

// kernel: tpu_custom_call.1
= control target key start
LH: loop header
LB: loop body
LE: loop exit
PB: predicated region body
PF: predicated region fallthrough
CT: control target
= control target key end

     0   :  { %s4320_s12 = smov 0   ;;  %s4322_s13 = smov 0   ;;  %s5123_s0 = inlined_call_operand.vmem [shape: bf16[2,2,264,4], index: 0, kind: input, shape index: {}]   ;;  %s5124_s1 = inlined_call_operand.vmem [shape: bf16[9,4,8], index: 1, kind: input, shape index: {}]   ;;  %s5125_s2 = inlined_call_operand.vmem [shape: f32[1,8], index: 2, kind: input, shape index: {}]   ;;  %s5126_s3 = inlined_call_operand.vmem [shape: bf16[2,16,24,8], index: 3, kind: output, shape index: {}]  }
   0x1   :  { %s4324_s14 = smov 0   ;;  %s4326_s15 = smov 0  }
   0x2   :  { %s4328_s16 = smov 0  }
   0x3 LB: > { %s28_s17 = sadd.s32 1, %s4290_s14  ;;  %s32_s18 = sadd.s32 1, %s4294_s15  ;;  %s4298_s16 = sphi %s4328_s16, %s13_s16   ;;  %s4294_s15 = sphi %s4326_s15, %s5130_s15   ;;  %s4290_s14 = sphi %s4324_s14, %s5129_s14   ;;  %s4286_s13 = sphi %s4322_s13, %s5128_s13   ;;  %s4282_s12 = sphi %s4320_s12, %s5127_s12  }
   0x4   : > { %p30_p0 = scmp.ge.s32.totalorder %s28_s17, 2  ;;  %p3238_p1 = scmp.ge.s32.totalorder %s4298_s16, 1 }
   0x5   : > { %p183_p2 = scmp.lt.s32.totalorder %s4298_s16, 5 }
   0x6   : > { %s5132_s17 = smov (%p30_p0, %s28_s17), 0  ;;  %s5134_s18 = smov (!%p30_p0, %s32_s18), %s4294_s15 }
   0x7   : > { %p184_p3 = pnand %p3238_p1, %p183_p2  ;;  %p34_p4 = scmp.ge.s32.totalorder %s5134_s18, 2 }
   0x8   : > { %v3242_v0 = vld [vmem:[%s5124_s1 + $0x2] sm:$0x3] (!%p184_p3)  ;;  %vm486_vm0 = vcmask (!%p184_p3), 1041408   ;;  %v4358_v1 = vld [vmem:[%s5124_s1 + $0x8] sm:$0x3] (!%p184_p3)  ;;  %p226_p5 = scmp.lt.s32.totalorder (!%p184_p3), %s4286_s13, 1 }
   0x9   : > { %s5136_s18 = smov (%p34_p4, %s5134_s18), 0  ;;  %187 = sbr.rel (%p184_p3) target bundleno = 498 (0x1f2), region = 32 }
   0xa   : > { %4044 = vmatprep.subr.msk.bf16.mxu1 (!%p184_p3), %vm486_vm0, %v3242_v0  ;;  %4048 = vmatprep.subr.msk.bf16.mxu0 (!%p184_p3), %vm486_vm0, %v4358_v1  ;;  %v488_v2 = vsel (!%p184_p3), %vm486_vm0, %v3242_v0, 0  ;;  %v4366_v3 = vsel (!%p184_p3), %vm486_vm0, %v4358_v1, 0  ;;  %p228_p6 = scmp.lt.s32.totalorder (!%p184_p3), %s4282_s12, 1  ;;  %v281_v4 = vld [vmem:[%s5124_s1] sm:$0x3] (!%p184_p3)  ;;  %vm449_vm2 = vcmask (!%p184_p3), 31744  }
   0xb   : > { %3617 = vmatpush3.bf16.msra.mxu1 (!%p184_p3), %v488_v2  ;;  %3721 = vmatpush3.bf16.msra.mxu0 (!%p184_p3), %v4366_v3  ;;  %v3345_v5 = vld [vmem:[%s5124_s1 + $0xa] sm:$0x3] (!%p184_p3)  ;;  %vm348_vm1 = vsmask.f32 (!%p184_p3), 7424  ;;  %v644_v6 = vsel (!%p184_p3), %vm486_vm0, %v281_v4, 0  ;;  %vm781_vm3 = vcmask (!%p184_p3), 1046528  }
   0xc   : > { %4045 = vmatprep.subr.msk.bf16.mxu1 (!%p184_p3), %vm486_vm0, %v281_v4  ;;  %4050 = vmatprep.subr.msk.bf16.mxu0 (!%p184_p3), %vm486_vm0, %v3345_v5  ;;  %v1727_v12 = vsel (!%p184_p3), %vm486_vm0, %v3345_v5, 0  ;;  %v4432_v39 = vld [vmem:[%s5124_s1 + $0x4] sm:$0x3] (!%p184_p3)  ;;  %v4450_v53 = vld [vmem:[%s5124_s1 + $0xc] sm:$0x3] (!%p184_p3)  ;;  %vm3068_vm4 = vcmask (!%p184_p3), 60416  }
  0x10   : > { %s5138_s13 = smov (!%p226_p5, %s4286_s13), 1 }
  0x11   : > { %s229_s27 = scalar_select %p228_p6, %s4282_s12, 1 }
  0x12   : > { %s4055_s28 = smul.u32 66, %s5138_s13 }
  0x13   : > { %s4054_s29 = smul.u32 33, %s229_s27  ;;  %s3240_s27 = sshll.u32 %s4282_s12, 3 }
  0x14   : > { %p245_p7 = scmp.lt.s32.totalorder %s3240_s27, 15  ;;  %s4057_s12 = smul.u32 48, %s5138_s13 }
  0x15   : > { %s232_s30 = sadd.s32 %s4055_s28, %s4054_s29 }
  0x16   : > { %s3239_s4 = sshll.u32 %s232_s30, 2  ;;  %s5140_s27 = smov (!%p245_p7, %s3240_s27), 15 }
  0x17   : > { %s4385_s7 = scalar_lea.vmem %s5123_s0, %s3239_s4  ;;  %s4056_s28 = smul.u32 3, %s5140_s27 }
  0x18   : > { %v257_v7 = vld [vmem:[%s4385_s7] sm:$0xf]  ;;  %v4390_v8 = vld [vmem:[%s4385_s7 + $0x4] sm:$0xf]  ;;  %v4396_v10 = vld [vmem:[%s4385_s7 + $0x8] sm:$0xff]  }
  0x19   : > { %v4393_v9 = vcombine.low %v257_v7, %v4390_v8  ;;  %v1277_v11 = vld [vmem:[%s4385_s7 + $0xc] sm:$0xf]  ;;  %v4401_v13 = vld [vmem:[%s4385_s7 + $0x10] sm:$0xf]  ;;  %v357_v16 = vshll.u32 %v4396_v10, 16  ;;  %v361_v17 = vshrl.u32 %v4396_v10, 16  ;;  %s4980_s13 = sadd.s32 %s4057_s12, %s4056_s28 }
  0x1a   : > { %v4408_v18 = vld [vmem:[%s4385_s7 + $0x14] sm:$0xff]   ;;  %v3320_v20 = vcombine.low %v1277_v11, %v4401_v13  ;;  %v4418_v28 = vld [vmem:[%s4385_s7 + $0x1c] sm:$0xff]   ;;  %v4425_v34 = vld [vmem:[%s4385_s7 + $0x24] sm:$0xff]   ;;  %s3241_s29 = sshll.u32 %s4980_s13, 2 }
  0x1b   : > { %v350_v14 = vshrl.u32 %v4393_v9, 16  ;;  %v352_v15 = vshll.u32 %v4393_v9, 16  ;;  %v4411_v19 = vld [vmem:[%s4385_s7 + $0x10] sm:$0xff]   ;;  %v359_v22 = vrot.slane %v357_v16, 1  ;;  %v1375_v23 = vshll.u32 %v4408_v18, 16  ;;  %v4421_v32 = vld [vmem:[%s4385_s7 + $0x18] sm:$0xff]   ;;  %s5002_s5 = scalar_lea.vmem %s5126_s3, %s3241_s29 }
  0x1c   : > { %v1379_v24 = vshrl.u32 %v4408_v18, 16  ;;  %v1368_v25 = vshrl.u32 %v3320_v20, 16  ;;  %v1370_v26 = vshll.u32 %v3320_v20, 16  ;;  %v365_v27 = vshll.u32 %v4411_v19, 16  ;;  %v4440_v48 = vld [vmem:[%s4385_s7 + $0x20] sm:$0xff]   ;;  %v4445_v52 = vld [vmem:[%s4385_s7 + $0x2c] sm:$0xff]  }
  0x1d   : > { %v354_v21 = vrot.slane %v352_v15, 1  ;;  %v363_v30 = vor.u32 %v361_v17, %v359_v22  ;;  %v1377_v31 = vrot.slane %v1375_v23, 1  ;;  %v369_v33 = vshrl.u32 %v4411_v19, 16  ;;  %v4456_v58 = vld [vmem:[%s4385_s7 + $0x28] sm:$0xff]   ;;  %v4470_v5 = vld [vmem:[%s4385_s7 + $0x34] sm:$0xff]   ;;  %v4484_v23 = vld [vmem:[%s4385_s7 + $0x3c] sm:$0xff]  }
  0x1e   : > { %v1372_v35 = vrot.slane %v1370_v26, 1  ;;  %v367_v36 = vrot.slane %v365_v27, 1  ;;  %v1383_v37 = vshll.u32 %v4418_v28, 16  ;;  %v1387_v38 = vshrl.u32 %v4418_v28, 16 }
  0x1f   : > { %v355_v29 = vor.u32 %v354_v21, %v350_v14  ;;  %v1381_v41 = vor.u32 %v1379_v24, %v1377_v31  ;;  %v373_v42 = vshll.u32 %v4421_v32, 16  ;;  %v1391_v43 = vshll.u32 %v4425_v34, 16  ;;  %v4475_v14 = vld [vmem:[%s4385_s7 + $0x30] sm:$0xff]  }
  0x20   : > { %v1373_v44 = vor.u32 %v1372_v35, %v1368_v25  ;;  %v368_v45 = vsel %vm348_vm1, %v363_v30, %v367_v36  ;;  %v1385_v46 = vrot.slane %v1383_v37, 1  ;;  %v371_v47 = vor.u32 %v369_v33, %v367_v36  ;;  %v4488_v25 = vld [vmem:[%s4385_s7 + $0x38] sm:$0xff]   ;;  %v1659_v30 = vld [vmem:[%s4385_s7 + $0xc] sm:$0xe]  ;;  %v4498_v37 = vld [vmem:[%s4385_s7 + $0x40] sm:$0xff]  }
  0x21   : > { %v360_v40 = vsel %vm348_vm1, %v355_v29, %v359_v22  ;;  %v375_v49 = vrot.slane %v373_v42, 1  ;;  %v1393_v50 = vrot.slane %v1391_v43, 1  ;;  %v377_v51 = vshrl.u32 %v4421_v32, 16 }
  0x22   : > { %3618 = vmatprep.mubr.msk.bf16.mxu1 %vm449_vm2, %v360_v40  ;;  %v1378_v54 = vsel %vm348_vm1, %v1373_v44, %v1377_v31  ;;  %v1386_v55 = vsel %vm348_vm1, %v1381_v41, %v1385_v46  ;;  %v1389_v56 = vor.u32 %v1387_v38, %v1385_v46  ;;  %v381_v57 = vshll.u32 %v4440_v48, 16  ;;  %v4504_v44 = vld [vmem:[%s4385_s7 + $0x48] sm:$0xff]  }
  0x23   : > { %3619 = vmatmul.mubr.msk.bf16.vlgmr.msra.gmra.mrb[0].mxu1 %vm449_vm2, %v368_v45  ;;  %3722 = vmatprep.mubr.msk.bf16.mxu0 %vm449_vm2, %v1378_v54  ;;  %v376_v59 = vsel %vm348_vm1, %v371_v47, %v375_v49  ;;  %v379_v60 = vor.u32 %v377_v51, %v375_v49  ;;  %v1395_v61 = vshrl.u32 %v4425_v34, 16  ;;  %v1399_v62 = vshll.u32 %v4445_v52, 16 }
  0x24   : > { %3643 = vmatpush3.bf16.msra.mxu1 %v644_v6  ;;  %3723 = vmatmul.mubr.msk.bf16.vlgmr.msra.gmra.mrb[0].mxu0 %vm449_vm2, %v1386_v55  ;;  %v1394_v63 = vsel %vm348_vm1, %v1389_v56, %v1393_v50  ;;  %v383_v0 = vrot.slane %v381_v57, 1  ;;  %v385_v2 = vshrl.u32 %v4440_v48, 16  ;;  %v389_v4 = vshll.u32 %v4456_v58, 16 }
  0x25   : > { %4046 = vmatprep.subr.msk.bf16.mxu1 %vm486_vm0, %v4432_v39  ;;  %3622 = vmatprep.mubr.msk.bf16.mxu1 %vm449_vm2, %v376_v59  ;;  %v1397_v6 = vor.u32 %v1395_v61, %v1393_v50  ;;  %v1401_v7 = vrot.slane %v1399_v62, 1  ;;  %v1403_v11 = vshrl.u32 %v4445_v52, 16  ;;  %v393_v15 = vshrl.u32 %v4456_v58, 16  ;;  %v4521_v59 = vld [vmem:[%s4385_s7 + $0x50] sm:$0xff]  }
  0x26   : > { %3747 = vmatpush3.bf16.msra.mxu0 %v1727_v12  ;;  %3726 = vmatprep.mubr.msk.bf16.mxu0 %vm449_vm2, %v1394_v63  ;;  %v384_v16 = vsel %vm348_vm1, %v379_v60, %v383_v0  ;;  %v387_v17 = vor.u32 %v385_v2, %v383_v0  ;;  %v391_v20 = vrot.slane %v389_v4, 1  ;;  %v1407_v21 = vshll.u32 %v4470_v5, 16  ;;  %v4526_v0 = vld [vmem:[%s4385_s7 + $0x58] sm:$0xff]  }
  0x27   : > { %4051 = vmatprep.subr.msk.bf16.mxu0 %vm486_vm0, %v4450_v53  ;;  %v1405_v12 = vor.u32 %v1403_v11, %v1401_v7  ;;  %v397_v22 = vshll.u32 %v4475_v14, 16  ;;  %v1411_v24 = vshrl.u32 %v4470_v5, 16  ;;  %v401_v29 = vshrl.u32 %v4475_v14, 16 }
  0x28   : > { %v392_v26 = vsel %vm348_vm1, %v387_v17, %v391_v20  ;;  %v1409_v27 = vrot.slane %v1407_v21, 1  ;;  %v1402_v31 = vsel %vm348_vm1, %v1397_v6, %v1401_v7  ;;  %v1415_v35 = vshll.u32 %v4484_v23, 16 }
  0x29   : > { %v399_v33 = vrot.slane %v397_v22, 1  ;;  %v405_v36 = vshll.u32 %v4488_v25, 16  ;;  %v395_v40 = vor.u32 %v393_v15, %v391_v20  ;;  %v3346_v41 = vcombine.low %v1659_v30, %v4401_v13 }
  0x2a   : > { %v1410_v38 = vsel %vm348_vm1, %v1405_v12, %v1409_v27  ;;  %v1666_v45 = vrot.slane %v4408_v18, 1  ;;  %v1413_v46 = vor.u32 %v1411_v24, %v1409_v27  ;;  %v4509_v47 = vrot.slane %v1415_v35, 1  ;;  %v4549_v12 = vld [vmem:[%s5124_s1 + $0xe] sm:$0x3] }
  0x2b   : > { %3623 = vmatmul.mubr.msk.bf16.gmra.mrb[4].mxu1 %vm449_vm2, %v384_v16  ;;  %v403_v42 = vor.u32 %v401_v29, %v399_v33  ;;  %v407_v43 = vrot.slane %v405_v36, 1  ;;  %v413_v49 = vshll.u32 %v4498_v37, 16  ;;  %v400_v50 = vsel %vm348_vm1, %v395_v40, %v399_v33  ;;  %v775_v36 = vld [vmem:[%s4385_s7] sm:$0xe] }
  0x2c   : > { %3626 = vmatprep.mubr.msk.bf16.mxu1 %vm449_vm2, %v392_v26  ;;  %3727 = vmatmul.mubr.msk.bf16.gmra.mrb[4].mxu0 %vm449_vm2, %v1402_v31  ;;  %v1665_v13 = vrot.slane %v3346_v41, 1  ;;  %v409_v51 = vshrl.u32 %v4488_v25, 16  ;;  %v417_v55 = vshrl.u32 %v4498_v37, 16  ;;  %v421_v18 = vshll.u32 %v4504_v44, 16 }
  0x2d   : > { %3730 = vmatprep.mubr.msk.bf16.mxu0 %vm449_vm2, %v1410_v38  ;;  %v408_v54 = vsel %vm348_vm1, %v403_v42, %v407_v43  ;;  %v1418_v56 = vsel %vm348_vm1, %v1413_v46, %v4509_v47  ;;  %v415_v57 = vrot.slane %v413_v49, 1  ;;  %v1668_v2 = vrot.slane %v4418_v28, 1  ;;  %v4541_v28 = vld [vmem:[%s4385_s7 + $0x60] ss:$0 sps:$4 sm:$0x11]  }
  0x2e   : > { %v1667_v60 = vsel %vm781_vm3, %v1665_v13, %v1666_v45  ;;  %v411_v61 = vor.u32 %v409_v51, %v407_v43  ;;  %v423_v63 = vrot.slane %v421_v18, 1  ;;  %v2005_v4 = vsel %vm486_vm0, %v4450_v53, 0 }
  0x2f   : > { %v419_v62 = vor.u32 %v417_v55, %v415_v57  ;;  %v1670_v6 = vrot.slane %v4425_v34, 1  ;;  %v429_v7 = vshll.u32 %v4521_v59, 16  ;;  %v425_v15 = vshrl.u32 %v4504_v44, 16 }
  0x30   : > { %v416_v11 = vsel %vm348_vm1, %v411_v61, %v415_v57  ;;  %v433_v16 = vshrl.u32 %v4521_v59, 16  ;;  %v437_v20 = vshll.u32 %v4526_v0, 16  ;;  %v1669_v53 = vsel %vm781_vm3, %v1666_v45, %v1668_v2 }
  0x31   : > { %v424_v17 = vsel %vm348_vm1, %v419_v62, %v423_v63  ;;  %v431_v21 = vrot.slane %v429_v7, 1  ;;  %v1672_v34 = vrot.slane %v4445_v52, 1  ;;  %v1671_v22 = vsel %vm781_vm3, %v1668_v2, %v1670_v6 }
  0x32   : > { %v427_v24 = vor.u32 %v425_v15, %v423_v63  ;;  %v1674_v26 = vrot.slane %v4470_v5, 1  ;;  %v783_v27 = vrot.slane %v4396_v10, 1  ;;  %v439_v30 = vrot.slane %v437_v20, 1 }
  0x33   : > { %3627 = vmatmul.mubr.msk.bf16.gmra.mrb[8].mxu1 %vm449_vm2, %v400_v50  ;;  %v435_v29 = vor.u32 %v433_v16, %v431_v21  ;;  %v785_v31 = vrot.slane %v4411_v19, 1  ;;  %v441_v52 = vshrl.u32 %v4526_v0, 16  ;;  %v787_v33 = vrot.slane %v4421_v32, 1  ;;  %v4121_v16 = vld [vmem:[%s4385_s7 + $0x54] sm:$0xff]  }
  0x34   : > { %3630 = vmatprep.mubr.msk.bf16.mxu1 %vm449_vm2, %v408_v54  ;;  %3731 = vmatmul.mubr.msk.bf16.gmra.mrb[8].mxu0 %vm449_vm2, %v1418_v56  ;;  %v445_v35 = vshll.u32 %v4541_v28, 16  ;;  %v789_v38 = vrot.slane %v4440_v48, 1  ;;  %v432_v40 = vsel %vm348_vm1, %v427_v24, %v431_v21  ;;  %v3281_v41 = vcombine.low %v775_v36, %v4390_v8  ;;  %v4586_v54 = vld [vmem:[%s4385_s7 + $0x44] sm:$0xff]  }
  0x35   : > { %3748 = vmatprep.mubr.msk.bf16.mxu0 %vm449_vm2, %v1667_v60  ;;  %v4563_v5 = vsel %vm781_vm3, %v783_v27, %v785_v31  ;;  %v4571_v42 = vsel %vm781_vm3, %v785_v31, %v787_v33  ;;  %v791_v43 = vrot.slane %v4456_v58, 1  ;;  %v440_v45 = vsel %vm348_vm1, %v435_v29, %v439_v30  ;;  %v4624_v21 = vld [vmem:[%s5124_s1 + $0x6] sm:$0x3]  ;;  %v4125_v31 = vld [vmem:[%s4385_s7 + $0x18] sm:$0xff]  }
  0x36   : > { %v4576_v46 = vsel %vm781_vm3, %v787_v33, %v789_v38  ;;  %v793_v49 = vrot.slane %v4475_v14, 1  ;;  %v782_v50 = vrot.slane %v3281_v41, 1  ;;  %v1673_v8 = vsel %vm781_vm3, %v1670_v6, %v1672_v34 }
  0x37   : > { %v4580_v13 = vsel %vm781_vm3, %v789_v38, %v791_v43  ;;  %v1675_v51 = vsel %vm781_vm3, %v1672_v34, %v1674_v26  ;;  %v795_v18 = vrot.slane %v4488_v25, 1  ;;  %v443_v56 = vor.u32 %v441_v52, %v439_v30  ;;  %v4122_v34 = vld [vmem:[%s4385_s7 + $0x5c] sm:$0xff]  }
  0x38   : > { %v4589_v55 = vsel %vm781_vm3, %v791_v43, %v793_v49  ;;  %v447_v57 = vrot.slane %v445_v35, 1  ;;  %v4594_v60 = vsel %vm781_vm3, %v782_v50, %v783_v27  ;;  %v797_v61 = vrot.slane %v4498_v37, 1  ;;  %v4124_v27 = vld [vmem:[%s4385_s7 + $0x6c] ss:$0 sps:$4 sm:$0x11]   ;;  %v4126_v50 = vld [vmem:[%s4385_s7 + $0x20] sm:$0xff]  }
  0x39   : > { %v4598_v62 = vsel %vm781_vm3, %v793_v49, %v795_v18  ;;  %v1676_v2 = vrot.slane %v4484_v23, 1  ;;  %v1678_v6 = vrot.slane %v4586_v54, 1  ;;  %v1682_v20 = vrot.slane %v4121_v16, 1 }
  0x3a   : > { %v4604_v63 = vsel %vm781_vm3, %v795_v18, %v797_v61  ;;  %v1684_v24 = vrot.slane %v4122_v34, 1  ;;  %v1688_v29 = vrot.slane %v4124_v27, 1  ;;  %v1419_v30 = vshrl.u32 %v4484_v23, 16  ;;  %v4127_v18 = vld [vmem:[%s4385_s7 + $0x28] sm:$0xff]  }
  0x3b   : > { %3631 = vmatmul.mubr.msk.bf16.gmra.mrb[12].mxu1 %vm449_vm2, %v416_v11  ;;  %v1677_v7 = vsel %vm781_vm3, %v1674_v26, %v1676_v2  ;;  %v4120_v11 = vld [vmem:[%s4385_s7 + $0x4c] sm:$0xff]   ;;  %v1679_v15 = vsel %vm781_vm3, %v1676_v2, %v1678_v6  ;;  %v1423_v52 = vshll.u32 %v4586_v54, 16  ;;  %v1427_v33 = vshrl.u32 %v4586_v54, 16 }
  0x3c   : > { %3634 = vmatprep.mubr.msk.bf16.mxu1 %vm449_vm2, %v424_v17  ;;  %3749 = vmatmul.mubr.msk.bf16.vlgmr.msra.gmra.mrb[0].mxu0 %vm449_vm2, %v1669_v53  ;;  %v1680_v17 = vrot.slane %v4120_v11, 1  ;;  %v844_v53 = vsel %vm486_vm0, %v4432_v39, 0  ;;  %v1685_v26 = vsel %vm781_vm3, %v1682_v20, %v1684_v24  ;;  %v1431_v35 = vshll.u32 %v4120_v11, 16  ;;  %v4685_v2 = vld [vmem:[%s5124_s1 + $0x10] sm:$0x3] }
  0x3d   : > { %3773 = vmatpush3.bf16.msra.mxu0 %v2005_v4  ;;  %3752 = vmatprep.mubr.msk.bf16.mxu0 %vm449_vm2, %v1671_v22  ;;  %v448_v4 = vsel %vm348_vm1, %v443_v56, %v447_v57  ;;  %v4631_v22 = vld [vmem:[%s4385_s7 + $0x64] sm:$0xff]   ;;  %v1425_v36 = vrot.slane %v1423_v52, 1  ;;  %v1439_v38 = vshll.u32 %v4121_v16, 16  ;;  %v1443_v43 = vshrl.u32 %v4121_v16, 16  ;;  %v4128_v16 = vld [vmem:[%s4385_s7 + $0x30] sm:$0xff]  }
  0x3e   : > { %4052 = vmatprep.subr.msk.bf16.mxu0 %vm486_vm0, %v4549_v12  ;;  %v1683_v39 = vsel %vm781_vm3, %v1680_v17, %v1682_v20  ;;  %v1433_v23 = vrot.slane %v1431_v35, 1  ;;  %v1447_v49 = vshll.u32 %v4122_v34, 16  ;;  %v2387_v56 = vsel %vm486_vm0, %v4549_v12, 0 }
  0x3f   : > { %v1429_v41 = vor.u32 %v1427_v33, %v1425_v36  ;;  %v1459_v12 = vshrl.u32 %v4631_v22, 16  ;;  %v4748_v33 = vld [vmem:[%s4385_s7 + $0x30] sm:$0xff]  }
  0x40   : > { %v1449_v54 = vrot.slane %v1447_v49, 1 }
  0x43   : > { %3635 = vmatmul.mubr.msk.bf16.gmra.mrb[16].mxu1 %vm449_vm2, %v432_v40 }
  0x44   : > { %3638 = vmatprep.mubr.msk.bf16.mxu1 %vm449_vm2, %v440_v45  ;;  %3753 = vmatmul.mubr.msk.bf16.gmra.mrb[4].mxu0 %vm449_vm2, %v1673_v8 }
  0x45   : > { %3756 = vmatprep.mubr.msk.bf16.mxu0 %vm449_vm2, %v1675_v51 }
  0x4b   : > { %3639 = vmatmul.mubr.msk.bf16.gmra.mrb[20].mxu1 %vm449_vm2, %v448_v4  ;;  %v1455_v4 = vshll.u32 %v4631_v22, 16 }
  0x4c   : > { %3644 = vmatprep.mubr.msk.bf16.mxu1 %vm449_vm2, %v4393_v9  ;;  %3757 = vmatmul.mubr.msk.bf16.gmra.mrb[8].mxu0 %vm449_vm2, %v1677_v7  ;;  %v1681_v9 = vsel %vm781_vm3, %v1678_v6, %v1680_v17  ;;  %v1463_v6 = vshll.u32 %v4124_v27, 16  ;;  %v4134_v27 = vld [vmem:[%s4385_s7 + $0x58] sm:$0xff]  }
  0x4d   : > { %3760 = vmatprep.mubr.msk.bf16.mxu0 %vm449_vm2, %v1679_v15 }
  0x4e   : > { %v1465_v15 = vrot.slane %v1463_v6, 1  ;;  %v4792_v6 = vld [vmem:[%s4385_s7 + $0x50] sm:$0xff]  }
  0x53   : > { %3645 = vmatmul.mubr.msk.bf16.vlgmr.msra.gmra.mrb[0].mxu1 %vm449_vm2, %v4396_v10  ;;  %v1686_v10 = vrot.slane %v4631_v22, 1  ;;  %v4132_v22 = vld [vmem:[%s4385_s7 + $0x48] sm:$0xff]  }
  0x54   : > { %3669 = vmatpush3.bf16.msra.mxu1 %v844_v53  ;;  %3648 = vmatprep.mubr.msk.bf16.mxu1 %vm449_vm2, %v4411_v19  ;;  %v4129_v53 = vld [vmem:[%s4385_s7 + $0x38] sm:$0xff]  }
  0x55   : > { %4047 = vmatprep.subr.msk.bf16.mxu1 %vm486_vm0, %v4624_v21  ;;  %3761 = vmatmul.mubr.msk.bf16.gmra.mrb[12].mxu0 %vm449_vm2, %v1681_v9  ;;  %v1687_v19 = vsel %vm781_vm3, %v1684_v24, %v1686_v10  ;;  %v4130_v9 = vld [vmem:[%s4385_s7 + $0x40] sm:$0xff]   ;;  %v2160_v24 = vld [vmem:[%s4385_s7 + $0x18] sm:$0xf] }
  0x56   : > { %3764 = vmatprep.mubr.msk.bf16.mxu0 %vm449_vm2, %v1683_v39  ;;  %v1122_v39 = vsel %vm486_vm0, %v4624_v21, 0  ;;  %v4733_v21 = vld [vmem:[%s4385_s7 + $0x20] sm:$0xff]  }
  0x5b   : > { %3649 = vmatmul.mubr.msk.bf16.gmra.mrb[4].mxu1 %vm449_vm2, %v4421_v32  ;;  %v1689_v32 = vsel %vm781_vm3, %v1686_v10, %v1688_v29  ;;  %v4719_v10 = vld [vmem:[%s4385_s7 + $0x1c] sm:$0xf]  ;;  %v4136_v29 = vld [vmem:[%s4385_s7 + $0x68] sm:$0xff]  }
  0x5c   : > { %3652 = vmatprep.mubr.msk.bf16.mxu1 %vm449_vm2, %v4440_v48  ;;  %v1421_v48 = vor.u32 %v1419_v30, %v4509_v47  ;;  %v4666_v47 = vsel %vm348_vm1, %v1429_v41, %v1433_v23  ;;  %v4763_v41 = vld [vmem:[%s4385_s7 + $0x38] sm:$0xff]  }
  0x5d   : > { %3765 = vmatmul.mubr.msk.bf16.gmra.mrb[16].mxu0 %vm449_vm2, %v1685_v26  ;;  %v4133_v26 = vld [vmem:[%s4385_s7 + $0x50] sm:$0xff]   ;;  %v2282_v49 = vshll.u32 %v4763_v41, 16 }
  0x5e   : > { %3768 = vmatprep.mubr.msk.bf16.mxu0 %vm449_vm2, %v1687_v19  ;;  %v4663_v40 = vsel %vm348_vm1, %v1421_v48, %v1425_v36  ;;  %v4135_v19 = vld [vmem:[%s4385_s7 + $0x60] sm:$0xff]  }
  0x63   : > { %3653 = vmatmul.mubr.msk.bf16.gmra.mrb[8].mxu1 %vm449_vm2, %v4456_v58  ;;  %v1435_v58 = vshrl.u32 %v4120_v11, 16  ;;  %v1457_v11 = vrot.slane %v1455_v4, 1 }
  0x64   : > { %3656 = vmatprep.mubr.msk.bf16.mxu1 %vm449_vm2, %v4475_v14  ;;  %v1441_v14 = vrot.slane %v1439_v38, 1 }
  0x65   : > { %3769 = vmatmul.mubr.msk.bf16.gmra.mrb[20].mxu0 %vm449_vm2, %v1689_v32  ;;  %v1437_v45 = vor.u32 %v1435_v58, %v1433_v23  ;;  %v1461_v20 = vor.u32 %v1459_v12, %v1457_v11  ;;  %v4744_v32 = vld [vmem:[%s4385_s7 + $0x28] sm:$0xff]   ;;  %v2274_v23 = vshll.u32 %v4748_v33, 16  ;;  %v799_v58 = vrot.slane %v4504_v44, 1 }
  0x66   : > { %3774 = vmatprep.mubr.msk.bf16.mxu0 %vm449_vm2, %v4125_v31  ;;  %v1445_v51 = vor.u32 %v1443_v43, %v1441_v14  ;;  %v2266_v48 = vshll.u32 %v4744_v32, 16  ;;  %v2270_v36 = vshrl.u32 %v4744_v32, 16 }
  0x67   : > { %v4670_v8 = vsel %vm348_vm1, %v1437_v45, %v1441_v14  ;;  %v2276_v45 = vrot.slane %v2274_v23, 1  ;;  %v800_v14 = vsel %vm781_vm3, %v797_v61, %v799_v58  ;;  %v2286_v61 = vshrl.u32 %v4763_v41, 16 }
  0x68   : > { %v4680_v57 = vsel %vm348_vm1, %v1445_v51, %v1449_v54  ;;  %v2268_v38 = vrot.slane %v2266_v48, 1  ;;  %v2278_v51 = vshrl.u32 %v4748_v33, 16  ;;  %v4147_v48 = vld [vmem:[%s4385_s7 + $0x14] sm:$0xff]  }
  0x6b   : > { %3657 = vmatmul.mubr.msk.bf16.gmra.mrb[12].mxu1 %vm449_vm2, %v4488_v25  ;;  %v1451_v25 = vshrl.u32 %v4122_v34, 16  ;;  %v4703_v34 = vsel %vm348_vm1, %v1461_v20, %v1465_v15  ;;  %v805_v20 = vrot.slane %v4541_v28, 1  ;;  %v4812_v28 = vld [vmem:[%s4385_s7 + $0x60] sm:$0xff]  }
  0x6c   : > { %3660 = vmatprep.mubr.msk.bf16.mxu1 %vm449_vm2, %v4498_v37  ;;  %v801_v37 = vrot.slane %v4521_v59, 1 }
  0x6d   : > { %3775 = vmatmul.mubr.msk.bf16.vlgmr.msra.gmra.mrb[0].mxu0 %vm449_vm2, %v4126_v50  ;;  %v1453_v7 = vor.u32 %v1451_v25, %v1449_v54  ;;  %v2610_v50 = vsel %vm486_vm0, %v4685_v2, 0  ;;  %v4787_v25 = vld [vmem:[%s4385_s7 + $0x48] sm:$0xff]  }
  0x6e   : > { %3799 = vmatpush3.bf16.msra.mxu0 %v2387_v56  ;;  %3778 = vmatprep.mubr.msk.bf16.mxu0 %vm449_vm2, %v4127_v18  ;;  %v2284_v56 = vrot.slane %v2282_v49, 1  ;;  %v802_v4 = vsel %vm781_vm3, %v799_v58, %v801_v37  ;;  %v4830_v58 = vld [vmem:[%s4385_s7 + $0x70] sm:$0xff]  }
  0x6f   : > { %4053 = vmatprep.subr.msk.bf16.mxu0 %vm486_vm0, %v4685_v2  ;;  %v4695_v17 = vsel %vm348_vm1, %v1453_v7, %v1457_v11  ;;  %v2280_v2 = vor.u32 %v2278_v51, %v2276_v45  ;;  %v2338_v49 = vshll.u32 %v4830_v58, 16 }
  0x70   : > { %v2288_v12 = vor.u32 %v2286_v61, %v2284_v56 }
  0x71   : > { %v2285_v11 = vsel %vm348_vm1, %v2280_v2, %v2284_v56  ;;  %v2340_v61 = vrot.slane %v2338_v49, 1  ;;  %v2342_v56 = vshrl.u32 %v4830_v58, 16 }
  0x73   : > { %3661 = vmatmul.mubr.msk.bf16.gmra.mrb[16].mxu1 %vm449_vm2, %v4504_v44 }
  0x74   : > { %3664 = vmatprep.mubr.msk.bf16.mxu1 %vm449_vm2, %v4521_v59 }
  0x75   : > { %3779 = vmatmul.mubr.msk.bf16.gmra.mrb[4].mxu0 %vm449_vm2, %v4128_v16 }
  0x76   : > { %3782 = vmatprep.mubr.msk.bf16.mxu0 %vm449_vm2, %v4129_v53  ;;  %v2302_v53 = vshrl.u32 %v4787_v25, 16 }
  0x7b   : > { %3665 = vmatmul.mubr.msk.bf16.gmra.mrb[20].mxu1 %vm449_vm2, %v4526_v0 }
  0x7c   : > { %3670 = vmatprep.mubr.msk.bf16.mxu1 %vm449_vm2, %v4594_v60  ;;  %v3385_v60 = vcombine.low %v2160_v24, %v4719_v10 }
  0x7d   : > { %3783 = vmatmul.mubr.msk.bf16.gmra.mrb[8].mxu0 %vm449_vm2, %v4130_v9  ;;  %v2306_v9 = vshll.u32 %v4792_v6, 16 }
  0x7e   : > { %3786 = vmatprep.mubr.msk.bf16.mxu0 %vm449_vm2, %v4132_v22 }
  0x83   : > { %3671 = vmatmul.mubr.msk.bf16.vlgmr.msra.gmra.mrb[0].mxu1 %vm449_vm2, %v4563_v5  ;;  %v2253_v5 = vshll.u32 %v3385_v60, 16 }
  0x84   : > { %3695 = vmatpush3.bf16.msra.mxu1 %v1122_v39  ;;  %3674 = vmatprep.mubr.msk.bf16.mxu1 %vm449_vm2, %v4571_v42  ;;  %v2251_v42 = vshrl.u32 %v3385_v60, 16  ;;  %v4806_v39 = vld [vmem:[%s4385_s7 + $0x58] sm:$0xff]  }
  0x85   : > { %4049 = vmatprep.subr.msk.bf16.mxu1 %vm486_vm0, %v4358_v1  ;;  %3787 = vmatmul.mubr.msk.bf16.gmra.mrb[12].mxu0 %vm449_vm2, %v4133_v26  ;;  %v2255_v30 = vrot.slane %v2253_v5, 1  ;;  %v2258_v1 = vshll.u32 %v4733_v21, 16  ;;  %v2308_v5 = vrot.slane %v2306_v9, 1  ;;  %v2551_v9 = vrot.slane %v4744_v32, 1  ;;  %v4162_v32 = vld [vmem:[%s4385_s7 + $0x5c] sm:$0xff]  }
  0x86   : > { %3790 = vmatprep.mubr.msk.bf16.mxu0 %vm449_vm2, %v4134_v27  ;;  %v4145_v27 = vld [vmem:[%s4385_s7 + $0xc] sm:$0xff]  }
  0x87   : > { %v2256_v31 = vor.u32 %v2255_v30, %v2251_v42  ;;  %v2260_v52 = vrot.slane %v2258_v1, 1  ;;  %v2310_v42 = vshrl.u32 %v4792_v6, 16  ;;  %v2318_v1 = vshrl.u32 %v4806_v39, 16 }
  0x89   : > { %v2261_v35 = vsel %vm348_vm1, %v2256_v31, %v2260_v52  ;;  %v2322_v31 = vshll.u32 %v4812_v28, 16 }
  0x8b   : > { %3675 = vmatmul.mubr.msk.bf16.gmra.mrb[4].mxu1 %vm449_vm2, %v4576_v46  ;;  %v4137_v46 = vld [vmem:[%s4385_s7 + $0x70] sm:$0xff]   ;;  %v2324_v23 = vrot.slane %v2322_v31, 1  ;;  %v2565_v31 = vrot.slane %v4812_v28, 1 }
  0x8c   : > { %3678 = vmatprep.mubr.msk.bf16.mxu1 %vm449_vm2, %v4580_v13  ;;  %v2262_v13 = vshrl.u32 %v4733_v21, 16 }
  0x8d   : > { %3791 = vmatmul.mubr.msk.bf16.gmra.mrb[16].mxu0 %vm449_vm2, %v4135_v19  ;;  %v2314_v19 = vshll.u32 %v4806_v39, 16 }
  0x8e   : > { %3794 = vmatprep.mubr.msk.bf16.mxu0 %vm449_vm2, %v4136_v29  ;;  %v2264_v43 = vor.u32 %v2262_v13, %v2260_v52  ;;  %v2312_v13 = vor.u32 %v2310_v42, %v2308_v5  ;;  %v2559_v42 = vrot.slane %v4787_v25, 1 }
  0x8f   : > { %v2316_v52 = vrot.slane %v2314_v19, 1 }
  0x90   : > { %v2269_v44 = vsel %vm348_vm1, %v2264_v43, %v2268_v38 }
  0x91   : > { %v2317_v43 = vsel %vm348_vm1, %v2312_v13, %v2316_v52 }
  0x93   : > { %3679 = vmatmul.mubr.msk.bf16.gmra.mrb[8].mxu1 %vm449_vm2, %v4589_v55  ;;  %v2272_v55 = vor.u32 %v2270_v36, %v2268_v38  ;;  %v2320_v36 = vor.u32 %v2318_v1, %v2316_v52  ;;  %v2563_v1 = vrot.slane %v4806_v39, 1  ;;  %v2569_v39 = vrot.slane %v4830_v58, 1 }
  0x94   : > { %3682 = vmatprep.mubr.msk.bf16.mxu1 %vm449_vm2, %v4598_v62  ;;  %v4767_v62 = vld [vmem:[%s4385_s7 + $0x40] sm:$0xff]  }
  0x95   : > { %3795 = vmatmul.mubr.msk.bf16.gmra.mrb[20].mxu0 %vm449_vm2, %v4137_v46  ;;  %v2277_v54 = vsel %vm348_vm1, %v2272_v55, %v2276_v45  ;;  %v2290_v18 = vshll.u32 %v4767_v62, 16  ;;  %v2294_v15 = vshrl.u32 %v4767_v62, 16  ;;  %v4824_v46 = vld [vmem:[%s4385_s7 + $0x68] sm:$0xff]   ;;  %v2326_v55 = vshrl.u32 %v4812_v28, 16 }
  0x96   : > { %3800 = vmatprep.mubr.msk.bf16.mxu0 %vm449_vm2, %v2261_v35  ;;  %v4149_v35 = vld [vmem:[%s4385_s7 + $0x1c] sm:$0xff]   ;;  %v2330_v38 = vshll.u32 %v4824_v46, 16  ;;  %v2325_v45 = vsel %vm348_vm1, %v2320_v36, %v2324_v23 }
  0x97   : > { %v2292_v59 = vrot.slane %v2290_v18, 1  ;;  %v2328_v51 = vor.u32 %v2326_v55, %v2324_v23  ;;  %v2542_v18 = vld [vmem:[%s4385_s7 + $0x18] sm:$0xe] }
  0x99   : > { %v2293_v16 = vsel %vm348_vm1, %v2288_v12, %v2292_v59  ;;  %v2296_v24 = vor.u32 %v2294_v15, %v2292_v59  ;;  %v3411_v12 = vcombine.low %v2542_v18, %v4719_v10  ;;  %v4155_v59 = vld [vmem:[%s4385_s7 + $0x34] sm:$0xff]  }
  0x9b   : > { %3683 = vmatmul.mubr.msk.bf16.gmra.mrb[12].mxu1 %vm449_vm2, %v4604_v63  ;;  %v803_v63 = vrot.slane %v4526_v0, 1  ;;  %v2298_v0 = vshll.u32 %v4787_v25, 16  ;;  %v2548_v15 = vrot.slane %v3411_v12, 1 }
  0x9c   : > { %3686 = vmatprep.mubr.msk.bf16.mxu1 %vm449_vm2, %v800_v14  ;;  %v2334_v14 = vshrl.u32 %v4824_v46, 16 }
  0x9d   : > { %3801 = vmatmul.mubr.msk.bf16.vlgmr.msra.gmra.mrb[0].mxu0 %vm449_vm2, %v2269_v44  ;;  %v804_v7 = vsel %vm781_vm3, %v801_v37, %v803_v63  ;;  %v2300_v22 = vrot.slane %v2298_v0, 1  ;;  %v806_v26 = vsel %vm781_vm3, %v803_v63, %v805_v20  ;;  %v2332_v44 = vrot.slane %v2330_v38, 1  ;;  %v4153_v37 = vld [vmem:[%s4385_s7 + $0x2c] sm:$0xff]  }
  0x9e   : > { %3825 = vmatpush3.bf16.msra.mxu0 %v2610_v50  ;;  %3804 = vmatprep.mubr.msk.bf16.mxu0 %vm449_vm2, %v2277_v54  ;;  %v4151_v50 = vld [vmem:[%s4385_s7 + $0x24] sm:$0xff]   ;;  %v4845_v54 = vld [vmem:[%s4385_s7 + $0x78] ss:$0 sps:$4 sm:$0x11]  }
  0x9f   : > { %v2304_v60 = vor.u32 %v2302_v53, %v2300_v22  ;;  %v2301_v29 = vsel %vm348_vm1, %v2296_v24, %v2300_v22  ;;  %v2333_v63 = vsel %vm348_vm1, %v2328_v51, %v2332_v44  ;;  %v2346_v2 = vshll.u32 %v4845_v54, 16  ;;  %v4159_v53 = vld [vmem:[%s4385_s7 + $0x44] sm:$0xff]   ;;  %v4160_v22 = vld [vmem:[%s4385_s7 + $0x4c] sm:$0xff]  }
  0xa0   : > { %v2571_v28 = vrot.slane %v4845_v54, 1 }
  0xa1   : > { %v2309_v30 = vsel %vm348_vm1, %v2304_v60, %v2308_v5  ;;  %v2348_v0 = vrot.slane %v2346_v2, 1  ;;  %v2555_v60 = vrot.slane %v4763_v41, 1  ;;  %v2557_v5 = vrot.slane %v4767_v62, 1 }
  0xa2   : > { %v2561_v41 = vrot.slane %v4792_v6, 1  ;;  %v2567_v6 = vrot.slane %v4824_v46, 1  ;;  %v2572_v52 = vsel %vm781_vm3, %v2569_v39, %v2571_v28 }
  0xa3   : > { %3687 = vmatmul.mubr.msk.bf16.gmra.mrb[16].mxu1 %vm449_vm2, %v802_v4  ;;  %v2558_v19 = vsel %vm781_vm3, %v2555_v60, %v2557_v5  ;;  %v2560_v62 = vsel %vm781_vm3, %v2557_v5, %v2559_v42 }
  0xa4   : > { %3690 = vmatprep.mubr.msk.bf16.mxu1 %vm449_vm2, %v804_v7  ;;  %v2344_v7 = vor.u32 %v2342_v56, %v2340_v61  ;;  %v2564_v25 = vsel %vm781_vm3, %v2561_v41, %v2563_v1 }
  0xa5   : > { %3805 = vmatmul.mubr.msk.bf16.gmra.mrb[4].mxu0 %vm449_vm2, %v2285_v11  ;;  %v4157_v11 = vld [vmem:[%s4385_s7 + $0x3c] sm:$0xff]  }
  0xa6   : > { %3808 = vmatprep.mubr.msk.bf16.mxu0 %vm449_vm2, %v2293_v16  ;;  %v2549_v16 = vrot.slane %v4733_v21, 1  ;;  %v2349_v20 = vsel %vm348_vm1, %v2344_v7, %v2348_v0  ;;  %v2553_v21 = vrot.slane %v4748_v33, 1 }
  0xa8   : > { %v2550_v10 = vsel %vm781_vm3, %v2548_v15, %v2549_v16  ;;  %v2552_v24 = vsel %vm781_vm3, %v2549_v16, %v2551_v9  ;;  %v2556_v33 = vsel %vm781_vm3, %v2553_v21, %v2555_v60 }
  0xab   : > { %3691 = vmatmul.mubr.msk.bf16.gmra.mrb[20].mxu1 %vm449_vm2, %v806_v26  ;;  %v2554_v26 = vsel %vm781_vm3, %v2551_v9, %v2553_v21 }
  0xac   : > { %3696 = vmatprep.mubr.msk.bf16.mxu1 %vm449_vm2, %v4145_v27  ;;  %v4161_v27 = vld [vmem:[%s4385_s7 + $0x54] sm:$0xff]  }
  0xad   : > { %3809 = vmatmul.mubr.msk.bf16.gmra.mrb[8].mxu0 %vm449_vm2, %v2301_v29  ;;  %v4163_v29 = vld [vmem:[%s4385_s7 + $0x64] sm:$0xff]  }
  0xae   : > { %3812 = vmatprep.mubr.msk.bf16.mxu0 %vm449_vm2, %v2309_v30  ;;  %v2562_v30 = vsel %vm781_vm3, %v2559_v42, %v2561_v41 }
  0xb3   : > { %3697 = vmatmul.mubr.msk.bf16.vlgmr.msra.gmra.mrb[0].mxu1 %vm449_vm2, %v4147_v48 }
  0xb4   : > { %3851 = vmatpush3.bf16.msra.mxu1 %v4366_v3  ;;  %3700 = vmatprep.mubr.msk.bf16.mxu1 %vm449_vm2, %v4149_v35  ;;  %v2336_v3 = vor.u32 %v2334_v14, %v2332_v44 }
  0xb5   : > { %3813 = vmatmul.mubr.msk.bf16.gmra.mrb[12].mxu0 %vm449_vm2, %v2317_v43 }
  0xb6   : > { %3816 = vmatprep.mubr.msk.bf16.mxu0 %vm449_vm2, %v2325_v45  ;;  %v2341_v4 = vsel %vm348_vm1, %v2336_v3, %v2340_v61 }
  0xbb   : > { %3701 = vmatmul.mubr.msk.bf16.gmra.mrb[4].mxu1 %vm449_vm2, %v4151_v50 }
  0xbc   : > { %3704 = vmatprep.mubr.msk.bf16.mxu1 %vm449_vm2, %v4153_v37 }
  0xbd   : > { %3817 = vmatmul.mubr.msk.bf16.gmra.mrb[16].mxu0 %vm449_vm2, %v2333_v63 }
  0xbe   : > { %3820 = vmatprep.mubr.msk.bf16.mxu0 %vm449_vm2, %v2341_v4 }
  0xc3   : > { %3705 = vmatmul.mubr.msk.bf16.gmra.mrb[8].mxu1 %vm449_vm2, %v4155_v59 }
  0xc4   : > { %3708 = vmatprep.mubr.msk.bf16.mxu1 %vm449_vm2, %v4157_v11 }
  0xc5   : > { %3821 = vmatmul.mubr.msk.bf16.gmra.mrb[20].mxu0 %vm449_vm2, %v2349_v20 }
  0xc6   : > { %3826 = vmatprep.mubr.msk.bf16.mxu0 %vm449_vm2, %v2550_v10 }
  0xcb   : > { %3709 = vmatmul.mubr.msk.bf16.gmra.mrb[12].mxu1 %vm449_vm2, %v4159_v53 }
  0xcc   : > { %3712 = vmatprep.mubr.msk.bf16.mxu1 %vm449_vm2, %v4160_v22 }
  0xcd   : > { %3827 = vmatmul.mubr.msk.bf16.vlgmr.msra.gmra.mrb[0].mxu0 %vm449_vm2, %v2552_v24 }
  0xce   : > { %3830 = vmatprep.mubr.msk.bf16.mxu0 %vm449_vm2, %v2554_v26 }
  0xd3   : > { %3713 = vmatmul.mubr.msk.bf16.gmra.mrb[16].mxu1 %vm449_vm2, %v4161_v27 }
  0xd4   : > { %3716 = vmatprep.mubr.msk.bf16.mxu1 %vm449_vm2, %v4162_v32 }
  0xd5   : > { %3831 = vmatmul.mubr.msk.bf16.gmra.mrb[4].mxu0 %vm449_vm2, %v2556_v33 }
  0xd6   : > { %3834 = vmatprep.mubr.msk.bf16.mxu0 %vm449_vm2, %v2558_v19 }
  0xdb   : > { %3717 = vmatmul.mubr.msk.bf16.gmra.mrb[20].mxu1 %vm449_vm2, %v4163_v29 }
  0xdc   : > { %3734 = vmatprep.mubr.msk.bf16.mxu1 %vm449_vm2, %v4663_v40  ;;  %v2566_v40 = vsel %vm781_vm3, %v2563_v1, %v2565_v31 }
  0xdd   : > { %3835 = vmatmul.mubr.msk.bf16.gmra.mrb[8].mxu0 %vm449_vm2, %v2560_v62 }
  0xde   : > { %3838 = vmatprep.mubr.msk.bf16.mxu0 %vm449_vm2, %v2562_v30 }
  0xe3   : > { %3735 = vmatmul.mubr.msk.bf16.vlgmr.msra.gmra.mrb[12].mxu1 %vm449_vm2, %v4666_v47  ;;  %v2568_v47 = vsel %vm781_vm3, %v2565_v31, %v2567_v6 }
  0xe4   : > { %3738 = vmatprep.mubr.msk.bf16.mxu1 %vm449_vm2, %v4670_v8  ;;  %v2570_v8 = vsel %vm781_vm3, %v2567_v6, %v2569_v39 }
  0xe5   : > { %3839 = vmatmul.mubr.msk.bf16.gmra.mrb[12].mxu0 %vm449_vm2, %v2564_v25 }
  0xe6   : > { %3842 = vmatprep.mubr.msk.bf16.mxu0 %vm449_vm2, %v2566_v40 }
  0xeb   : > { %3739 = vmatmul.mubr.msk.bf16.gmra.mrb[16].mxu1 %vm449_vm2, %v4680_v57 }
  0xec   : > { %3742 = vmatprep.mubr.msk.bf16.mxu1 %vm449_vm2, %v4695_v17 }
  0xed   : > { %3843 = vmatmul.mubr.msk.bf16.gmra.mrb[16].mxu0 %vm449_vm2, %v2568_v47 }
  0xee   : > { %3846 = vmatprep.mubr.msk.bf16.mxu0 %vm449_vm2, %v2570_v8 }
  0xf3   : > { %3743 = vmatmul.mubr.msk.bf16.gmra.mrb[20].mxu1 %vm449_vm2, %v4703_v34  ;;  %v4925_v34 = vld [vmem:[%s5125_s2] ss:$0 sm:$0xff] }
  0xf5   : > { %3847 = vmatmul.mubr.msk.bf16.gmra.mrb[20].mxu0 %vm449_vm2, %v2572_v52 }
 0x186   : > { %v3698_v57 = vpop.f32.mrb[0].mxu1 }
 0x187   : > { %v1158_v46 = vpop.f32.mrb[1].mxu1 }
 0x188   : > { %v3699_v48 = vpop.f32.mrb[2].mxu1 }
 0x189   : > { %v1161_v13 = vpop.f32.mrb[3].mxu1 }
 0x18e   : > { %v3702_v17 = vpop.f32.mrb[4].mxu1 }
 0x18f   : > { %v1174_v35 = vpop.f32.mrb[5].mxu1 }
 0x190   : > { %v3703_v36 = vpop.f32.mrb[6].mxu1 }
 0x191   : > { %v1177_v23 = vpop.f32.mrb[7].mxu1 }
 0x196   : > { %v3706_v58 = vpop.f32.mrb[8].mxu1 }
 0x197   : > { %v1190_v38 = vpop.f32.mrb[9].mxu1 }
 0x198   : > { %v3707_v43 = vpop.f32.mrb[10].mxu1 }
 0x199   : > { %v1193_v55 = vpop.f32.mrb[11].mxu1 }
 0x1a0   : > { %v3828_v45 = vpop.f32.mrb[0].mxu0 }
 0x1a1   : > { %v3852_v14 = vadd.f32 %v3828_v45, %v3698_v57  ;;  %v2646_v49 = vpop.f32.mrb[1].mxu0 }
 0x1a2   : > { %v3853_v44 = vadd.f32 %v2646_v49, %v1158_v46  ;;  %v3829_v50 = vpop.f32.mrb[2].mxu0 }
 0x1a3   : > { %v4928_v51 = vadd.f32 %v3852_v14, %v4925_v34  ;;  %v3854_v54 = vadd.f32 %v3829_v50, %v3699_v48  ;;  %v2649_v37 = vpop.f32.mrb[3].mxu0 }
 0x1a4   : > { %v4931_v3 = vadd.f32 %v3853_v44, %v4925_v34  ;;  %v3855_v61 = vadd.f32 %v2649_v37, %v1161_v13 }
 0x1a5   : > { %v3427_v18 = vmul.f32 -1.442695, %v4928_v51  ;;  %v4935_v63 = vadd.f32 %v3854_v54, %v4925_v34 }
 0x1a6   : > { %v3425_v56 = vmul.f32 -1.442695, %v4931_v3  ;;  %v4939_v2 = vadd.f32 %v3855_v61, %v4925_v34 }
 0x1a7   : > { %4164 = vpow2.f32 %v3427_v18  ;;  %v3428_v4 = vmul.f32 -1.442695, %v4935_v63 }
 0x1a8   : > { %4166 = vpow2.f32 %v3425_v56  ;;  %v3426_v12 = vmul.f32 -1.442695, %v4939_v2  ;;  %v3832_v59 = vpop.f32.mrb[4].mxu0 }
 0x1a9   : > { %4168 = vpow2.f32 %v3428_v4  ;;  %v3856_v7 = vadd.f32 %v3832_v59, %v3702_v17  ;;  %v2662_v0 = vpop.f32.mrb[5].mxu0 }
 0x1aa   : > { %4170 = vpow2.f32 %v3426_v12  ;;  %v3857_v11 = vadd.f32 %v2662_v0, %v1174_v35  ;;  %v3833_v15 = vpop.f32.mrb[6].mxu0 }
 0x1ab   : > { %v4945_v16 = vadd.f32 %v3856_v7, %v4925_v34  ;;  %v3858_v20 = vadd.f32 %v3833_v15, %v3703_v36  ;;  %v2665_v10 = vpop.f32.mrb[7].mxu0 }
 0x1ac   : > { %v4948_v53 = vadd.f32 %v3857_v11, %v4925_v34  ;;  %v3859_v9 = vadd.f32 %v2665_v10, %v1177_v23 }
 0x1ad   : > { %v3431_v22 = vmul.f32 -1.442695, %v4945_v16  ;;  %v4952_v21 = vadd.f32 %v3858_v20, %v4925_v34 }
 0x1ae   : > { %v3429_v24 = vmul.f32 -1.442695, %v4948_v53  ;;  %v4956_v26 = vadd.f32 %v3859_v9, %v4925_v34 }
 0x1af   : > { %4172 = vpow2.f32 %v3431_v22  ;;  %v3432_v27 = vmul.f32 -1.442695, %v4952_v21 }
 0x1b0   : > { %4174 = vpow2.f32 %v3429_v24  ;;  %v3430_v60 = vmul.f32 -1.442695, %v4956_v26  ;;  %v3836_v32 = vpop.f32.mrb[8].mxu0 }
 0x1b1   : > { %v4165_v5 = vpop.eup %4164  ;;  %4176 = vpow2.f32 %v3432_v27  ;;  %v3860_v33 = vadd.f32 %v3836_v32, %v3706_v58  ;;  %v2678_v19 = vpop.f32.mrb[9].mxu0 }
 0x1b2   : > { %v4167_v29 = vpop.eup %4166  ;;  %v2870_v42 = vadd.f32 1.0, %v4165_v5  ;;  %4178 = vpow2.f32 %v3430_v60  ;;  %v3861_v41 = vadd.f32 %v2678_v19, %v1190_v38  ;;  %v3837_v62 = vpop.f32.mrb[10].mxu0 }
 0x1b3   : > { %v4169_v30 = vpop.eup %4168  ;;  %v2868_v1 = vadd.f32 1.0, %v4167_v29  ;;  %v4963_v31 = vadd.f32 %v3860_v33, %v4925_v34  ;;  %v3862_v25 = vadd.f32 %v3837_v62, %v3707_v43  ;;  %v2681_v40 = vpop.f32.mrb[11].mxu0 }
 0x1b4   : > { %v4171_v6 = vpop.eup %4170  ;;  %4180 = vrcp.f32 %v2870_v42  ;;  %v2871_v39 = vadd.f32 1.0, %v4169_v30  ;;  %v4966_v47 = vadd.f32 %v3861_v41, %v4925_v34  ;;  %v3863_v8 = vadd.f32 %v2681_v40, %v1193_v55 }
 0x1b5   : > { %4182 = vrcp.f32 %v2868_v1  ;;  %v2869_v28 = vadd.f32 1.0, %v4171_v6  ;;  %v3435_v52 = vmul.f32 -1.442695, %v4963_v31  ;;  %v4971_v57 = vadd.f32 %v3862_v25, %v4925_v34 }
 0x1b6   : > { %v3736_v46 = vpop.f32.mrb[12].mxu1  ;;  %4184 = vrcp.f32 %v2871_v39  ;;  %v3433_v48 = vmul.f32 -1.442695, %v4966_v47  ;;  %v4976_v13 = vadd.f32 %v3863_v8, %v4925_v34 }
 0x1b7   : > { %v1588_v17 = vpop.f32.mrb[13].mxu1  ;;  %4186 = vrcp.f32 %v2869_v28  ;;  %v3436_v35 = vmul.f32 -1.442695, %v4971_v57 }
 0x1b8   : > { %v3737_v36 = vpop.f32.mrb[14].mxu1  ;;  %4188 = vpow2.f32 %v3435_v52  ;;  %v3434_v23 = vmul.f32 -1.442695, %v4976_v13  ;;  %v3840_v58 = vpop.f32.mrb[12].mxu0 }
 0x1b9   : > { %v1591_v38 = vpop.f32.mrb[15].mxu1  ;;  %v4173_v43 = vpop.eup %4172  ;;  %4190 = vpow2.f32 %v3433_v48  ;;  %v3864_v55 = vadd.f32 %v3840_v58, %v3736_v46 }
 0x1ba   : > { %v2694_v45 = vpop.f32.mrb[13].mxu0  ;;  %v4175_v14 = vpop.eup %4174  ;;  %v2874_v49 = vadd.f32 1.0, %v4173_v43  ;;  %4192 = vpow2.f32 %v3436_v35 }
 0x1bb   : > { %v3865_v44 = vadd.f32 %v2694_v45, %v1588_v17  ;;  %v3841_v50 = vpop.f32.mrb[14].mxu0  ;;  %v4177_v54 = vpop.eup %4176  ;;  %v2872_v37 = vadd.f32 1.0, %v4175_v14  ;;  %4194 = vpow2.f32 %v3434_v23  ;;  %v4983_v61 = vadd.f32 %v3864_v55, %v4925_v34 }
 0x1bc   : > { %v3866_v18 = vadd.f32 %v3841_v50, %v3737_v36  ;;  %v2697_v56 = vpop.f32.mrb[15].mxu0  ;;  %v4179_v4 = vpop.eup %4178  ;;  %4196 = vrcp.f32 %v2874_v49  ;;  %v2875_v12 = vadd.f32 1.0, %v4177_v54 }
 0x1bd   : > { %v4986_v59 = vadd.f32 %v3865_v44, %v4925_v34  ;;  %v3867_v7 = vadd.f32 %v2697_v56, %v1591_v38  ;;  %4198 = vrcp.f32 %v2872_v37  ;;  %v2873_v0 = vadd.f32 1.0, %v4179_v4 }
 0x1be   : > { %v3439_v11 = vmul.f32 -1.442695, %v4983_v61  ;;  %v4991_v15 = vadd.f32 %v3866_v18, %v4925_v34  ;;  %v3740_v20 = vpop.f32.mrb[16].mxu1  ;;  %v4181_v10 = vpop.eup %4180  ;;  %4200 = vrcp.f32 %v2875_v12 }
 0x1bf   : > { %v3437_v9 = vmul.f32 -1.442695, %v4986_v59  ;;  %v4995_v22 = vadd.f32 %v3867_v7, %v4925_v34  ;;  %v1604_v24 = vpop.f32.mrb[17].mxu1  ;;  %v4183_v27 = vpop.eup %4182  ;;  %v2942_v60 = vmul.f32 %v4181_v10, %v4928_v51  ;;  %4202 = vrcp.f32 %v2873_v0 }
 0x1c0   : > { %v3440_v32 = vmul.f32 -1.442695, %v4991_v15  ;;  %v3741_v5 = vpop.f32.mrb[18].mxu1  ;;  %v4185_v33 = vpop.eup %4184  ;;  %v2940_v19 = vmul.f32 %v4183_v27, %v4931_v3  ;;  %4204 = vpow2.f32 %v3439_v11 }
 0x1c1   : > { %v3438_v29 = vmul.f32 -1.442695, %v4995_v22  ;;  %v3844_v42 = vpop.f32.mrb[16].mxu0  ;;  %v1607_v41 = vpop.f32.mrb[19].mxu1  ;;  %v3477_v62 = vpack.c.bf16 %v2942_v60, %v2942_v60  ;;  %v2943_v30 = vmul.f32 %v4185_v33, %v4935_v63  ;;  %4206 = vpow2.f32 %v3437_v9 }
 0x1c2   : > { %v4187_v51 = vpop.eup %4186  ;;  %v3868_v1 = vadd.f32 %v3844_v42, %v3740_v20  ;;  %v2710_v25 = vpop.f32.mrb[17].mxu0  ;;  %v3475_v6 = vpack.c.bf16 %v2940_v19, %v2940_v19  ;;  %4208 = vpow2.f32 %v3440_v32 }
 0x1c3   : > { %v4189_v40 = vpop.eup %4188  ;;  %v2941_v39 = vmul.f32 %v4187_v51, %v4939_v2  ;;  %v3869_v3 = vadd.f32 %v2710_v25, %v1604_v24  ;;  %v3845_v8 = vpop.f32.mrb[18].mxu0  ;;  %3071 = vst.msk [vmem:[%s5002_s5 + $0x8] sm:$0xf] %vm3068_vm4, %v3477_v62  ;;  %v3478_v52 = vpack.c.bf16 %v2943_v30, %v2943_v30  ;;  %4210 = vpow2.f32 %v3438_v29 }
 0x1c4   : > { %v4191_v28 = vpop.eup %4190  ;;  %v2878_v46 = vadd.f32 1.0, %v4189_v40  ;;  %v5011_v63 = vadd.f32 %v3868_v1, %v4925_v34  ;;  %v2713_v48 = vpop.f32.mrb[19].mxu0  ;;  %3069 = vst.msk [vmem:[%s5002_s5] sm:$0xf] %vm3068_vm4, %v3475_v6  ;;  %v3870_v23 = vadd.f32 %v3845_v8, %v3741_v5 }
 0x1c5   : > { %v4193_v17 = vpop.eup %4192  ;;  %v3476_v35 = vpack.c.bf16 %v2941_v39, %v2941_v39  ;;  %v2876_v2 = vadd.f32 1.0, %v4191_v28  ;;  %v5016_v36 = vadd.f32 %v3869_v3, %v4925_v34  ;;  %3072 = vst.msk [vmem:[%s5002_s5 + $0xc] sm:$0xf] %vm3068_vm4, %v3478_v52  ;;  %v3871_v55 = vadd.f32 %v2713_v48, %v1607_v41 }
 0x1c6   : > { %v4195_v58 = vpop.eup %4194  ;;  %4212 = vrcp.f32 %v2878_v46  ;;  %v2879_v38 = vadd.f32 1.0, %v4193_v17  ;;  %v3443_v43 = vmul.f32 -1.442695, %v5011_v63  ;;  %v3744_v45 = vpop.f32.mrb[20].mxu1  ;;  %v5025_v50 = vadd.f32 %v3870_v23, %v4925_v34 }
 0x1c7   : > { %v4197_v14 = vpop.eup %4196  ;;  %3070 = vst.msk [vmem:[%s5002_s5 + $0x4] sm:$0xf] %vm3068_vm4, %v3476_v35  ;;  %4214 = vrcp.f32 %v2876_v2  ;;  %v2877_v49 = vadd.f32 1.0, %v4195_v58  ;;  %v3441_v44 = vmul.f32 -1.442695, %v5016_v36  ;;  %v1620_v54 = vpop.f32.mrb[21].mxu1  ;;  %v5029_v56 = vadd.f32 %v3871_v55, %v4925_v34 }
 0x1c8   : > { %v4199_v37 = vpop.eup %4198  ;;  %v2946_v18 = vmul.f32 %v4197_v14, %v4945_v16  ;;  %4216 = vrcp.f32 %v2879_v38  ;;  %v3745_v4 = vpop.f32.mrb[22].mxu1  ;;  %v3444_v0 = vmul.f32 -1.442695, %v5025_v50 }
 0x1c9   : > { %v4201_v12 = vpop.eup %4200  ;;  %v2944_v7 = vmul.f32 %v4199_v37, %v4948_v53  ;;  %4218 = vrcp.f32 %v2877_v49  ;;  %v3848_v11 = vpop.f32.mrb[20].mxu0  ;;  %v3442_v16 = vmul.f32 -1.442695, %v5029_v56 }
 0x1ca   : > { %v1623_v20 = vpop.f32.mrb[23].mxu1  ;;  %v4203_v10 = vpop.eup %4202  ;;  %v3481_v9 = vpack.c.bf16 %v2946_v18, %v2946_v18  ;;  %v2947_v24 = vmul.f32 %v4201_v12, %v4952_v21  ;;  %4220 = vpow2.f32 %v3443_v43  ;;  %v3872_v53 = vadd.f32 %v3848_v11, %v3744_v45 }
 0x1cb   : > { %v2726_v27 = vpop.f32.mrb[21].mxu0  ;;  %v4205_v60 = vpop.eup %4204  ;;  %v3479_v32 = vpack.c.bf16 %v2944_v7, %v2944_v7  ;;  %v2945_v5 = vmul.f32 %v4203_v10, %v4956_v26  ;;  %4222 = vpow2.f32 %v3441_v44 }
 0x1cc   : > { %v3849_v33 = vpop.f32.mrb[22].mxu0  ;;  %v4207_v19 = vpop.eup %4206  ;;  %3075 = vst.msk [vmem:[%s5002_s5 + $0x18] sm:$0xf] %vm3068_vm4, %v3481_v9  ;;  %v3482_v29 = vpack.c.bf16 %v2947_v24, %v2947_v24  ;;  %v2882_v42 = vadd.f32 1.0, %v4205_v60  ;;  %4224 = vpow2.f32 %v3444_v0  ;;  %v3873_v21 = vadd.f32 %v2726_v27, %v1620_v54 }
 0x1cd   : > { %v2729_v41 = vpop.f32.mrb[23].mxu0  ;;  %v4209_v51 = vpop.eup %4208  ;;  %3073 = vst.msk [vmem:[%s5002_s5 + $0x10] sm:$0xf] %vm3068_vm4, %v3479_v32  ;;  %v3480_v62 = vpack.c.bf16 %v2945_v5, %v2945_v5  ;;  %v2880_v30 = vadd.f32 1.0, %v4207_v19  ;;  %4226 = vpow2.f32 %v3442_v16  ;;  %v5041_v26 = vadd.f32 %v3872_v53, %v4925_v34 }
 0x1ce   : > { %v4211_v1 = vpop.eup %4210  ;;  %3076 = vst.msk [vmem:[%s5002_s5 + $0x1c] sm:$0xf] %vm3068_vm4, %v3482_v29  ;;  %4228 = vrcp.f32 %v2882_v42  ;;  %v2883_v25 = vadd.f32 1.0, %v4209_v51  ;;  %v5046_v40 = vadd.f32 %v3873_v21, %v4925_v34  ;;  %v3874_v6 = vadd.f32 %v3849_v33, %v3745_v4 }
 0x1cf   : > { %3074 = vst.msk [vmem:[%s5002_s5 + $0x14] sm:$0xf] %vm3068_vm4, %v3480_v62  ;;  %4230 = vrcp.f32 %v2880_v30  ;;  %v2881_v39 = vadd.f32 1.0, %v4211_v1  ;;  %v3447_v3 = vmul.f32 -1.442695, %v5041_v26  ;;  %v3875_v8 = vadd.f32 %v2729_v41, %v1623_v20 }
 0x1d0   : > { %v4213_v28 = vpop.eup %4212  ;;  %4232 = vrcp.f32 %v2883_v25  ;;  %v3445_v52 = vmul.f32 -1.442695, %v5046_v40  ;;  %v5053_v46 = vadd.f32 %v3874_v6, %v4925_v34 }
 0x1d1   : > { %v4215_v48 = vpop.eup %4214  ;;  %v2950_v17 = vmul.f32 %v4213_v28, %v4963_v31  ;;  %4234 = vrcp.f32 %v2881_v39  ;;  %v5057_v35 = vadd.f32 %v3875_v8, %v4925_v34 }
 0x1d2   : > { %v4217_v2 = vpop.eup %4216  ;;  %v2948_v23 = vmul.f32 %v4215_v48, %v4966_v47  ;;  %4236 = vpow2.f32 %v3447_v3  ;;  %v3448_v58 = vmul.f32 -1.442695, %v5053_v46 }
 0x1d3   : > { %v4219_v38 = vpop.eup %4218  ;;  %v3485_v43 = vpack.c.bf16 %v2950_v17, %v2950_v17  ;;  %v2951_v55 = vmul.f32 %v4217_v2, %v4971_v57  ;;  %4238 = vpow2.f32 %v3445_v52  ;;  %v3446_v31 = vmul.f32 -1.442695, %v5057_v35 }
 0x1d4   : > { %v4221_v45 = vpop.eup %4220  ;;  %v3483_v14 = vpack.c.bf16 %v2948_v23, %v2948_v23  ;;  %v2949_v34 = vmul.f32 %v4219_v38, %v4976_v13  ;;  %4240 = vpow2.f32 %v3448_v58 }
 0x1d5   : > { %v4223_v49 = vpop.eup %4222  ;;  %3079 = vst.msk [vmem:[%s5002_s5 + $0x28] sm:$0xf] %vm3068_vm4, %v3485_v43  ;;  %v3486_v47 = vpack.c.bf16 %v2951_v55, %v2951_v55  ;;  %v2886_v44 = vadd.f32 1.0, %v4221_v45  ;;  %4242 = vpow2.f32 %v3446_v31 }
 0x1d6   : > { %v4225_v54 = vpop.eup %4224  ;;  %3077 = vst.msk [vmem:[%s5002_s5 + $0x20] sm:$0xf] %vm3068_vm4, %v3483_v14  ;;  %v3484_v57 = vpack.c.bf16 %v2949_v34, %v2949_v34  ;;  %v2884_v37 = vadd.f32 1.0, %v4223_v49 }
 0x1d7   : > { %v4227_v18 = vpop.eup %4226  ;;  %3080 = vst.msk [vmem:[%s5002_s5 + $0x2c] sm:$0xf] %vm3068_vm4, %v3486_v47  ;;  %4244 = vrcp.f32 %v2886_v44  ;;  %v2887_v4 = vadd.f32 1.0, %v4225_v54 }
 0x1d8   : > { %v4229_v12 = vpop.eup %4228  ;;  %3078 = vst.msk [vmem:[%s5002_s5 + $0x24] sm:$0xf] %vm3068_vm4, %v3484_v57  ;;  %4246 = vrcp.f32 %v2884_v37  ;;  %v2885_v13 = vadd.f32 1.0, %v4227_v18 }
 0x1d9   : > { %v4231_v7 = vpop.eup %4230  ;;  %v2954_v0 = vmul.f32 %v4229_v12, %v4983_v61  ;;  %4248 = vrcp.f32 %v2887_v4 }
 0x1da   : > { %v4233_v11 = vpop.eup %4232  ;;  %v2952_v20 = vmul.f32 %v4231_v7, %v4986_v59  ;;  %4250 = vrcp.f32 %v2885_v13 }
 0x1db   : > { %v4235_v10 = vpop.eup %4234  ;;  %v3489_v9 = vpack.c.bf16 %v2954_v0, %v2954_v0  ;;  %v2955_v24 = vmul.f32 %v4233_v11, %v4991_v15 }
 0x1dc   : > { %v4237_v16 = vpop.eup %4236  ;;  %v3487_v27 = vpack.c.bf16 %v2952_v20, %v2952_v20  ;;  %v2953_v60 = vmul.f32 %v4235_v10, %v4995_v22 }
 0x1dd   : > { %v4239_v32 = vpop.eup %4238  ;;  %3083 = vst.msk [vmem:[%s5002_s5 + $0x38] sm:$0xf] %vm3068_vm4, %v3489_v9  ;;  %v3490_v61 = vpack.c.bf16 %v2955_v24, %v2955_v24  ;;  %v2890_v5 = vadd.f32 1.0, %v4237_v16 }
 0x1de   : > { %v4241_v53 = vpop.eup %4240  ;;  %3081 = vst.msk [vmem:[%s5002_s5 + $0x30] sm:$0xf] %vm3068_vm4, %v3487_v27  ;;  %v3488_v59 = vpack.c.bf16 %v2953_v60, %v2953_v60  ;;  %v2888_v33 = vadd.f32 1.0, %v4239_v32 }
 0x1df   : > { %v4243_v19 = vpop.eup %4242  ;;  %3084 = vst.msk [vmem:[%s5002_s5 + $0x3c] sm:$0xf] %vm3068_vm4, %v3490_v61  ;;  %4252 = vrcp.f32 %v2890_v5  ;;  %v2891_v15 = vadd.f32 1.0, %v4241_v53 }
 0x1e0   : > { %3082 = vst.msk [vmem:[%s5002_s5 + $0x34] sm:$0xf] %vm3068_vm4, %v3488_v59  ;;  %4254 = vrcp.f32 %v2888_v33  ;;  %v2889_v22 = vadd.f32 1.0, %v4243_v19 }
 0x1e1   : > { %v4245_v29 = vpop.eup %4244  ;;  %4256 = vrcp.f32 %v2891_v15 }
 0x1e2   : > { %v4247_v42 = vpop.eup %4246  ;;  %v2958_v21 = vmul.f32 %v4245_v29, %v5011_v63  ;;  %4258 = vrcp.f32 %v2889_v22 }
 0x1e3   : > { %v4249_v41 = vpop.eup %4248  ;;  %v2956_v51 = vmul.f32 %v4247_v42, %v5016_v36 }
 0x1e4   : > { %v4251_v62 = vpop.eup %4250  ;;  %v3493_v30 = vpack.c.bf16 %v2958_v21, %v2958_v21  ;;  %v2959_v1 = vmul.f32 %v4249_v41, %v5025_v50 }
 0x1e5   : > { %v3491_v25 = vpack.c.bf16 %v2956_v51, %v2956_v51  ;;  %v2957_v6 = vmul.f32 %v4251_v62, %v5029_v56 }
 0x1e6   : > { %3087 = vst.msk [vmem:[%s5002_s5 + $0x48] sm:$0xf] %vm3068_vm4, %v3493_v30  ;;  %v3494_v39 = vpack.c.bf16 %v2959_v1, %v2959_v1 }
 0x1e7   : > { %3085 = vst.msk [vmem:[%s5002_s5 + $0x40] sm:$0xf] %vm3068_vm4, %v3491_v25  ;;  %v3492_v3 = vpack.c.bf16 %v2957_v6, %v2957_v6 }
 0x1e8   : > { %3088 = vst.msk [vmem:[%s5002_s5 + $0x4c] sm:$0xf] %vm3068_vm4, %v3494_v39 }
 0x1e9   : > { %v4253_v63 = vpop.eup %4252  ;;  %3086 = vst.msk [vmem:[%s5002_s5 + $0x44] sm:$0xf] %vm3068_vm4, %v3492_v3 }
 0x1ea   : > { %v4255_v36 = vpop.eup %4254  ;;  %v2962_v50 = vmul.f32 %v4253_v63, %v5041_v26 }
 0x1eb   : > { %v4257_v8 = vpop.eup %4256  ;;  %v2960_v56 = vmul.f32 %v4255_v36, %v5046_v40 }
 0x1ec   : > { %v4259_v28 = vpop.eup %4258  ;;  %v3497_v52 = vpack.c.bf16 %v2962_v50, %v2962_v50  ;;  %v2963_v48 = vmul.f32 %v4257_v8, %v5053_v46 }
 0x1ed   : > { %v3495_v17 = vpack.c.bf16 %v2960_v56, %v2960_v56  ;;  %v2961_v2 = vmul.f32 %v4259_v28, %v5057_v35 }
 0x1ee   : > { %3091 = vst.msk [vmem:[%s5002_s5 + $0x58] sm:$0xf] %vm3068_vm4, %v3497_v52  ;;  %v3498_v23 = vpack.c.bf16 %v2963_v48, %v2963_v48 }
 0x1ef   : > { %3089 = vst.msk [vmem:[%s5002_s5 + $0x50] sm:$0xf] %vm3068_vm4, %v3495_v17  ;;  %v3496_v58 = vpack.c.bf16 %v2961_v2, %v2961_v2 }
 0x1f0   : > { %3092 = vst.msk [vmem:[%s5002_s5 + $0x5c] sm:$0xf] %vm3068_vm4, %v3498_v23 }
 0x1f1   : > { %3090 = vst.msk [vmem:[%s5002_s5 + $0x54] sm:$0xf] %vm3068_vm4, %v3496_v58 }
 0x1f2 PF: > { %s13_s16 = sadd.s32 1, %s4298_s16   ;;  %s5127_s12 = smov %s4290_s14 }
 0x1f3   : > { %p10_p8 = scmp.ge.s32.totalorder %s13_s16, 6   ;;  %s5128_s13 = smov %s4294_s15 }
 0x1f4   : > { %s5129_s14 = smov %s5132_s17  ;;  %s5130_s15 = smov %s5136_s18 }
 0x1f5   :  { %12 = sbr.rel (!%p10_p8) target bundleno = 3 (0x3), region = 76 }

</bundles_post_ra>
